<compile_context>
chip_gen: v7x
topology: tpu7x:2x2x1
jax: 0.10.0
libtpu: 0.0.40
codegen_flags: <defaults>
</compile_context>

<pallas_src>
import math
import functools

import numpy as np
import jax
import jax.numpy as jnp
from jax import lax
from jax.experimental import pallas as pl
from jax.experimental.pallas import tpu as pltpu


def _round_up(x, m):
    return ((x + m - 1) // m) * m


def _pick_tile_q(rows):
    # Largest lane/sublane-friendly tile that divides the row count while leaving
    # >= 2 grid steps (so the "parallel" axis can shard across both v7x
    # TensorCores).  Falls back to one full-slab step for tiny inputs.
    for t in (512, 256, 128, 64, 32, 16, 8):
        if rows % t == 0 and rows // t >= 2:
            return t
    return rows


def _gelu_tanh(x):
    # tanh-approximate GELU: the transcendental runs on the EUP slot instead of
    # ~a dozen VPU ops of an erf polynomial.  |diff| vs erf-GELU ~1e-3.
    # TODO(synk): reference nn.GELU() is erf-based; tanh approximation used here.
    c = math.sqrt(2.0 / math.pi)
    return 0.5 * x * (1.0 + jnp.tanh(c * (x + 0.044715 * (x * x * x))))


# --------------------------------- kernel ------------------------------------

def _decoder_block_kernel(
    # activations: query tile, full dec (self-attn K/V source), full enc
    dec_q_ref, dec_kv_ref, enc_kv_ref,
    # per-row batch ids (O(N*T) instead of O((N*T)^2) dense masks)
    qb_ref, kbd_ref, kbe_ref,
    # mha1 (self-attention): Q, fused K|V, output projection
    wq1_ref, bq1_ref, wkv1_ref, bkv1_ref, wo1_ref, bo1_ref,
    # mha2 (cross-attention): Q, fused K|V, output projection
    wq2_ref, bq2_ref, wkv2_ref, bkv2_ref, wo2_ref, bo2_ref,
    # layer norms (rows: ln1, ln2, ln3)
    ln_g_ref, ln_b_ref,
    # feed-forward
    wf1_ref, bf1_ref, wf2_ref, bf2_ref,
    # output
    out_ref,
    *, d_model, dk_pad, n_heads,
):
    f32, bf16 = jnp.float32, jnp.bfloat16
    H, dkp = n_heads, dk_pad
    Dp = out_ref.shape[-1]

    # lane-validity mask: only the real d_model lanes enter LN statistics
    lane_ok = (lax.broadcasted_iota(jnp.int32, (1, Dp), 1) < d_model).astype(f32)
    inv_d = 1.0 / d_model
    ln_g = ln_g_ref[...]
    ln_b = ln_b_ref[...]

    def layer_norm(x, i):
        mu = jnp.sum(x, axis=-1, keepdims=True) * inv_d
        xc = (x - mu) * lane_ok                       # two-pass variance, pads -> 0
        var = jnp.sum(xc * xc, axis=-1, keepdims=True) * inv_d
        return xc * lax.rsqrt(var + 1e-5) * ln_g[i:i + 1, :] + ln_b[i:i + 1, :]

    def additive_mask(kb_ref):
        # block-diagonal "same folded batch" mask generated in-kernel: a single
        # broadcast compare of the (tile_q, 1) query batch-id column against the
        # (1, N*T_k) key batch-id row.  No O((NT)^2) mask ever touches HBM.
        valid = qb_ref[...] == kb_ref[...]
        return jnp.where(valid, jnp.float32(0.0), jnp.float32(-1e30))

    def attention(q_f32, kv_f32, mask, wo_ref, bo_ref):
        # q_f32: (tile_q, H*dkp); kv_f32: (n_k, 2*H*dkp), [K heads | V heads].
        # Per-head slices are static and 128-lane aligned -> zero-cost views.
        q_bf = q_f32.astype(bf16)
        kv_bf = kv_f32.astype(bf16)
        a_heads = []
        for h in range(H):                             # H is small & static
            q_h = q_bf[:, h * dkp:(h + 1) * dkp]
            k_h = kv_bf[:, h * dkp:(h + 1) * dkp]
            v_h = kv_bf[:, (H + h) * dkp:(H + h + 1) * dkp]
            s = lax.dot_general(q_h, k_h, (((1,), (1,)), ((), ())),
                                preferred_element_type=f32)      # (tile_q, n_k)
            s = s + mask
            m = jnp.max(s, axis=-1, keepdims=True)
            e = jnp.exp(s - m)
            p = e * pl.reciprocal(jnp.sum(e, axis=-1, keepdims=True), approx=True)
            a_heads.append(jnp.dot(p.astype(bf16), v_h,
                                   preferred_element_type=f32))  # (tile_q, dkp)
        a = jnp.concatenate(a_heads, axis=-1).astype(bf16)       # (tile_q, H*dkp)
        # single K = H*dkp matmul: the head reduction happens inside the MXU
        # f32 accumulator (no per-head projection + cross-head VPU adds).
        return jnp.dot(a, wo_ref[...], preferred_element_type=f32) + bo_ref[...]

    raw_q = dec_q_ref[...]
    x_dec = raw_q.astype(f32)                         # (tile_q, Dp), pad lanes 0
    x_dec_bf = raw_q.astype(bf16)                     # hoisted bf16 cast
    dec_kv_bf = dec_kv_ref[...].astype(bf16)          # (N*T_dec, Dp)
    enc_kv_bf = enc_kv_ref[...].astype(bf16)          # (N*T_enc, Dp)

    # ---- block 1: self-attention + residual + LN ----
    # (reference causal slice masks keys >= T_out; with T_in == T_out it is a no-op)
    q1 = jnp.dot(x_dec_bf, wq1_ref[...], preferred_element_type=f32) + bq1_ref[...]
    kv1 = jnp.dot(dec_kv_bf, wkv1_ref[...], preferred_element_type=f32) + bkv1_ref[...]
    att1 = attention(q1, kv1, additive_mask(kbd_ref), wo1_ref, bo1_ref)
    x = layer_norm(x_dec + att1, 0)
    x_bf = x.astype(bf16)

    # ---- block 2: cross-attention + residual + LN ----
    q2 = jnp.dot(x_bf, wq2_ref[...], preferred_element_type=f32) + bq2_ref[...]
    kv2 = jnp.dot(enc_kv_bf, wkv2_ref[...], preferred_element_type=f32) + bkv2_ref[...]
    att2 = attention(q2, kv2, additive_mask(kbe_ref), wo2_ref, bo2_ref)
    x = layer_norm(x + att2, 1)
    x_bf = x.astype(bf16)

    # ---- block 3: MLP (Linear -> GELU -> Linear) + residual + LN ----
    h = jnp.dot(x_bf, wf1_ref[...], preferred_element_type=f32) + bf1_ref[...]
    h = _gelu_tanh(h)
    f = jnp.dot(h.astype(bf16), wf2_ref[...], preferred_element_type=f32) + bf2_ref[...]
    x = layer_norm(x + f, 2)

    # final dropout == identity at inference
    out_ref[...] = x.astype(out_ref.dtype)


# --------------------------- wrapper-side packing ------------------------------

def _pack_params(raw, *, d_k, d_model, n_heads, d_pad, dk_pad, f_pad):
    """Pack raw (PyTorch-layout) weights into lane-dense, per-head-128-aligned,
    bf16 form.  The 1/sqrt(d_k) attention scale is folded into the Q weights+bias."""
    (wq1, bq1, wk1, bk1, wv1, bv1, wo1, bo1,
     wq2, bq2, wk2, bk2, wv2, bv2, wo2, bo2,
     g1, be1, g2, be2, g3, be3,
     wf1, bf1, wf2, bf2) = raw
    H, dk, D = n_heads, d_k, d_model
    scale = 1.0 / math.sqrt(dk)

    def in_proj(w):    # (D, H*dk) -> (Dp, H*dkp); each head segment lane-aligned
        w = w.reshape(D, H, dk)
        w = jnp.pad(w, ((0, d_pad - D), (0, 0), (0, dk_pad - dk)))
        return w.reshape(d_pad, H * dk_pad)

    def in_bias(b):    # (1, H*dk) -> (1, H*dkp)
        b = b.reshape(1, H, dk)
        b = jnp.pad(b, ((0, 0), (0, 0), (0, dk_pad - dk)))
        return b.reshape(1, H * dk_pad)

    def out_proj(w):   # (H*dk, D) -> (H*dkp, Dp); zero rows for padded dk dims
        w = w.reshape(H, dk, D)
        w = jnp.pad(w, ((0, 0), (0, dk_pad - dk), (0, d_pad - D)))
        return w.reshape(H * dk_pad, d_pad)

    def pad_cols(w, tc):
        return jnp.pad(w, ((0, 0), (0, tc - w.shape[1])))

    def pad_both(w, tr, tc):
        return jnp.pad(w, ((0, tr - w.shape[0]), (0, tc - w.shape[1])))

    bf = lambda a: a.astype(jnp.bfloat16)
    f32 = lambda a: a.astype(jnp.float32)

    wkv1 = jnp.concatenate([in_proj(wk1), in_proj(wv1)], axis=1)   # (Dp, 2*H*dkp)
    bkv1 = jnp.concatenate([in_bias(bk1), in_bias(bv1)], axis=1)
    wkv2 = jnp.concatenate([in_proj(wk2), in_proj(wv2)], axis=1)
    bkv2 = jnp.concatenate([in_bias(bk2), in_bias(bv2)], axis=1)
    ln_g = jnp.concatenate([pad_cols(g1, d_pad), pad_cols(g2, d_pad),
                            pad_cols(g3, d_pad)], axis=0)
    ln_b = jnp.concatenate([pad_cols(be1, d_pad), pad_cols(be2, d_pad),
                            pad_cols(be3, d_pad)], axis=0)

    return [
        bf(in_proj(wq1) * scale), f32(in_bias(bq1) * scale),
        bf(wkv1), f32(bkv1), bf(out_proj(wo1)), f32(pad_cols(bo1, d_pad)),
        bf(in_proj(wq2) * scale), f32(in_bias(bq2) * scale),
        bf(wkv2), f32(bkv2), bf(out_proj(wo2)), f32(pad_cols(bo2, d_pad)),
        f32(ln_g), f32(ln_b),
        bf(pad_both(wf1, d_pad, f_pad)), f32(pad_cols(bf1, f_pad)),
        bf(pad_both(wf2, f_pad, d_pad)), f32(pad_cols(bf2, d_pad)),
    ]


def _vmem_limit_bytes(tile_q, nt_dec, nt_enc, d_pad, dk_pad, f_pad, n_heads,
                      weight_bytes):
    """Generation-aware VMEM budget: footprint estimate, capped at 3/4 of the
    device's physical VMEM (64 MiB on v7x, 128 MiB on v5e/v6e)."""
    hdkp = n_heads * dk_pad
    act_elems = (
        2 * tile_q * d_pad                      # double-buffered query tile + out
        + (nt_dec + nt_enc) * d_pad             # K/V source slabs
        + 2 * tile_q * hdkp                     # q1, q2
        + 2 * (nt_dec + nt_enc) * hdkp          # kv1, kv2
        + 3 * tile_q * max(nt_dec, nt_enc)      # per-head scores/probs transient
        + tile_q * hdkp                         # concatenated attention output
        + tile_q * f_pad                        # MLP hidden
        + 6 * tile_q * d_pad)                   # residual / LN temporaries
    estimate = 4 * act_elems + 2 * weight_bytes
    try:
        cap = int(pltpu.get_tpu_info().vmem_capacity_bytes)
    except Exception:
        cap = 64 * 1024 * 1024                  # conservative (v7x physical)
    return int(min(cap * 3 // 4, max(32 * 1024 * 1024, 2 * estimate)))


def decoder_block(enc_output, dec_input, raw_params, *, d_k, n_heads):
    n, t_dec, d_model = dec_input.shape
    _, t_enc, _ = enc_output.shape
    d_pad = _round_up(d_model, 128)            # lane-dense activations / stores
    dk_pad = _round_up(d_k, 128)               # lane-aligned per-head segments
    f_pad = _round_up(4 * d_model, 128)        # lane-dense MLP hidden
    nt_dec, nt_enc = n * t_dec, n * t_enc
    tile_q = _pick_tile_q(nt_dec)
    grid = (nt_dec // tile_q,)

    params = _pack_params(raw_params, d_k=d_k, d_model=d_model, n_heads=n_heads,
                          d_pad=d_pad, dk_pad=dk_pad, f_pad=f_pad)

    pad = ((0, 0), (0, d_pad - d_model))
    dec2 = jnp.pad(dec_input.reshape(nt_dec, d_model), pad)
    enc2 = jnp.pad(enc_output.reshape(nt_enc, d_model), pad)

    # O(N*T) per-row batch ids replace the old O((N*T)^2) dense masks.
    qb = jnp.asarray((np.arange(nt_dec, dtype=np.int32) // t_dec).reshape(nt_dec, 1))
    kbd = jnp.asarray((np.arange(nt_dec, dtype=np.int32) // t_dec).reshape(1, nt_dec))
    kbe = jnp.asarray((np.arange(nt_enc, dtype=np.int32) // t_enc).reshape(1, nt_enc))

    inputs = [dec2, dec2, enc2, qb, kbd, kbe] + params

    const2d = lambda i: (0, 0)
    in_specs = [
        pl.BlockSpec((tile_q, d_pad), lambda i: (i, 0)),   # query tile (streamed)
        pl.BlockSpec((nt_dec, d_pad), const2d),            # self-attn K/V source
        pl.BlockSpec((nt_enc, d_pad), const2d),            # cross-attn K/V source
        pl.BlockSpec((tile_q, 1), lambda i: (i, 0)),       # query batch ids
        pl.BlockSpec((1, nt_dec), const2d),                # dec key batch ids
        pl.BlockSpec((1, nt_enc), const2d),                # enc key batch ids
    ] + [pl.BlockSpec(p.shape, const2d) for p in params]   # weights: fetched once

    weight_bytes = sum(int(p.size) * p.dtype.itemsize for p in params)
    vmem_limit = _vmem_limit_bytes(tile_q, nt_dec, nt_enc, d_pad, dk_pad, f_pad,
                                   n_heads, weight_bytes)

    kernel = functools.partial(_decoder_block_kernel,
                               d_model=d_model, dk_pad=dk_pad, n_heads=n_heads)

    out = pl.pallas_call(
        kernel,
        out_shape=jax.ShapeDtypeStruct((nt_dec, d_pad), dec_input.dtype),
        grid=grid,
        in_specs=in_specs,
        out_specs=pl.BlockSpec((tile_q, d_pad), lambda i: (i, 0)),
        compiler_params=pltpu.CompilerParams(
            # query-tile axis is independent across tiles -> "parallel"
            # (shards the grid across both v7x TensorCores).
            dimension_semantics=("parallel",),
            vmem_limit_bytes=vmem_limit),
    )(*inputs)

    return out[:, :d_model].reshape(n, t_dec, d_model)


# --------------------------- deterministic params -----------------------------

def _init_params(key, d_k, d_model, n_heads):
    hd = d_k * n_heads

    def lin(k, din, dout):
        kw, kb = jax.random.split(k)
        w = 0.05 * jax.random.normal(kw, (din, dout), jnp.float32)
        b = 0.05 * jax.random.normal(kb, (1, dout), jnp.float32)
        return w, b

    keys = jax.random.split(key, 10)
    # mha1
    wq1, bq1 = lin(keys[0], d_model, hd)
    wk1, bk1 = lin(keys[1], d_model, hd)
    wv1, bv1 = lin(keys[2], d_model, hd)
    wo1, bo1 = lin(keys[3], hd, d_model)   # TODO(synk): reference declares hd*6 in-features (unrunnable)
    # mha2
    wq2, bq2 = lin(keys[4], d_model, hd)
    wk2, bk2 = lin(keys[5], d_model, hd)
    wv2, bv2 = lin(keys[6], d_model, hd)
    wo2, bo2 = lin(keys[7], hd, d_model)
    # layer norms (PyTorch default init: weight=1, bias=0)
    ones = jnp.ones((1, d_model), jnp.float32)
    zeros = jnp.zeros((1, d_model), jnp.float32)
    g1, be1, g2, be2, g3, be3 = ones, zeros, ones, zeros, ones, zeros
    # feed-forward
    wf1, bf1 = lin(keys[8], d_model, 4 * d_model)
    wf2, bf2 = lin(keys[9], 4 * d_model, d_model)

    return [
        wq1, bq1, wk1, bk1, wv1, bv1, wo1, bo1,
        wq2, bq2, wk2, bk2, wv2, bv2, wo2, bo2,
        g1, be1, g2, be2, g3, be3,
        wf1, bf1, wf2, bf2,
    ]


# ----------------------------------- main --------------------------------------

if __name__ == "__main__":
    d_k, n_heads, d_model = 8, 4, 32
    batch, t_dec, t_enc = 2, 8, 8

    key = jax.random.PRNGKey(0)
    k_enc, k_dec, k_par = jax.random.split(key, 3)

    enc_output = jax.random.normal(k_enc, (batch, t_enc, d_model), jnp.float32)
    dec_input = jax.random.normal(k_dec, (batch, t_dec, d_model), jnp.float32)
    raw_params = _init_params(k_par, d_k, d_model, n_heads)

    out = decoder_block(enc_output, dec_input, raw_params, d_k=d_k, n_heads=n_heads)
    out = jax.block_until_ready(out)

    assert out.shape == (batch, t_dec, d_model)
    assert bool(jnp.all(jnp.isfinite(out)))
    print("KERNEL_OK")
</pallas_src>

<mosaic_0001>
module attributes {stable_mosaic.version = 11 : i64} {
  func.func @_decoder_block_kernel(%arg0: i32, %arg1: memref<8x128xf32, #tpu.memory_space<vmem>>, %arg2: memref<16x128xf32, #tpu.memory_space<vmem>>, %arg3: memref<16x128xf32, #tpu.memory_space<vmem>>, %arg4: memref<8x1xi32, #tpu.memory_space<vmem>>, %arg5: memref<1x16xi32, #tpu.memory_space<vmem>>, %arg6: memref<1x16xi32, #tpu.memory_space<vmem>>, %arg7: memref<128x512xbf16, #tpu.memory_space<vmem>>, %arg8: memref<1x512xf32, #tpu.memory_space<vmem>>, %arg9: memref<128x1024xbf16, #tpu.memory_space<vmem>>, %arg10: memref<1x1024xf32, #tpu.memory_space<vmem>>, %arg11: memref<512x128xbf16, #tpu.memory_space<vmem>>, %arg12: memref<1x128xf32, #tpu.memory_space<vmem>>, %arg13: memref<128x512xbf16, #tpu.memory_space<vmem>>, %arg14: memref<1x512xf32, #tpu.memory_space<vmem>>, %arg15: memref<128x1024xbf16, #tpu.memory_space<vmem>>, %arg16: memref<1x1024xf32, #tpu.memory_space<vmem>>, %arg17: memref<512x128xbf16, #tpu.memory_space<vmem>>, %arg18: memref<1x128xf32, #tpu.memory_space<vmem>>, %arg19: memref<3x128xf32, #tpu.memory_space<vmem>>, %arg20: memref<3x128xf32, #tpu.memory_space<vmem>>, %arg21: memref<128x128xbf16, #tpu.memory_space<vmem>>, %arg22: memref<1x128xf32, #tpu.memory_space<vmem>>, %arg23: memref<128x128xbf16, #tpu.memory_space<vmem>>, %arg24: memref<1x128xf32, #tpu.memory_space<vmem>>, %arg25: memref<8x128xf32, #tpu.memory_space<vmem>>) attributes {dimension_semantics = [#tpu.dimension_semantics<parallel>], iteration_bounds = array<i64: 2>, scalar_prefetch = 0 : i64, scratch_operands = 0 : i64, tpu.core_type = #tpu.core_type<tc>, window_params = [{transform_indices = @transform_0, window_bounds = array<i64: 8, 128>}, {pipeline_mode = #tpu.pipeline_mode<synchronous>, transform_indices = @transform_1, window_bounds = array<i64: 16, 128>}, {pipeline_mode = #tpu.pipeline_mode<synchronous>, transform_indices = @transform_2, window_bounds = array<i64: 16, 128>}, {transform_indices = @transform_3, window_bounds = array<i64: 8, 1>}, {pipeline_mode = #tpu.pipeline_mode<synchronous>, transform_indices = @transform_4, window_bounds = array<i64: 1, 16>}, {pipeline_mode = #tpu.pipeline_mode<synchronous>, transform_indices = @transform_5, window_bounds = array<i64: 1, 16>}, {pipeline_mode = #tpu.pipeline_mode<synchronous>, transform_indices = @transform_6, window_bounds = array<i64: 128, 512>}, {pipeline_mode = #tpu.pipeline_mode<synchronous>, transform_indices = @transform_7, window_bounds = array<i64: 1, 512>}, {pipeline_mode = #tpu.pipeline_mode<synchronous>, transform_indices = @transform_8, window_bounds = array<i64: 128, 1024>}, {pipeline_mode = #tpu.pipeline_mode<synchronous>, transform_indices = @transform_9, window_bounds = array<i64: 1, 1024>}, {pipeline_mode = #tpu.pipeline_mode<synchronous>, transform_indices = @transform_10, window_bounds = array<i64: 512, 128>}, {pipeline_mode = #tpu.pipeline_mode<synchronous>, transform_indices = @transform_11, window_bounds = array<i64: 1, 128>}, {pipeline_mode = #tpu.pipeline_mode<synchronous>, transform_indices = @transform_12, window_bounds = array<i64: 128, 512>}, {pipeline_mode = #tpu.pipeline_mode<synchronous>, transform_indices = @transform_13, window_bounds = array<i64: 1, 512>}, {pipeline_mode = #tpu.pipeline_mode<synchronous>, transform_indices = @transform_14, window_bounds = array<i64: 128, 1024>}, {pipeline_mode = #tpu.pipeline_mode<synchronous>, transform_indices = @transform_15, window_bounds = array<i64: 1, 1024>}, {pipeline_mode = #tpu.pipeline_mode<synchronous>, transform_indices = @transform_16, window_bounds = array<i64: 512, 128>}, {pipeline_mode = #tpu.pipeline_mode<synchronous>, transform_indices = @transform_17, window_bounds = array<i64: 1, 128>}, {pipeline_mode = #tpu.pipeline_mode<synchronous>, transform_indices = @transform_18, window_bounds = array<i64: 3, 128>}, {pipeline_mode = #tpu.pipeline_mode<synchronous>, transform_indices = @transform_19, window_bounds = array<i64: 3, 128>}, {pipeline_mode = #tpu.pipeline_mode<synchronous>, transform_indices = @transform_20, window_bounds = array<i64: 128, 128>}, {pipeline_mode = #tpu.pipeline_mode<synchronous>, transform_indices = @transform_21, window_bounds = array<i64: 1, 128>}, {pipeline_mode = #tpu.pipeline_mode<synchronous>, transform_indices = @transform_22, window_bounds = array<i64: 128, 128>}, {pipeline_mode = #tpu.pipeline_mode<synchronous>, transform_indices = @transform_23, window_bounds = array<i64: 1, 128>}, {transform_indices = @transform_24, window_bounds = array<i64: 8, 128>}]} {
    %0 = tpu.iota {dimensions = array<i32: 1>} : vector<1x128xi32>
    %c32_i32 = arith.constant 32 : i32
    %1 = vector.broadcast %c32_i32 : i32 to vector<1x128xi32>
    %2 = arith.cmpi slt, %0, %1 : vector<1x128xi32>
    %3 = arith.extui %2 : vector<1x128xi1> to vector<1x128xi32>
    %4 = arith.sitofp %3 : vector<1x128xi32> to vector<1x128xf32>
    %c0 = arith.constant 0 : index
    %c0_0 = arith.constant 0 : index
    %5 = vector.load %arg19[%c0, %c0_0] : memref<3x128xf32, #tpu.memory_space<vmem>>, vector<3x128xf32>
    %c0_1 = arith.constant 0 : index
    %c0_2 = arith.constant 0 : index
    %6 = vector.load %arg20[%c0_1, %c0_2] : memref<3x128xf32, #tpu.memory_space<vmem>>, vector<3x128xf32>
    %c0_3 = arith.constant 0 : index
    %c0_4 = arith.constant 0 : index
    %7 = vector.load %arg1[%c0_3, %c0_4] : memref<8x128xf32, #tpu.memory_space<vmem>>, vector<8x128xf32>
    %8 = arith.truncf %7 : vector<8x128xf32> to vector<8x128xbf16>
    %c0_5 = arith.constant 0 : index
    %c0_6 = arith.constant 0 : index
    %9 = vector.load %arg2[%c0_5, %c0_6] : memref<16x128xf32, #tpu.memory_space<vmem>>, vector<16x128xf32>
    %10 = arith.truncf %9 : vector<16x128xf32> to vector<16x128xbf16>
    %c0_7 = arith.constant 0 : index
    %c0_8 = arith.constant 0 : index
    %11 = vector.load %arg3[%c0_7, %c0_8] : memref<16x128xf32, #tpu.memory_space<vmem>>, vector<16x128xf32>
    %12 = arith.truncf %11 : vector<16x128xf32> to vector<16x128xbf16>
    %c0_9 = arith.constant 0 : index
    %c0_10 = arith.constant 0 : index
    %13 = vector.load %arg7[%c0_9, %c0_10] : memref<128x512xbf16, #tpu.memory_space<vmem>>, vector<128x512xbf16>
    %cst = arith.constant dense<0.000000e+00> : vector<8x512xf32>
    %14 = tpu.matmul %8, %13, %cst {dimension_numbers = #tpu.dot_dimension_numbers<[1], [0], [0], [1], [0, 0, 1, 1], [], []>} : vector<8x128xbf16>, vector<128x512xbf16>, vector<8x512xf32> -> vector<8x512xf32>
    %c0_11 = arith.constant 0 : index
    %c0_12 = arith.constant 0 : index
    %15 = vector.load %arg8[%c0_11, %c0_12] : memref<1x512xf32, #tpu.memory_space<vmem>>, vector<1x512xf32>
    %16 = vector.broadcast %15 : vector<1x512xf32> to vector<8x512xf32>
    %17 = arith.addf %14, %16 : vector<8x512xf32>
    %c0_13 = arith.constant 0 : index
    %c0_14 = arith.constant 0 : index
    %18 = vector.load %arg9[%c0_13, %c0_14] : memref<128x1024xbf16, #tpu.memory_space<vmem>>, vector<128x1024xbf16>
    %cst_15 = arith.constant dense<0.000000e+00> : vector<16x1024xf32>
    %19 = tpu.matmul %10, %18, %cst_15 {dimension_numbers = #tpu.dot_dimension_numbers<[1], [0], [0], [1], [0, 0, 1, 1], [], []>} : vector<16x128xbf16>, vector<128x1024xbf16>, vector<16x1024xf32> -> vector<16x1024xf32>
    %c0_16 = arith.constant 0 : index
    %c0_17 = arith.constant 0 : index
    %20 = vector.load %arg10[%c0_16, %c0_17] : memref<1x1024xf32, #tpu.memory_space<vmem>>, vector<1x1024xf32>
    %21 = vector.broadcast %20 : vector<1x1024xf32> to vector<16x1024xf32>
    %22 = arith.addf %19, %21 : vector<16x1024xf32>
    %c0_18 = arith.constant 0 : index
    %c0_19 = arith.constant 0 : index
    %23 = vector.load %arg4[%c0_18, %c0_19] : memref<8x1xi32, #tpu.memory_space<vmem>>, vector<8x1xi32>
    %c0_20 = arith.constant 0 : index
    %c0_21 = arith.constant 0 : index
    %24 = vector.load %arg5[%c0_20, %c0_21] : memref<1x16xi32, #tpu.memory_space<vmem>>, vector<1x16xi32>
    %25 = vector.broadcast %23 : vector<8x1xi32> to vector<8x16xi32>
    %26 = vector.broadcast %24 : vector<1x16xi32> to vector<8x16xi32>
    %27 = arith.cmpi eq, %25, %26 : vector<8x16xi32>
    %cst_22 = arith.constant 0.000000e+00 : f32
    %cst_23 = arith.constant -1.000000e+30 : f32
    %28 = vector.broadcast %cst_22 : f32 to vector<8x16xf32>
    %29 = vector.broadcast %cst_23 : f32 to vector<8x16xf32>
    %30 = arith.select %27, %28, %29 : vector<8x16xi1>, vector<8x16xf32>
    %31 = arith.truncf %17 : vector<8x512xf32> to vector<8x512xbf16>
    %32 = arith.truncf %22 : vector<16x1024xf32> to vector<16x1024xbf16>
    %33 = vector.extract_strided_slice %31 {offsets = [0, 0], sizes = [8, 128], strides = [1, 1]} : vector<8x512xbf16> to vector<8x128xbf16>
    %34 = vector.extract_strided_slice %32 {offsets = [0, 0], sizes = [16, 128], strides = [1, 1]} : vector<16x1024xbf16> to vector<16x128xbf16>
    %35 = vector.extract_strided_slice %32 {offsets = [0, 512], sizes = [16, 128], strides = [1, 1]} : vector<16x1024xbf16> to vector<16x128xbf16>
    %cst_24 = arith.constant dense<0.000000e+00> : vector<8x16xf32>
    %36 = tpu.matmul %33, %34, %cst_24 {dimension_numbers = #tpu.dot_dimension_numbers<[1], [1], [0], [0], [0, 0, 1, 0], [], []>} : vector<8x128xbf16>, vector<16x128xbf16>, vector<8x16xf32> -> vector<8x16xf32>
    %37 = arith.addf %36, %30 : vector<8x16xf32>
    %cst_25 = arith.constant dense<0xFF800000> : vector<8xf32>
    %38 = vector.multi_reduction <maximumf>, %37, %cst_25 [1] : vector<8x16xf32> to vector<8xf32>
    %39 = vector.shape_cast %38 : vector<8xf32> to vector<8x1xf32>
    %40 = vector.broadcast %39 : vector<8x1xf32> to vector<8x16xf32>
    %41 = arith.subf %37, %40 : vector<8x16xf32>
    %42 = math.exp %41 : vector<8x16xf32>
    %cst_26 = arith.constant dense<0.000000e+00> : vector<8xf32>
    %43 = vector.multi_reduction <add>, %42, %cst_26 [1] : vector<8x16xf32> to vector<8xf32>
    %44 = vector.shape_cast %43 : vector<8xf32> to vector<8x1xf32>
    %45 = tpu.reciprocal %44 {approx = true} : vector<8x1xf32> -> vector<8x1xf32>
    %46 = vector.broadcast %45 : vector<8x1xf32> to vector<8x16xf32>
    %47 = arith.mulf %42, %46 : vector<8x16xf32>
    %48 = arith.truncf %47 : vector<8x16xf32> to vector<8x16xbf16>
    %cst_27 = arith.constant dense<0.000000e+00> : vector<8x128xf32>
    %49 = tpu.matmul %48, %35, %cst_27 {dimension_numbers = #tpu.dot_dimension_numbers<[1], [0], [0], [1], [0, 0, 1, 1], [], []>} : vector<8x16xbf16>, vector<16x128xbf16>, vector<8x128xf32> -> vector<8x128xf32>
    %50 = vector.extract_strided_slice %31 {offsets = [0, 128], sizes = [8, 128], strides = [1, 1]} : vector<8x512xbf16> to vector<8x128xbf16>
    %51 = vector.extract_strided_slice %32 {offsets = [0, 128], sizes = [16, 128], strides = [1, 1]} : vector<16x1024xbf16> to vector<16x128xbf16>
    %52 = vector.extract_strided_slice %32 {offsets = [0, 640], sizes = [16, 128], strides = [1, 1]} : vector<16x1024xbf16> to vector<16x128xbf16>
    %cst_28 = arith.constant dense<0.000000e+00> : vector<8x16xf32>
    %53 = tpu.matmul %50, %51, %cst_28 {dimension_numbers = #tpu.dot_dimension_numbers<[1], [1], [0], [0], [0, 0, 1, 0], [], []>} : vector<8x128xbf16>, vector<16x128xbf16>, vector<8x16xf32> -> vector<8x16xf32>
    %54 = arith.addf %53, %30 : vector<8x16xf32>
    %cst_29 = arith.constant dense<0xFF800000> : vector<8xf32>
    %55 = vector.multi_reduction <maximumf>, %54, %cst_29 [1] : vector<8x16xf32> to vector<8xf32>
    %56 = vector.shape_cast %55 : vector<8xf32> to vector<8x1xf32>
    %57 = vector.broadcast %56 : vector<8x1xf32> to vector<8x16xf32>
    %58 = arith.subf %54, %57 : vector<8x16xf32>
    %59 = math.exp %58 : vector<8x16xf32>
    %cst_30 = arith.constant dense<0.000000e+00> : vector<8xf32>
    %60 = vector.multi_reduction <add>, %59, %cst_30 [1] : vector<8x16xf32> to vector<8xf32>
    %61 = vector.shape_cast %60 : vector<8xf32> to vector<8x1xf32>
    %62 = tpu.reciprocal %61 {approx = true} : vector<8x1xf32> -> vector<8x1xf32>
    %63 = vector.broadcast %62 : vector<8x1xf32> to vector<8x16xf32>
    %64 = arith.mulf %59, %63 : vector<8x16xf32>
    %65 = arith.truncf %64 : vector<8x16xf32> to vector<8x16xbf16>
    %cst_31 = arith.constant dense<0.000000e+00> : vector<8x128xf32>
    %66 = tpu.matmul %65, %52, %cst_31 {dimension_numbers = #tpu.dot_dimension_numbers<[1], [0], [0], [1], [0, 0, 1, 1], [], []>} : vector<8x16xbf16>, vector<16x128xbf16>, vector<8x128xf32> -> vector<8x128xf32>
    %67 = vector.extract_strided_slice %31 {offsets = [0, 256], sizes = [8, 128], strides = [1, 1]} : vector<8x512xbf16> to vector<8x128xbf16>
    %68 = vector.extract_strided_slice %32 {offsets = [0, 256], sizes = [16, 128], strides = [1, 1]} : vector<16x1024xbf16> to vector<16x128xbf16>
    %69 = vector.extract_strided_slice %32 {offsets = [0, 768], sizes = [16, 128], strides = [1, 1]} : vector<16x1024xbf16> to vector<16x128xbf16>
    %cst_32 = arith.constant dense<0.000000e+00> : vector<8x16xf32>
    %70 = tpu.matmul %67, %68, %cst_32 {dimension_numbers = #tpu.dot_dimension_numbers<[1], [1], [0], [0], [0, 0, 1, 0], [], []>} : vector<8x128xbf16>, vector<16x128xbf16>, vector<8x16xf32> -> vector<8x16xf32>
    %71 = arith.addf %70, %30 : vector<8x16xf32>
    %cst_33 = arith.constant dense<0xFF800000> : vector<8xf32>
    %72 = vector.multi_reduction <maximumf>, %71, %cst_33 [1] : vector<8x16xf32> to vector<8xf32>
    %73 = vector.shape_cast %72 : vector<8xf32> to vector<8x1xf32>
    %74 = vector.broadcast %73 : vector<8x1xf32> to vector<8x16xf32>
    %75 = arith.subf %71, %74 : vector<8x16xf32>
    %76 = math.exp %75 : vector<8x16xf32>
    %cst_34 = arith.constant dense<0.000000e+00> : vector<8xf32>
    %77 = vector.multi_reduction <add>, %76, %cst_34 [1] : vector<8x16xf32> to vector<8xf32>
    %78 = vector.shape_cast %77 : vector<8xf32> to vector<8x1xf32>
    %79 = tpu.reciprocal %78 {approx = true} : vector<8x1xf32> -> vector<8x1xf32>
    %80 = vector.broadcast %79 : vector<8x1xf32> to vector<8x16xf32>
    %81 = arith.mulf %76, %80 : vector<8x16xf32>
    %82 = arith.truncf %81 : vector<8x16xf32> to vector<8x16xbf16>
    %cst_35 = arith.constant dense<0.000000e+00> : vector<8x128xf32>
    %83 = tpu.matmul %82, %69, %cst_35 {dimension_numbers = #tpu.dot_dimension_numbers<[1], [0], [0], [1], [0, 0, 1, 1], [], []>} : vector<8x16xbf16>, vector<16x128xbf16>, vector<8x128xf32> -> vector<8x128xf32>
    %84 = vector.extract_strided_slice %31 {offsets = [0, 384], sizes = [8, 128], strides = [1, 1]} : vector<8x512xbf16> to vector<8x128xbf16>
    %85 = vector.extract_strided_slice %32 {offsets = [0, 384], sizes = [16, 128], strides = [1, 1]} : vector<16x1024xbf16> to vector<16x128xbf16>
    %86 = vector.extract_strided_slice %32 {offsets = [0, 896], sizes = [16, 128], strides = [1, 1]} : vector<16x1024xbf16> to vector<16x128xbf16>
    %cst_36 = arith.constant dense<0.000000e+00> : vector<8x16xf32>
    %87 = tpu.matmul %84, %85, %cst_36 {dimension_numbers = #tpu.dot_dimension_numbers<[1], [1], [0], [0], [0, 0, 1, 0], [], []>} : vector<8x128xbf16>, vector<16x128xbf16>, vector<8x16xf32> -> vector<8x16xf32>
    %88 = arith.addf %87, %30 : vector<8x16xf32>
    %cst_37 = arith.constant dense<0xFF800000> : vector<8xf32>
    %89 = vector.multi_reduction <maximumf>, %88, %cst_37 [1] : vector<8x16xf32> to vector<8xf32>
    %90 = vector.shape_cast %89 : vector<8xf32> to vector<8x1xf32>
    %91 = vector.broadcast %90 : vector<8x1xf32> to vector<8x16xf32>
    %92 = arith.subf %88, %91 : vector<8x16xf32>
    %93 = math.exp %92 : vector<8x16xf32>
    %cst_38 = arith.constant dense<0.000000e+00> : vector<8xf32>
    %94 = vector.multi_reduction <add>, %93, %cst_38 [1] : vector<8x16xf32> to vector<8xf32>
    %95 = vector.shape_cast %94 : vector<8xf32> to vector<8x1xf32>
    %96 = tpu.reciprocal %95 {approx = true} : vector<8x1xf32> -> vector<8x1xf32>
    %97 = vector.broadcast %96 : vector<8x1xf32> to vector<8x16xf32>
    %98 = arith.mulf %93, %97 : vector<8x16xf32>
    %99 = arith.truncf %98 : vector<8x16xf32> to vector<8x16xbf16>
    %cst_39 = arith.constant dense<0.000000e+00> : vector<8x128xf32>
    %100 = tpu.matmul %99, %86, %cst_39 {dimension_numbers = #tpu.dot_dimension_numbers<[1], [0], [0], [1], [0, 0, 1, 1], [], []>} : vector<8x16xbf16>, vector<16x128xbf16>, vector<8x128xf32> -> vector<8x128xf32>
    %101 = tpu.concatenate %49, %66, %83, %100 in 1 : vector<8x128xf32>, vector<8x128xf32>, vector<8x128xf32>, vector<8x128xf32> -> vector<8x512xf32>
    %102 = arith.truncf %101 : vector<8x512xf32> to vector<8x512xbf16>
    %c0_40 = arith.constant 0 : index
    %c0_41 = arith.constant 0 : index
    %103 = vector.load %arg11[%c0_40, %c0_41] : memref<512x128xbf16, #tpu.memory_space<vmem>>, vector<512x128xbf16>
    %cst_42 = arith.constant dense<0.000000e+00> : vector<8x128xf32>
    %104 = tpu.matmul %102, %103, %cst_42 {dimension_numbers = #tpu.dot_dimension_numbers<[1], [0], [0], [1], [0, 0, 1, 1], [], []>} : vector<8x512xbf16>, vector<512x128xbf16>, vector<8x128xf32> -> vector<8x128xf32>
    %c0_43 = arith.constant 0 : index
    %c0_44 = arith.constant 0 : index
    %105 = vector.load %arg12[%c0_43, %c0_44] : memref<1x128xf32, #tpu.memory_space<vmem>>, vector<1x128xf32>
    %106 = vector.broadcast %105 : vector<1x128xf32> to vector<8x128xf32>
    %107 = arith.addf %104, %106 : vector<8x128xf32>
    %108 = arith.addf %7, %107 : vector<8x128xf32>
    %cst_45 = arith.constant dense<0.000000e+00> : vector<8xf32>
    %109 = vector.multi_reduction <add>, %108, %cst_45 [1] : vector<8x128xf32> to vector<8xf32>
    %110 = vector.shape_cast %109 : vector<8xf32> to vector<8x1xf32>
    %cst_46 = arith.constant 3.125000e-02 : f32
    %111 = vector.broadcast %cst_46 : f32 to vector<8x1xf32>
    %112 = arith.mulf %110, %111 : vector<8x1xf32>
    %113 = vector.broadcast %112 : vector<8x1xf32> to vector<8x128xf32>
    %114 = arith.subf %108, %113 : vector<8x128xf32>
    %115 = vector.broadcast %4 : vector<1x128xf32> to vector<8x128xf32>
    %116 = arith.mulf %114, %115 : vector<8x128xf32>
    %117 = arith.mulf %116, %116 : vector<8x128xf32>
    %cst_47 = arith.constant dense<0.000000e+00> : vector<8xf32>
    %118 = vector.multi_reduction <add>, %117, %cst_47 [1] : vector<8x128xf32> to vector<8xf32>
    %119 = vector.shape_cast %118 : vector<8xf32> to vector<8x1xf32>
    %cst_48 = arith.constant 3.125000e-02 : f32
    %120 = vector.broadcast %cst_48 : f32 to vector<8x1xf32>
    %121 = arith.mulf %119, %120 : vector<8x1xf32>
    %cst_49 = arith.constant 9.99999974E-6 : f32
    %122 = vector.broadcast %cst_49 : f32 to vector<8x1xf32>
    %123 = arith.addf %121, %122 : vector<8x1xf32>
    %124 = math.rsqrt %123 : vector<8x1xf32>
    %125 = vector.broadcast %124 : vector<8x1xf32> to vector<8x128xf32>
    %126 = arith.mulf %116, %125 : vector<8x128xf32>
    %127 = vector.extract_strided_slice %5 {offsets = [0, 0], sizes = [1, 128], strides = [1, 1]} : vector<3x128xf32> to vector<1x128xf32>
    %128 = vector.broadcast %127 : vector<1x128xf32> to vector<8x128xf32>
    %129 = arith.mulf %126, %128 : vector<8x128xf32>
    %130 = vector.extract_strided_slice %6 {offsets = [0, 0], sizes = [1, 128], strides = [1, 1]} : vector<3x128xf32> to vector<1x128xf32>
    %131 = vector.broadcast %130 : vector<1x128xf32> to vector<8x128xf32>
    %132 = arith.addf %129, %131 : vector<8x128xf32>
    %133 = arith.truncf %132 : vector<8x128xf32> to vector<8x128xbf16>
    %c0_50 = arith.constant 0 : index
    %c0_51 = arith.constant 0 : index
    %134 = vector.load %arg13[%c0_50, %c0_51] : memref<128x512xbf16, #tpu.memory_space<vmem>>, vector<128x512xbf16>
    %cst_52 = arith.constant dense<0.000000e+00> : vector<8x512xf32>
    %135 = tpu.matmul %133, %134, %cst_52 {dimension_numbers = #tpu.dot_dimension_numbers<[1], [0], [0], [1], [0, 0, 1, 1], [], []>} : vector<8x128xbf16>, vector<128x512xbf16>, vector<8x512xf32> -> vector<8x512xf32>
    %c0_53 = arith.constant 0 : index
    %c0_54 = arith.constant 0 : index
    %136 = vector.load %arg14[%c0_53, %c0_54] : memref<1x512xf32, #tpu.memory_space<vmem>>, vector<1x512xf32>
    %137 = vector.broadcast %136 : vector<1x512xf32> to vector<8x512xf32>
    %138 = arith.addf %135, %137 : vector<8x512xf32>
    %c0_55 = arith.constant 0 : index
    %c0_56 = arith.constant 0 : index
    %139 = vector.load %arg15[%c0_55, %c0_56] : memref<128x1024xbf16, #tpu.memory_space<vmem>>, vector<128x1024xbf16>
    %cst_57 = arith.constant dense<0.000000e+00> : vector<16x1024xf32>
    %140 = tpu.matmul %12, %139, %cst_57 {dimension_numbers = #tpu.dot_dimension_numbers<[1], [0], [0], [1], [0, 0, 1, 1], [], []>} : vector<16x128xbf16>, vector<128x1024xbf16>, vector<16x1024xf32> -> vector<16x1024xf32>
    %c0_58 = arith.constant 0 : index
    %c0_59 = arith.constant 0 : index
    %141 = vector.load %arg16[%c0_58, %c0_59] : memref<1x1024xf32, #tpu.memory_space<vmem>>, vector<1x1024xf32>
    %142 = vector.broadcast %141 : vector<1x1024xf32> to vector<16x1024xf32>
    %143 = arith.addf %140, %142 : vector<16x1024xf32>
    %c0_60 = arith.constant 0 : index
    %c0_61 = arith.constant 0 : index
    %144 = vector.load %arg4[%c0_60, %c0_61] : memref<8x1xi32, #tpu.memory_space<vmem>>, vector<8x1xi32>
    %c0_62 = arith.constant 0 : index
    %c0_63 = arith.constant 0 : index
    %145 = vector.load %arg6[%c0_62, %c0_63] : memref<1x16xi32, #tpu.memory_space<vmem>>, vector<1x16xi32>
    %146 = vector.broadcast %144 : vector<8x1xi32> to vector<8x16xi32>
    %147 = vector.broadcast %145 : vector<1x16xi32> to vector<8x16xi32>
    %148 = arith.cmpi eq, %146, %147 : vector<8x16xi32>
    %cst_64 = arith.constant 0.000000e+00 : f32
    %cst_65 = arith.constant -1.000000e+30 : f32
    %149 = vector.broadcast %cst_64 : f32 to vector<8x16xf32>
    %150 = vector.broadcast %cst_65 : f32 to vector<8x16xf32>
    %151 = arith.select %148, %149, %150 : vector<8x16xi1>, vector<8x16xf32>
    %152 = arith.truncf %138 : vector<8x512xf32> to vector<8x512xbf16>
    %153 = arith.truncf %143 : vector<16x1024xf32> to vector<16x1024xbf16>
    %154 = vector.extract_strided_slice %152 {offsets = [0, 0], sizes = [8, 128], strides = [1, 1]} : vector<8x512xbf16> to vector<8x128xbf16>
    %155 = vector.extract_strided_slice %153 {offsets = [0, 0], sizes = [16, 128], strides = [1, 1]} : vector<16x1024xbf16> to vector<16x128xbf16>
    %156 = vector.extract_strided_slice %153 {offsets = [0, 512], sizes = [16, 128], strides = [1, 1]} : vector<16x1024xbf16> to vector<16x128xbf16>
    %cst_66 = arith.constant dense<0.000000e+00> : vector<8x16xf32>
    %157 = tpu.matmul %154, %155, %cst_66 {dimension_numbers = #tpu.dot_dimension_numbers<[1], [1], [0], [0], [0, 0, 1, 0], [], []>} : vector<8x128xbf16>, vector<16x128xbf16>, vector<8x16xf32> -> vector<8x16xf32>
    %158 = arith.addf %157, %151 : vector<8x16xf32>
    %cst_67 = arith.constant dense<0xFF800000> : vector<8xf32>
    %159 = vector.multi_reduction <maximumf>, %158, %cst_67 [1] : vector<8x16xf32> to vector<8xf32>
    %160 = vector.shape_cast %159 : vector<8xf32> to vector<8x1xf32>
    %161 = vector.broadcast %160 : vector<8x1xf32> to vector<8x16xf32>
    %162 = arith.subf %158, %161 : vector<8x16xf32>
    %163 = math.exp %162 : vector<8x16xf32>
    %cst_68 = arith.constant dense<0.000000e+00> : vector<8xf32>
    %164 = vector.multi_reduction <add>, %163, %cst_68 [1] : vector<8x16xf32> to vector<8xf32>
    %165 = vector.shape_cast %164 : vector<8xf32> to vector<8x1xf32>
    %166 = tpu.reciprocal %165 {approx = true} : vector<8x1xf32> -> vector<8x1xf32>
    %167 = vector.broadcast %166 : vector<8x1xf32> to vector<8x16xf32>
    %168 = arith.mulf %163, %167 : vector<8x16xf32>
    %169 = arith.truncf %168 : vector<8x16xf32> to vector<8x16xbf16>
    %cst_69 = arith.constant dense<0.000000e+00> : vector<8x128xf32>
    %170 = tpu.matmul %169, %156, %cst_69 {dimension_numbers = #tpu.dot_dimension_numbers<[1], [0], [0], [1], [0, 0, 1, 1], [], []>} : vector<8x16xbf16>, vector<16x128xbf16>, vector<8x128xf32> -> vector<8x128xf32>
    %171 = vector.extract_strided_slice %152 {offsets = [0, 128], sizes = [8, 128], strides = [1, 1]} : vector<8x512xbf16> to vector<8x128xbf16>
    %172 = vector.extract_strided_slice %153 {offsets = [0, 128], sizes = [16, 128], strides = [1, 1]} : vector<16x1024xbf16> to vector<16x128xbf16>
    %173 = vector.extract_strided_slice %153 {offsets = [0, 640], sizes = [16, 128], strides = [1, 1]} : vector<16x1024xbf16> to vector<16x128xbf16>
    %cst_70 = arith.constant dense<0.000000e+00> : vector<8x16xf32>
    %174 = tpu.matmul %171, %172, %cst_70 {dimension_numbers = #tpu.dot_dimension_numbers<[1], [1], [0], [0], [0, 0, 1, 0], [], []>} : vector<8x128xbf16>, vector<16x128xbf16>, vector<8x16xf32> -> vector<8x16xf32>
    %175 = arith.addf %174, %151 : vector<8x16xf32>
    %cst_71 = arith.constant dense<0xFF800000> : vector<8xf32>
    %176 = vector.multi_reduction <maximumf>, %175, %cst_71 [1] : vector<8x16xf32> to vector<8xf32>
    %177 = vector.shape_cast %176 : vector<8xf32> to vector<8x1xf32>
    %178 = vector.broadcast %177 : vector<8x1xf32> to vector<8x16xf32>
    %179 = arith.subf %175, %178 : vector<8x16xf32>
    %180 = math.exp %179 : vector<8x16xf32>
    %cst_72 = arith.constant dense<0.000000e+00> : vector<8xf32>
    %181 = vector.multi_reduction <add>, %180, %cst_72 [1] : vector<8x16xf32> to vector<8xf32>
    %182 = vector.shape_cast %181 : vector<8xf32> to vector<8x1xf32>
    %183 = tpu.reciprocal %182 {approx = true} : vector<8x1xf32> -> vector<8x1xf32>
    %184 = vector.broadcast %183 : vector<8x1xf32> to vector<8x16xf32>
    %185 = arith.mulf %180, %184 : vector<8x16xf32>
    %186 = arith.truncf %185 : vector<8x16xf32> to vector<8x16xbf16>
    %cst_73 = arith.constant dense<0.000000e+00> : vector<8x128xf32>
    %187 = tpu.matmul %186, %173, %cst_73 {dimension_numbers = #tpu.dot_dimension_numbers<[1], [0], [0], [1], [0, 0, 1, 1], [], []>} : vector<8x16xbf16>, vector<16x128xbf16>, vector<8x128xf32> -> vector<8x128xf32>
    %188 = vector.extract_strided_slice %152 {offsets = [0, 256], sizes = [8, 128], strides = [1, 1]} : vector<8x512xbf16> to vector<8x128xbf16>
    %189 = vector.extract_strided_slice %153 {offsets = [0, 256], sizes = [16, 128], strides = [1, 1]} : vector<16x1024xbf16> to vector<16x128xbf16>
    %190 = vector.extract_strided_slice %153 {offsets = [0, 768], sizes = [16, 128], strides = [1, 1]} : vector<16x1024xbf16> to vector<16x128xbf16>
    %cst_74 = arith.constant dense<0.000000e+00> : vector<8x16xf32>
    %191 = tpu.matmul %188, %189, %cst_74 {dimension_numbers = #tpu.dot_dimension_numbers<[1], [1], [0], [0], [0, 0, 1, 0], [], []>} : vector<8x128xbf16>, vector<16x128xbf16>, vector<8x16xf32> -> vector<8x16xf32>
    %192 = arith.addf %191, %151 : vector<8x16xf32>
    %cst_75 = arith.constant dense<0xFF800000> : vector<8xf32>
    %193 = vector.multi_reduction <maximumf>, %192, %cst_75 [1] : vector<8x16xf32> to vector<8xf32>
    %194 = vector.shape_cast %193 : vector<8xf32> to vector<8x1xf32>
    %195 = vector.broadcast %194 : vector<8x1xf32> to vector<8x16xf32>
    %196 = arith.subf %192, %195 : vector<8x16xf32>
    %197 = math.exp %196 : vector<8x16xf32>
    %cst_76 = arith.constant dense<0.000000e+00> : vector<8xf32>
    %198 = vector.multi_reduction <add>, %197, %cst_76 [1] : vector<8x16xf32> to vector<8xf32>
    %199 = vector.shape_cast %198 : vector<8xf32> to vector<8x1xf32>
    %200 = tpu.reciprocal %199 {approx = true} : vector<8x1xf32> -> vector<8x1xf32>
    %201 = vector.broadcast %200 : vector<8x1xf32> to vector<8x16xf32>
    %202 = arith.mulf %197, %201 : vector<8x16xf32>
    %203 = arith.truncf %202 : vector<8x16xf32> to vector<8x16xbf16>
    %cst_77 = arith.constant dense<0.000000e+00> : vector<8x128xf32>
    %204 = tpu.matmul %203, %190, %cst_77 {dimension_numbers = #tpu.dot_dimension_numbers<[1], [0], [0], [1], [0, 0, 1, 1], [], []>} : vector<8x16xbf16>, vector<16x128xbf16>, vector<8x128xf32> -> vector<8x128xf32>
    %205 = vector.extract_strided_slice %152 {offsets = [0, 384], sizes = [8, 128], strides = [1, 1]} : vector<8x512xbf16> to vector<8x128xbf16>
    %206 = vector.extract_strided_slice %153 {offsets = [0, 384], sizes = [16, 128], strides = [1, 1]} : vector<16x1024xbf16> to vector<16x128xbf16>
    %207 = vector.extract_strided_slice %153 {offsets = [0, 896], sizes = [16, 128], strides = [1, 1]} : vector<16x1024xbf16> to vector<16x128xbf16>
    %cst_78 = arith.constant dense<0.000000e+00> : vector<8x16xf32>
    %208 = tpu.matmul %205, %206, %cst_78 {dimension_numbers = #tpu.dot_dimension_numbers<[1], [1], [0], [0], [0, 0, 1, 0], [], []>} : vector<8x128xbf16>, vector<16x128xbf16>, vector<8x16xf32> -> vector<8x16xf32>
    %209 = arith.addf %208, %151 : vector<8x16xf32>
    %cst_79 = arith.constant dense<0xFF800000> : vector<8xf32>
    %210 = vector.multi_reduction <maximumf>, %209, %cst_79 [1] : vector<8x16xf32> to vector<8xf32>
    %211 = vector.shape_cast %210 : vector<8xf32> to vector<8x1xf32>
    %212 = vector.broadcast %211 : vector<8x1xf32> to vector<8x16xf32>
    %213 = arith.subf %209, %212 : vector<8x16xf32>
    %214 = math.exp %213 : vector<8x16xf32>
    %cst_80 = arith.constant dense<0.000000e+00> : vector<8xf32>
    %215 = vector.multi_reduction <add>, %214, %cst_80 [1] : vector<8x16xf32> to vector<8xf32>
    %216 = vector.shape_cast %215 : vector<8xf32> to vector<8x1xf32>
    %217 = tpu.reciprocal %216 {approx = true} : vector<8x1xf32> -> vector<8x1xf32>
    %218 = vector.broadcast %217 : vector<8x1xf32> to vector<8x16xf32>
    %219 = arith.mulf %214, %218 : vector<8x16xf32>
    %220 = arith.truncf %219 : vector<8x16xf32> to vector<8x16xbf16>
    %cst_81 = arith.constant dense<0.000000e+00> : vector<8x128xf32>
    %221 = tpu.matmul %220, %207, %cst_81 {dimension_numbers = #tpu.dot_dimension_numbers<[1], [0], [0], [1], [0, 0, 1, 1], [], []>} : vector<8x16xbf16>, vector<16x128xbf16>, vector<8x128xf32> -> vector<8x128xf32>
    %222 = tpu.concatenate %170, %187, %204, %221 in 1 : vector<8x128xf32>, vector<8x128xf32>, vector<8x128xf32>, vector<8x128xf32> -> vector<8x512xf32>
    %223 = arith.truncf %222 : vector<8x512xf32> to vector<8x512xbf16>
    %c0_82 = arith.constant 0 : index
    %c0_83 = arith.constant 0 : index
    %224 = vector.load %arg17[%c0_82, %c0_83] : memref<512x128xbf16, #tpu.memory_space<vmem>>, vector<512x128xbf16>
    %cst_84 = arith.constant dense<0.000000e+00> : vector<8x128xf32>
    %225 = tpu.matmul %223, %224, %cst_84 {dimension_numbers = #tpu.dot_dimension_numbers<[1], [0], [0], [1], [0, 0, 1, 1], [], []>} : vector<8x512xbf16>, vector<512x128xbf16>, vector<8x128xf32> -> vector<8x128xf32>
    %c0_85 = arith.constant 0 : index
    %c0_86 = arith.constant 0 : index
    %226 = vector.load %arg18[%c0_85, %c0_86] : memref<1x128xf32, #tpu.memory_space<vmem>>, vector<1x128xf32>
    %227 = vector.broadcast %226 : vector<1x128xf32> to vector<8x128xf32>
    %228 = arith.addf %225, %227 : vector<8x128xf32>
    %229 = arith.addf %132, %228 : vector<8x128xf32>
    %cst_87 = arith.constant dense<0.000000e+00> : vector<8xf32>
    %230 = vector.multi_reduction <add>, %229, %cst_87 [1] : vector<8x128xf32> to vector<8xf32>
    %231 = vector.shape_cast %230 : vector<8xf32> to vector<8x1xf32>
    %cst_88 = arith.constant 3.125000e-02 : f32
    %232 = vector.broadcast %cst_88 : f32 to vector<8x1xf32>
    %233 = arith.mulf %231, %232 : vector<8x1xf32>
    %234 = vector.broadcast %233 : vector<8x1xf32> to vector<8x128xf32>
    %235 = arith.subf %229, %234 : vector<8x128xf32>
    %236 = vector.broadcast %4 : vector<1x128xf32> to vector<8x128xf32>
    %237 = arith.mulf %235, %236 : vector<8x128xf32>
    %238 = arith.mulf %237, %237 : vector<8x128xf32>
    %cst_89 = arith.constant dense<0.000000e+00> : vector<8xf32>
    %239 = vector.multi_reduction <add>, %238, %cst_89 [1] : vector<8x128xf32> to vector<8xf32>
    %240 = vector.shape_cast %239 : vector<8xf32> to vector<8x1xf32>
    %cst_90 = arith.constant 3.125000e-02 : f32
    %241 = vector.broadcast %cst_90 : f32 to vector<8x1xf32>
    %242 = arith.mulf %240, %241 : vector<8x1xf32>
    %cst_91 = arith.constant 9.99999974E-6 : f32
    %243 = vector.broadcast %cst_91 : f32 to vector<8x1xf32>
    %244 = arith.addf %242, %243 : vector<8x1xf32>
    %245 = math.rsqrt %244 : vector<8x1xf32>
    %246 = vector.broadcast %245 : vector<8x1xf32> to vector<8x128xf32>
    %247 = arith.mulf %237, %246 : vector<8x128xf32>
    %248 = vector.extract_strided_slice %5 {offsets = [1, 0], sizes = [1, 128], strides = [1, 1]} : vector<3x128xf32> to vector<1x128xf32>
    %249 = vector.broadcast %248 : vector<1x128xf32> to vector<8x128xf32>
    %250 = arith.mulf %247, %249 : vector<8x128xf32>
    %251 = vector.extract_strided_slice %6 {offsets = [1, 0], sizes = [1, 128], strides = [1, 1]} : vector<3x128xf32> to vector<1x128xf32>
    %252 = vector.broadcast %251 : vector<1x128xf32> to vector<8x128xf32>
    %253 = arith.addf %250, %252 : vector<8x128xf32>
    %254 = arith.truncf %253 : vector<8x128xf32> to vector<8x128xbf16>
    %c0_92 = arith.constant 0 : index
    %c0_93 = arith.constant 0 : index
    %255 = vector.load %arg21[%c0_92, %c0_93] : memref<128x128xbf16, #tpu.memory_space<vmem>>, vector<128x128xbf16>
    %cst_94 = arith.constant dense<0.000000e+00> : vector<8x128xf32>
    %256 = tpu.matmul %254, %255, %cst_94 {dimension_numbers = #tpu.dot_dimension_numbers<[1], [0], [0], [1], [0, 0, 1, 1], [], []>} : vector<8x128xbf16>, vector<128x128xbf16>, vector<8x128xf32> -> vector<8x128xf32>
    %c0_95 = arith.constant 0 : index
    %c0_96 = arith.constant 0 : index
    %257 = vector.load %arg22[%c0_95, %c0_96] : memref<1x128xf32, #tpu.memory_space<vmem>>, vector<1x128xf32>
    %258 = vector.broadcast %257 : vector<1x128xf32> to vector<8x128xf32>
    %259 = arith.addf %256, %258 : vector<8x128xf32>
    %cst_97 = arith.constant 5.000000e-01 : f32
    %260 = vector.broadcast %cst_97 : f32 to vector<8x128xf32>
    %261 = arith.mulf %260, %259 : vector<8x128xf32>
    %262 = arith.mulf %259, %259 : vector<8x128xf32>
    %263 = arith.mulf %262, %259 : vector<8x128xf32>
    %cst_98 = arith.constant 4.471500e-02 : f32
    %264 = vector.broadcast %cst_98 : f32 to vector<8x128xf32>
    %265 = arith.mulf %264, %263 : vector<8x128xf32>
    %266 = arith.addf %259, %265 : vector<8x128xf32>
    %cst_99 = arith.constant 0.797884583 : f32
    %267 = vector.broadcast %cst_99 : f32 to vector<8x128xf32>
    %268 = arith.mulf %267, %266 : vector<8x128xf32>
    %269 = math.tanh %268 : vector<8x128xf32>
    %cst_100 = arith.constant 1.000000e+00 : f32
    %270 = vector.broadcast %cst_100 : f32 to vector<8x128xf32>
    %271 = arith.addf %270, %269 : vector<8x128xf32>
    %272 = arith.mulf %261, %271 : vector<8x128xf32>
    %273 = arith.truncf %272 : vector<8x128xf32> to vector<8x128xbf16>
    %c0_101 = arith.constant 0 : index
    %c0_102 = arith.constant 0 : index
    %274 = vector.load %arg23[%c0_101, %c0_102] : memref<128x128xbf16, #tpu.memory_space<vmem>>, vector<128x128xbf16>
    %cst_103 = arith.constant dense<0.000000e+00> : vector<8x128xf32>
    %275 = tpu.matmul %273, %274, %cst_103 {dimension_numbers = #tpu.dot_dimension_numbers<[1], [0], [0], [1], [0, 0, 1, 1], [], []>} : vector<8x128xbf16>, vector<128x128xbf16>, vector<8x128xf32> -> vector<8x128xf32>
    %c0_104 = arith.constant 0 : index
    %c0_105 = arith.constant 0 : index
    %276 = vector.load %arg24[%c0_104, %c0_105] : memref<1x128xf32, #tpu.memory_space<vmem>>, vector<1x128xf32>
    %277 = vector.broadcast %276 : vector<1x128xf32> to vector<8x128xf32>
    %278 = arith.addf %275, %277 : vector<8x128xf32>
    %279 = arith.addf %253, %278 : vector<8x128xf32>
    %cst_106 = arith.constant dense<0.000000e+00> : vector<8xf32>
    %280 = vector.multi_reduction <add>, %279, %cst_106 [1] : vector<8x128xf32> to vector<8xf32>
    %281 = vector.shape_cast %280 : vector<8xf32> to vector<8x1xf32>
    %cst_107 = arith.constant 3.125000e-02 : f32
    %282 = vector.broadcast %cst_107 : f32 to vector<8x1xf32>
    %283 = arith.mulf %281, %282 : vector<8x1xf32>
    %284 = vector.broadcast %283 : vector<8x1xf32> to vector<8x128xf32>
    %285 = arith.subf %279, %284 : vector<8x128xf32>
    %286 = vector.broadcast %4 : vector<1x128xf32> to vector<8x128xf32>
    %287 = arith.mulf %285, %286 : vector<8x128xf32>
    %288 = arith.mulf %287, %287 : vector<8x128xf32>
    %cst_108 = arith.constant dense<0.000000e+00> : vector<8xf32>
    %289 = vector.multi_reduction <add>, %288, %cst_108 [1] : vector<8x128xf32> to vector<8xf32>
    %290 = vector.shape_cast %289 : vector<8xf32> to vector<8x1xf32>
    %cst_109 = arith.constant 3.125000e-02 : f32
    %291 = vector.broadcast %cst_109 : f32 to vector<8x1xf32>
    %292 = arith.mulf %290, %291 : vector<8x1xf32>
    %cst_110 = arith.constant 9.99999974E-6 : f32
    %293 = vector.broadcast %cst_110 : f32 to vector<8x1xf32>
    %294 = arith.addf %292, %293 : vector<8x1xf32>
    %295 = math.rsqrt %294 : vector<8x1xf32>
    %296 = vector.broadcast %295 : vector<8x1xf32> to vector<8x128xf32>
    %297 = arith.mulf %287, %296 : vector<8x128xf32>
    %298 = vector.extract_strided_slice %5 {offsets = [2, 0], sizes = [1, 128], strides = [1, 1]} : vector<3x128xf32> to vector<1x128xf32>
    %299 = vector.broadcast %298 : vector<1x128xf32> to vector<8x128xf32>
    %300 = arith.mulf %297, %299 : vector<8x128xf32>
    %301 = vector.extract_strided_slice %6 {offsets = [2, 0], sizes = [1, 128], strides = [1, 1]} : vector<3x128xf32> to vector<1x128xf32>
    %302 = vector.broadcast %301 : vector<1x128xf32> to vector<8x128xf32>
    %303 = arith.addf %300, %302 : vector<8x128xf32>
    %c0_111 = arith.constant 0 : index
    %c0_112 = arith.constant 0 : index
    %304 = vector.load %arg25[%c0_111, %c0_112] : memref<8x128xf32, #tpu.memory_space<vmem>>, vector<8x128xf32>
    tpu.vector_store %arg25[%c0_111, %c0_112], %303 {strides = array<i32>} : memref<8x128xf32, #tpu.memory_space<vmem>>, vector<8x128xf32>,
    return
  }
  func.func @transform_0(%arg0: i32) -> (i32, i32) {
    %c0_i32 = arith.constant 0 : i32
    %c0_i32_0 = arith.constant 0 : i32
    return %arg0, %c0_i32 : i32, i32
  }
  func.func @transform_1(%arg0: i32) -> (i32, i32) {
    %c0_i32 = arith.constant 0 : i32
    %c0_i32_0 = arith.constant 0 : i32
    %c0_i32_1 = arith.constant 0 : i32
    return %c0_i32, %c0_i32_0 : i32, i32
  }
  func.func @transform_2(%arg0: i32) -> (i32, i32) {
    %c0_i32 = arith.constant 0 : i32
    %c0_i32_0 = arith.constant 0 : i32
    %c0_i32_1 = arith.constant 0 : i32
    return %c0_i32, %c0_i32_0 : i32, i32
  }
  func.func @transform_3(%arg0: i32) -> (i32, i32) {
    %c0_i32 = arith.constant 0 : i32
    %c0_i32_0 = arith.constant 0 : i32
    return %arg0, %c0_i32 : i32, i32
  }
  func.func @transform_4(%arg0: i32) -> (i32, i32) {
    %c0_i32 = arith.constant 0 : i32
    %c0_i32_0 = arith.constant 0 : i32
    %c0_i32_1 = arith.constant 0 : i32
    return %c0_i32, %c0_i32_0 : i32, i32
  }
  func.func @transform_5(%arg0: i32) -> (i32, i32) {
    %c0_i32 = arith.constant 0 : i32
    %c0_i32_0 = arith.constant 0 : i32
    %c0_i32_1 = arith.constant 0 : i32
    return %c0_i32, %c0_i32_0 : i32, i32
  }
  func.func @transform_6(%arg0: i32) -> (i32, i32) {
    %c0_i32 = arith.constant 0 : i32
    %c0_i32_0 = arith.constant 0 : i32
    %c0_i32_1 = arith.constant 0 : i32
    return %c0_i32, %c0_i32_0 : i32, i32
  }
  func.func @transform_7(%arg0: i32) -> (i32, i32) {
    %c0_i32 = arith.constant 0 : i32
    %c0_i32_0 = arith.constant 0 : i32
    %c0_i32_1 = arith.constant 0 : i32
    return %c0_i32, %c0_i32_0 : i32, i32
  }
  func.func @transform_8(%arg0: i32) -> (i32, i32) {
    %c0_i32 = arith.constant 0 : i32
    %c0_i32_0 = arith.constant 0 : i32
    %c0_i32_1 = arith.constant 0 : i32
    return %c0_i32, %c0_i32_0 : i32, i32
  }
  func.func @transform_9(%arg0: i32) -> (i32, i32) {
    %c0_i32 = arith.constant 0 : i32
    %c0_i32_0 = arith.constant 0 : i32
    %c0_i32_1 = arith.constant 0 : i32
    return %c0_i32, %c0_i32_0 : i32, i32
  }
  func.func @transform_10(%arg0: i32) -> (i32, i32) {
    %c0_i32 = arith.constant 0 : i32
    %c0_i32_0 = arith.constant 0 : i32
    %c0_i32_1 = arith.constant 0 : i32
    return %c0_i32, %c0_i32_0 : i32, i32
  }
  func.func @transform_11(%arg0: i32) -> (i32, i32) {
    %c0_i32 = arith.constant 0 : i32
    %c0_i32_0 = arith.constant 0 : i32
    %c0_i32_1 = arith.constant 0 : i32
    return %c0_i32, %c0_i32_0 : i32, i32
  }
  func.func @transform_12(%arg0: i32) -> (i32, i32) {
    %c0_i32 = arith.constant 0 : i32
    %c0_i32_0 = arith.constant 0 : i32
    %c0_i32_1 = arith.constant 0 : i32
    return %c0_i32, %c0_i32_0 : i32, i32
  }
  func.func @transform_13(%arg0: i32) -> (i32, i32) {
    %c0_i32 = arith.constant 0 : i32
    %c0_i32_0 = arith.constant 0 : i32
    %c0_i32_1 = arith.constant 0 : i32
    return %c0_i32, %c0_i32_0 : i32, i32
  }
  func.func @transform_14(%arg0: i32) -> (i32, i32) {
    %c0_i32 = arith.constant 0 : i32
    %c0_i32_0 = arith.constant 0 : i32
    %c0_i32_1 = arith.constant 0 : i32
    return %c0_i32, %c0_i32_0 : i32, i32
  }
  func.func @transform_15(%arg0: i32) -> (i32, i32) {
    %c0_i32 = arith.constant 0 : i32
    %c0_i32_0 = arith.constant 0 : i32
    %c0_i32_1 = arith.constant 0 : i32
    return %c0_i32, %c0_i32_0 : i32, i32
  }
  func.func @transform_16(%arg0: i32) -> (i32, i32) {
    %c0_i32 = arith.constant 0 : i32
    %c0_i32_0 = arith.constant 0 : i32
    %c0_i32_1 = arith.constant 0 : i32
    return %c0_i32, %c0_i32_0 : i32, i32
  }
  func.func @transform_17(%arg0: i32) -> (i32, i32) {
    %c0_i32 = arith.constant 0 : i32
    %c0_i32_0 = arith.constant 0 : i32
    %c0_i32_1 = arith.constant 0 : i32
    return %c0_i32, %c0_i32_0 : i32, i32
  }
  func.func @transform_18(%arg0: i32) -> (i32, i32) {
    %c0_i32 = arith.constant 0 : i32
    %c0_i32_0 = arith.constant 0 : i32
    %c0_i32_1 = arith.constant 0 : i32
    return %c0_i32, %c0_i32_0 : i32, i32
  }
  func.func @transform_19(%arg0: i32) -> (i32, i32) {
    %c0_i32 = arith.constant 0 : i32
    %c0_i32_0 = arith.constant 0 : i32
    %c0_i32_1 = arith.constant 0 : i32
    return %c0_i32, %c0_i32_0 : i32, i32
  }
  func.func @transform_20(%arg0: i32) -> (i32, i32) {
    %c0_i32 = arith.constant 0 : i32
    %c0_i32_0 = arith.constant 0 : i32
    %c0_i32_1 = arith.constant 0 : i32
    return %c0_i32, %c0_i32_0 : i32, i32
  }
  func.func @transform_21(%arg0: i32) -> (i32, i32) {
    %c0_i32 = arith.constant 0 : i32
    %c0_i32_0 = arith.constant 0 : i32
    %c0_i32_1 = arith.constant 0 : i32
    return %c0_i32, %c0_i32_0 : i32, i32
  }
  func.func @transform_22(%arg0: i32) -> (i32, i32) {
    %c0_i32 = arith.constant 0 : i32
    %c0_i32_0 = arith.constant 0 : i32
    %c0_i32_1 = arith.constant 0 : i32
    return %c0_i32, %c0_i32_0 : i32, i32
  }
  func.func @transform_23(%arg0: i32) -> (i32, i32) {
    %c0_i32 = arith.constant 0 : i32
    %c0_i32_0 = arith.constant 0 : i32
    %c0_i32_1 = arith.constant 0 : i32
    return %c0_i32, %c0_i32_0 : i32, i32
  }
  func.func @transform_24(%arg0: i32) -> (i32, i32) {
    %c0_i32 = arith.constant 0 : i32
    %c0_i32_0 = arith.constant 0 : i32
    return %arg0, %c0_i32 : i32, i32
  }
}

</mosaic_0001>

<bundles_post_ra>
// kernel: tpu_custom_call.1
= control target key start
LH: loop header
LB: loop body
LE: loop exit
PB: predicated region body
PF: predicated region fallthrough
CT: control target
= control target key end

     0   :  { %s7436_s0 = inlined_call_operand.vmem [shape: f32[16,128], index: 0, kind: input, shape index: {}]   ;;  %s7437_s1 = inlined_call_operand.hbm [shape: f32[16,128], index: 1, kind: input, shape index: {}]   ;;  %s7438_s2 = inlined_call_operand.hbm [shape: f32[16,128], index: 2, kind: input, shape index: {}]   ;;  %s7439_s3 = inlined_call_operand.vmem [shape: s32[16,1], index: 3, kind: input, shape index: {}]   ;;  %s7440_s4 = inlined_call_operand.hbm [shape: s32[1,16], index: 4, kind: input, shape index: {}]   ;;  %s7441_s5 = inlined_call_operand.hbm [shape: s32[1,16], index: 5, kind: input, shape index: {}]   ;;  %s7442_s6 = inlined_call_operand.hbm [shape: bf16[128,512], index: 6, kind: input, shape index: {}]   ;;  %s7443_s7 = inlined_call_operand.vmem [shape: f32[1,512], index: 7, kind: input, shape index: {}]   ;;  %s7444_s8 = inlined_call_operand.hbm [shape: bf16[128,1024], index: 8, kind: input, shape index: {}]   ;;  %s7445_s9 = inlined_call_operand.vmem [shape: f32[1,1024], index: 9, kind: input, shape index: {}]   ;;  %s7446_s10 = inlined_call_operand.hbm [shape: bf16[512,128], index: 10, kind: input, shape index: {}]   ;;  %s7447_s11 = inlined_call_operand.hbm [shape: f32[1,128], index: 11, kind: input, shape index: {}]   ;;  %s7448_s12 = inlined_call_operand.hbm [shape: bf16[128,512], index: 12, kind: input, shape index: {}]   ;;  %s7449_s13 = inlined_call_operand.hbm [shape: f32[1,512], index: 13, kind: input, shape index: {}]   ;;  %s7450_s14 = inlined_call_operand.hbm [shape: bf16[128,1024], index: 14, kind: input, shape index: {}]   ;;  %s7451_s15 = inlined_call_operand.hbm [shape: f32[1,1024], index: 15, kind: input, shape index: {}]   ;;  %s7452_s16 = inlined_call_operand.hbm [shape: bf16[512,128], index: 16, kind: input, shape index: {}]   ;;  %s7453_s17 = inlined_call_operand.hbm [shape: f32[1,128], index: 17, kind: input, shape index: {}]   ;;  %s7454_s18 = inlined_call_operand.hbm [shape: f32[3,128], index: 18, kind: input, shape index: {}]   ;;  %s7455_s19 = inlined_call_operand.hbm [shape: f32[3,128], index: 19, kind: input, shape index: {}]   ;;  %s7456_s20 = inlined_call_operand.vmem [shape: bf16[128,128], index: 20, kind: input, shape index: {}]   ;;  %s7457_s21 = inlined_call_operand.vmem [shape: f32[1,128], index: 21, kind: input, shape index: {}]   ;;  %s7458_s22 = inlined_call_operand.hbm [shape: bf16[128,128], index: 22, kind: input, shape index: {}]   ;;  %s7459_s23 = inlined_call_operand.vmem [shape: f32[1,128], index: 23, kind: input, shape index: {}]   ;;  %s7460_s24 = inlined_call_operand.hbm [shape: f32[16,128], index: 24, kind: output, shape index: {}]  }
   0x1   :  { %7495 = sst [smem:[#allocation49_spill]] %s7436_s0 }
   0x2   :  { %7496 = sst [smem:[#allocation50_spill]] %s7437_s1 }
   0x3   :  { %7497 = sst [smem:[#allocation51_spill]] %s7438_s2 }
   0x4   :  { %7498 = sst [smem:[#allocation52_spill]] %s7439_s3 }
   0x5   :  { %7499 = sst [smem:[#allocation53_spill]] %s7440_s4 }
   0x6   :  { %7500 = sst [smem:[#allocation54_spill]] %s7441_s5 }
   0x7   :  { %7501 = sst [smem:[#allocation55_spill]] %s7442_s6 }
   0x8   :  { %7502 = sst [smem:[#allocation56_spill]] %s7443_s7 }
   0x9   :  { %7503 = sst [smem:[#allocation57_spill]] %s7444_s8 }
   0xa   :  { %7504 = sst [smem:[#allocation58_spill]] %s7445_s9 }
   0xb   :  { %7505 = sst [smem:[#allocation59_spill]] %s7447_s11 }
   0xc   :  { %7506 = sst [smem:[#allocation60_spill]] %s7456_s20 }
   0xd   :  { %7507 = sst [smem:[#allocation61_spill]] %s7457_s21 }
   0xe   :  { %7508 = sst [smem:[#allocation62_spill]] %s7459_s23 }
   0xf   :  { %7509 = sst [smem:[#allocation63_spill]] %s7460_s24 }
  0x10   :  { %29 = vsyncpa [#allocation3], 0 }
  0x11   :  { %30 = vsyncpa [#allocation6], 0 }
  0x12   :  { %31 = vsyncpa [#allocation9], 0 }
  0x13   :  { %32 = vsyncpa [#allocation12], 0 }
  0x14   :  { %33 = vsyncpa [#allocation15], 0 }
  0x15   :  { %34 = vsyncpa [#allocation18], 0 }
  0x16   :  { %35 = vsyncpa [#allocation21], 0 }
  0x17   :  { %36 = vsyncpa [#allocation24], 0 }
  0x18   :  { %37 = vsyncpa [#allocation27], 0 }
  0x19   :  { %38 = vsyncpa [#allocation4], 0 }
  0x1a   :  { %40 = vsyncpa [#allocation4 + $0x1], 0  ;;  %s6614_s5 = smov 0   ;;  %s6616_s26 = smov 0  }
  0x1b   :  { %s6618_s27 = smov 0   ;;  %s6620_s28 = smov 0  }
  0x1c LB: > { %7510 = sst [smem:[#allocation40_spill]] %s6445_s5  ;;  %s6635_s6 = sadd.s32 4294967295, %s6457_s28   ;;  %s6457_s28 = sphi %s6620_s28, %s7574_s28   ;;  %s6453_s27 = sphi %s6618_s27, %s7577_s27   ;;  %s6449_s26 = sphi %s6616_s26, %s7576_s26   ;;  %s6445_s5 = sphi %s6614_s5, %s7575_s5  }
  0x1d   : > { %7511 = sst [smem:[#allocation41_spill]] %s6449_s26  ;;  %s4835_s2 = sadd.s32 4294967294, %s6457_s28  }
  0x1e   : > { %7512 = sst [smem:[#allocation42_spill]] %s6453_s27  ;;  %s6639_s29 = sadd.s32 1, %s6457_s28  }
  0x1f   : > { %7513 = sst [smem:[#allocation43_spill]] %s6457_s28  ;;  %s567_s0 = sadd.s32 1, %s6453_s27 }
  0x20   : > { %7514 = sst [smem:[#allocation44_spill]] %s6635_s6  ;;  %s564_s7 = ssub.s32 %s6457_s28, %s6639_s29 }
  0x21   : > { %7515 = sst [smem:[#allocation45_spill]] %s6639_s29  ;;  %p577_p0 = scmp.ne.s32.totalorder %s6453_s27, %s6449_s26 }
  0x22   : > { %p565_p1 = scmp.eq.s32.totalorder %s564_s7, 0  ;;  %p578_p2 = scmp.eq.s32.totalorder %s6635_s6, 1 }
  0x23   : > { %p583_p3 = scmp.ne.s32.totalorder %s6449_s26, %s6445_s5  ;;  %p584_p4 = scmp.eq.s32.totalorder %s4835_s2, 1 }
  0x24   : > { %s6650_s30 = scalar_select %p565_p1, %s6453_s27, %s567_s0  }
  0x25   : > { %p6652_p5 = por %p578_p2, %p577_p0  ;;  %p6656_p6 = por %p584_p4, %p583_p3 }
  0x26   : > { %7516 = sst [smem:[#allocation46_spill]] %s6650_s30  ;;  %p4836_p7 = scmp.ge.s32.totalorder %s6457_s28, 1 }
  0x27   : > { %s7517_s3 = scalar_select %p6652_p5, 1, 0 }
  0x28   : > { %s7519_s25 = scalar_select %p6656_p6, 1, 0 }
  0x29   : > { %7518 = sst [smem:[#allocation47_spill]] %s7517_s3  ;;  %p591_p8 = scmp.lt.s32.totalorder %s6457_s28, 3 }
  0x2a   : > { %7520 = sst [smem:[#allocation48_spill]] %s7519_s25  ;;  %p7477_p9 = scmp.eq.s32.totalorder %s6635_s6, 0 }
  0x2b   : > { %p6663_p10 = pnand %p4836_p7, %p591_p8  ;;  %s6459_s4 = smov [#allocation5]  }
  0x2c   : > { %s616_s1 = sshll.u32 %s6459_s4, 4  ;;  %s6460_s0 = smov [#allocation8]   ;;  %s6669_s1 = int_to_ptr.vmem [resolvable:$true] %s616_s1 }
  0x2d   : > { %s7521_s8 = scalar_select %p6663_p10, 1, 0 }
  0x2e   : > { %p5511_p11 = pneg %p6663_p10  ;;  %s641_s7 = sshll.u32 %s6460_s0, 4  ;;  %s6677_s7 = int_to_ptr.vmem [resolvable:$true] %s641_s7 }
  0x2f   : > { %s6461_s30 = smov [#allocation11]   ;;  %s7523_s5 = sld [smem:[#allocation51_spill]] }
  0x30   : > { %p6673_p12 = pnand %p7477_p9, %p5511_p11  ;;  %s6679_s27 = sshll.u32 %s6461_s30, 4  ;;  %s668_s27 = int_to_ptr.vmem [resolvable:$true] %s6679_s27 }
  0x32   : > { %p6689_p0 = pneg %p6673_p12 }
  0x35   : > { %s7524_s24 = smov %s7523_s5  ;;  %s5883_s28 = scalar_lea.hbm %s7523_s5, 256 }
  0x36   : > { %p5884_p13 = scmp.ne.s32.totalorder %s7524_s24, %s5883_s28  ;;  %p5890_p3 = scmp.lt.u32.totalorder %s5883_s28, %s7524_s24 }
  0x38   : > { %p5886_p1 = pnand %p6689_p0, %p5884_p13 }
  0x3a   : > { %p5887_p2 = pneg %p5886_p1 }
  0x3c   : > { %p5892_p4 = pnand %p5890_p3, %p5887_p2 }
  0x3e   : > { %5895 = shalt.err (!%p5892_p4)
}
  0x3f   : > { %s5896_s5 = scalar_lea.vmem %s6669_s1, 256  ;;  %p5904_p9 = scmp.lt.s32.totalorder %s6669_s1, %s6669_s1 }
  0x40   : > { %p5897_p7 = scmp.ne.s32.totalorder %s6669_s1, %s5896_s5  ;;  %p5905_p6 = scmp.lt.s32.totalorder %s5896_s5, %s5896_s5 }
  0x42   : > { %p5899_p8 = pnand %p5897_p7, %p6689_p0  ;;  %p5906_p13 = por %p5905_p6, %p5904_p9 }
  0x44   : > { %p5900_p11 = pneg %p5899_p8 }
  0x46   : > { %p5907_p1 = pnand %p5906_p13, %p5900_p11 }
  0x48   : > { %5910 = shalt.err (!%p5907_p1)
}
  0x49   : > { %s7481_s29 = smov 128   ;;  %s7482_s28 = smov 8  }
  0x4a   : > { %5517 = dma.hbm_to_vmem [thread:$0]  (!%p6673_p12), %s7524_s24, 256, %s6669_s1, [#allocation6], %s7481_s29, %s7481_s29, %s7482_s28  }
  0x4b   : > { %s7526_s30 = sld [smem:[#allocation54_spill]] }
  0x51   : > { %s5911_s5 = scalar_lea.hbm %s7526_s30, 16 }
  0x52   : > { %p5912_p6 = scmp.ne.s32.totalorder %s7526_s30, %s5911_s5  ;;  %p5918_p3 = scmp.lt.u32.totalorder %s5911_s5, %s7526_s30 }
  0x54   : > { %p5914_p9 = pnand %p5912_p6, %p6689_p0 }
  0x56   : > { %p5915_p2 = pneg %p5914_p9 }
  0x58   : > { %p5920_p4 = pnand %p5918_p3, %p5915_p2 }
  0x5a   : > { %5923 = shalt.err (!%p5920_p4)
}
  0x5b   : > { %s5924_s1 = scalar_lea.vmem %s6677_s7, 16  ;;  %s5931_s21 = scalar_lea.vmem %s6677_s7, 32 }
  0x5c   : > { %p5925_p7 = scmp.ne.s32.totalorder %s6677_s7, %s5924_s1  ;;  %p5932_p13 = scmp.lt.s32.totalorder %s6677_s7, %s6677_s7 }
  0x5d   : > { %p5933_p1 = scmp.lt.s32.totalorder %s5931_s21, %s5924_s1 }
  0x5e   : > { %p5927_p8 = pnand %p5925_p7, %p6689_p0 }
  0x5f   : > { %p5934_p6 = por %p5933_p1, %p5932_p13 }
  0x60   : > { %p5928_p11 = pneg %p5927_p8 }
  0x62   : > { %p5935_p9 = pnand %p5934_p6, %p5928_p11 }
  0x64   : > { %5938 = shalt.err (!%p5935_p9)
}
  0x65   : > { %5523 = dma.hbm_to_vmem [thread:$0]  (!%p6673_p12), %s7526_s30, 16, %s6677_s7, [#allocation9]  }
  0x66   : > { %s7527_s25 = sld [smem:[#allocation57_spill]] }
  0x6c   : > { %s5939_s4 = scalar_lea.hbm %s7527_s25, 8192 }
  0x6d   : > { %p5940_p2 = scmp.ne.s32.totalorder %s7527_s25, %s5939_s4  ;;  %p5946_p7 = scmp.lt.u32.totalorder %s5939_s4, %s7527_s25 }
  0x6f   : > { %p5942_p3 = pnand %p5940_p2, %p6689_p0 }
  0x71   : > { %p5943_p4 = pneg %p5942_p3 }
  0x73   : > { %p5948_p8 = pnand %p5946_p7, %p5943_p4 }
  0x75   : > { %5951 = shalt.err (!%p5948_p8)
}
  0x76   : > { %s5952_s9 = scalar_lea.vmem %s668_s27, 8192  ;;  %p5960_p6 = scmp.lt.s32.totalorder %s668_s27, %s668_s27 }
  0x77   : > { %p5953_p11 = scmp.ne.s32.totalorder %s668_s27, %s5952_s9  ;;  %p5961_p9 = scmp.lt.s32.totalorder %s5952_s9, %s5952_s9 }
  0x79   : > { %p5955_p13 = pnand %p5953_p11, %p6689_p0  ;;  %p5962_p5 = por %p5961_p9, %p5960_p6 }
  0x7b   : > { %p5956_p1 = pneg %p5955_p13 }
  0x7d   : > { %p5963_p10 = pnand %p5962_p5, %p5956_p1 }
  0x7f   : > { %5966 = shalt.err (!%p5963_p10)
}
  0x80   : > { %s7487_s7 = smov 512   ;;  %s7488_s20 = smov 32  }
  0x81   : > { %5529 = dma.hbm_to_vmem [thread:$0]  (!%p6673_p12), %s7527_s25, 8192, %s668_s27, [#allocation12], %s7487_s7, %s7487_s7, %s7488_s20  }
  0x82   : > { %s6466_s4 = smov [#allocation14]   ;;  %s6467_s5 = smov [#allocation17]  }
  0x83   : > { %s697_s0 = sshll.u32 %s6466_s4, 4  ;;  %s721_s1 = sshll.u32 %s6467_s5, 4  ;;  %s698_s0 = int_to_ptr.vmem [resolvable:$true] %s697_s0  ;;  %s722_s1 = int_to_ptr.vmem [resolvable:$true] %s721_s1 }
  0x84   : > { %s7528_s11 = sld [smem:[#allocation59_spill]] }
  0x8a   : > { %s5967_s29 = scalar_lea.hbm %s7528_s11, 16 }
  0x8b   : > { %p5968_p5 = scmp.ne.s32.totalorder %s7528_s11, %s5967_s29  ;;  %p5974_p3 = scmp.lt.u32.totalorder %s5967_s29, %s7528_s11 }
  0x8d   : > { %p5970_p10 = pnand %p5968_p5, %p6689_p0 }
  0x8f   : > { %p5971_p2 = pneg %p5970_p10 }
  0x91   : > { %p5976_p4 = pnand %p5974_p3, %p5971_p2 }
  0x93   : > { %5979 = shalt.err (!%p5976_p4)
}
  0x94   : > { %s5980_s27 = scalar_lea.vmem %s698_s0, 16  ;;  %s5987_s23 = scalar_lea.vmem %s698_s0, 32 }
  0x95   : > { %p5981_p7 = scmp.ne.s32.totalorder %s698_s0, %s5980_s27  ;;  %p5988_p13 = scmp.lt.s32.totalorder %s698_s0, %s698_s0 }
  0x96   : > { %p5989_p1 = scmp.lt.s32.totalorder %s5987_s23, %s5980_s27 }
  0x97   : > { %p5983_p8 = pnand %p5981_p7, %p6689_p0 }
  0x98   : > { %p5990_p6 = por %p5989_p1, %p5988_p13 }
  0x99   : > { %p5984_p11 = pneg %p5983_p8 }
  0x9b   : > { %p5991_p9 = pnand %p5990_p6, %p5984_p11 }
  0x9d   : > { %5994 = shalt.err (!%p5991_p9)
}
  0x9e   : > { %5535 = dma.hbm_to_vmem [thread:$0]  (!%p6673_p12), %s7528_s11, 16, %s698_s0, [#allocation15]  }
  0x9f   : > { %s5995_s30 = scalar_lea.hbm %s7449_s13, 64 }
  0xa0   : > { %p5996_p5 = scmp.ne.s32.totalorder %s7449_s13, %s5995_s30  ;;  %p6002_p3 = scmp.lt.u32.totalorder %s5995_s30, %s7449_s13 }
  0xa2   : > { %p5998_p10 = pnand %p5996_p5, %p6689_p0 }
  0xa4   : > { %p5999_p2 = pneg %p5998_p10 }
  0xa6   : > { %p6004_p4 = pnand %p6002_p3, %p5999_p2 }
  0xa8   : > { %6007 = shalt.err (!%p6004_p4)
}
  0xa9   : > { %s6008_s9 = scalar_lea.vmem %s722_s1, 64  ;;  %p6016_p13 = scmp.lt.s32.totalorder %s722_s1, %s722_s1 }
  0xaa   : > { %p6009_p7 = scmp.ne.s32.totalorder %s722_s1, %s6008_s9  ;;  %p6017_p1 = scmp.lt.s32.totalorder %s6008_s9, %s6008_s9 }
  0xac   : > { %p6011_p8 = pnand %p6009_p7, %p6689_p0  ;;  %p6018_p6 = por %p6017_p1, %p6016_p13 }
  0xae   : > { %p6012_p11 = pneg %p6011_p8 }
  0xb0   : > { %p6019_p9 = pnand %p6018_p6, %p6012_p11 }
  0xb2   : > { %6022 = shalt.err (!%p6019_p9)
}
  0xb3   : > { %5541 = dma.hbm_to_vmem [thread:$0]  (!%p6673_p12), %s7449_s13, 64, %s722_s1, [#allocation18]  }
  0xb4   : > { %s6468_s23 = smov [#allocation20]   ;;  %s6469_s28 = smov [#allocation23]  }
  0xb5   : > { %s745_s24 = sshll.u32 %s6468_s23, 4  ;;  %s769_s6 = sshll.u32 %s6469_s28, 4  ;;  %s746_s24 = int_to_ptr.vmem [resolvable:$true] %s745_s24  ;;  %s770_s6 = int_to_ptr.vmem [resolvable:$true] %s769_s6 }
  0xb6   : > { %s6023_s3 = scalar_lea.hbm %s7451_s15, 128 }
  0xb7   : > { %p6024_p5 = scmp.ne.s32.totalorder %s7451_s15, %s6023_s3  ;;  %p6030_p3 = scmp.lt.u32.totalorder %s6023_s3, %s7451_s15 }
  0xb9   : > { %p6026_p10 = pnand %p6024_p5, %p6689_p0 }
  0xbb   : > { %p6027_p2 = pneg %p6026_p10 }
  0xbd   : > { %p6032_p4 = pnand %p6030_p3, %p6027_p2 }
  0xbf   : > { %6035 = shalt.err (!%p6032_p4)
}
  0xc0   : > { %s6036_s1 = scalar_lea.vmem %s746_s24, 128  ;;  %p6044_p13 = scmp.lt.s32.totalorder %s746_s24, %s746_s24 }
  0xc1   : > { %p6037_p7 = scmp.ne.s32.totalorder %s746_s24, %s6036_s1  ;;  %p6045_p1 = scmp.lt.s32.totalorder %s6036_s1, %s6036_s1 }
  0xc3   : > { %p6039_p8 = pnand %p6037_p7, %p6689_p0  ;;  %p6046_p6 = por %p6045_p1, %p6044_p13 }
  0xc5   : > { %p6040_p11 = pneg %p6039_p8 }
  0xc7   : > { %p6047_p9 = pnand %p6046_p6, %p6040_p11 }
  0xc9   : > { %6050 = shalt.err (!%p6047_p9)
}
  0xca   : > { %5547 = dma.hbm_to_vmem [thread:$0]  (!%p6673_p12), %s7451_s15, 128, %s746_s24, [#allocation21]  }
  0xcb   : > { %s6051_s29 = scalar_lea.hbm %s7453_s17, 16 }
  0xcc   : > { %p6052_p5 = scmp.ne.s32.totalorder %s7453_s17, %s6051_s29  ;;  %p6058_p3 = scmp.lt.u32.totalorder %s6051_s29, %s7453_s17 }
  0xce   : > { %p6054_p10 = pnand %p6052_p5, %p6689_p0 }
  0xd0   : > { %p6055_p2 = pneg %p6054_p10 }
  0xd2   : > { %p6060_p4 = pnand %p6058_p3, %p6055_p2 }
  0xd4   : > { %6063 = shalt.err (!%p6060_p4)
}
  0xd5   : > { %s6064_s21 = scalar_lea.vmem %s770_s6, 16  ;;  %s6071_s24 = scalar_lea.vmem %s770_s6, 32 }
  0xd6   : > { %p6065_p7 = scmp.ne.s32.totalorder %s770_s6, %s6064_s21  ;;  %p6072_p13 = scmp.lt.s32.totalorder %s770_s6, %s770_s6 }
  0xd7   : > { %p6073_p1 = scmp.lt.s32.totalorder %s6071_s24, %s6064_s21 }
  0xd8   : > { %p6067_p8 = pnand %p6065_p7, %p6689_p0 }
  0xd9   : > { %p6074_p6 = por %p6073_p1, %p6072_p13 }
  0xda   : > { %p6068_p11 = pneg %p6067_p8 }
  0xdc   : > { %p6075_p9 = pnand %p6074_p6, %p6068_p11 }
  0xde   : > { %6078 = shalt.err (!%p6075_p9)
}
  0xdf   : > { %5553 = dma.hbm_to_vmem [thread:$0]  (!%p6673_p12), %s7453_s17, 16, %s770_s6, [#allocation24]  }
  0xe0   : > { %s6470_s0 = smov [#allocation26]   ;;  %s6471_s23 = smov [#allocation2]  }
  0xe1   : > { %s791_s27 = sshll.u32 %s6470_s0, 4  ;;  %s603_s28 = sshll.u32 %s6471_s23, 4  ;;  %s792_s27 = int_to_ptr.vmem [resolvable:$true] %s791_s27  ;;  %s604_s28 = int_to_ptr.vmem [resolvable:$true] %s603_s28 }
  0xe2   : > { %s6079_s3 = scalar_lea.hbm %s7455_s19, 64 }
  0xe3   : > { %p6080_p5 = scmp.ne.s32.totalorder %s7455_s19, %s6079_s3  ;;  %p6086_p3 = scmp.lt.u32.totalorder %s6079_s3, %s7455_s19 }
  0xe5   : > { %p6082_p10 = pnand %p6080_p5, %p6689_p0 }
  0xe7   : > { %p6083_p2 = pneg %p6082_p10 }
  0xe9   : > { %p6088_p4 = pnand %p6086_p3, %p6083_p2 }
  0xeb   : > { %6091 = shalt.err (!%p6088_p4)
}
  0xec   : > { %s6092_s6 = scalar_lea.vmem %s792_s27, 64  ;;  %p6100_p13 = scmp.lt.s32.totalorder %s792_s27, %s792_s27 }
  0xed   : > { %p6093_p7 = scmp.ne.s32.totalorder %s792_s27, %s6092_s6  ;;  %p6101_p1 = scmp.lt.s32.totalorder %s6092_s6, %s6092_s6 }
  0xef   : > { %p6095_p8 = pnand %p6093_p7, %p6689_p0  ;;  %p6102_p6 = por %p6101_p1, %p6100_p13 }
  0xf1   : > { %p6096_p11 = pneg %p6095_p8 }
  0xf3   : > { %p6103_p9 = pnand %p6102_p6, %p6096_p11 }
  0xf5   : > { %6106 = shalt.err (!%p6103_p9)
}
  0xf6   : > { %5559 = dma.hbm_to_vmem [thread:$0]  (!%p6673_p12), %s7455_s19, 64, %s792_s27, [#allocation27]  }
  0xf7   : > { %s7529_s29 = sld [smem:[#allocation50_spill]] }
  0xfd   : > { %s6107_s30 = scalar_lea.hbm %s7529_s29, 256 }
  0xfe   : > { %p6108_p5 = scmp.ne.s32.totalorder %s7529_s29, %s6107_s30  ;;  %p6114_p3 = scmp.lt.u32.totalorder %s6107_s30, %s7529_s29 }
 0x100   : > { %p6110_p10 = pnand %p6108_p5, %p6689_p0 }
 0x102   : > { %p6111_p2 = pneg %p6110_p10 }
 0x104   : > { %p6116_p4 = pnand %p6114_p3, %p6111_p2 }
 0x106   : > { %6119 = shalt.err (!%p6116_p4)
}
 0x107   : > { %s6120_s24 = scalar_lea.vmem %s604_s28, 256  ;;  %p6128_p13 = scmp.lt.s32.totalorder %s604_s28, %s604_s28 }
 0x108   : > { %p6121_p7 = scmp.ne.s32.totalorder %s604_s28, %s6120_s24  ;;  %p6129_p1 = scmp.lt.s32.totalorder %s6120_s24, %s6120_s24 }
 0x10a   : > { %p6123_p8 = pnand %p6121_p7, %p6689_p0  ;;  %p6130_p6 = por %p6129_p1, %p6128_p13 }
 0x10c   : > { %p6124_p11 = pneg %p6123_p8 }
 0x10e   : > { %p6131_p9 = pnand %p6130_p6, %p6124_p11 }
 0x110   : > { %6134 = shalt.err (!%p6131_p9)
}
 0x111   : > { %s7530_s27 = smov 8   ;;  %s7531_s6 = smov 128  }
 0x112   : > { %5514 = dma.hbm_to_vmem [thread:$0]  (!%p6673_p12), %s7529_s29, 256, %s604_s28, [#allocation3], %s7531_s6, %s7531_s6, %s7530_s27  }
 0x113   : > { %s6472_s0 = smov [#allocation7]   ;;  %s6473_s30 = smov [#allocation10]  }
 0x114   : > { %s630_s23 = sshll.u32 %s6472_s0, 4  ;;  %s651_s3 = sshll.u32 %s6473_s30, 4  ;;  %s631_s23 = int_to_ptr.vmem [resolvable:$true] %s630_s23  ;;  %s652_s3 = int_to_ptr.vmem [resolvable:$true] %s651_s3 }
 0x115   : > { %s7532_s21 = sld [smem:[#allocation53_spill]] }
 0x11b   : > { %s6135_s24 = scalar_lea.hbm %s7532_s21, 16 }
 0x11c   : > { %p6136_p5 = scmp.ne.s32.totalorder %s7532_s21, %s6135_s24  ;;  %p6142_p3 = scmp.lt.u32.totalorder %s6135_s24, %s7532_s21 }
 0x11e   : > { %p6138_p10 = pnand %p6136_p5, %p6689_p0 }
 0x120   : > { %p6139_p2 = pneg %p6138_p10 }
 0x122   : > { %p6144_p4 = pnand %p6142_p3, %p6139_p2 }
 0x124   : > { %6147 = shalt.err (!%p6144_p4)
}
 0x125   : > { %s6148_s28 = scalar_lea.vmem %s631_s23, 16  ;;  %s6155_s27 = scalar_lea.vmem %s631_s23, 32 }
 0x126   : > { %p6149_p7 = scmp.ne.s32.totalorder %s631_s23, %s6148_s28  ;;  %p6156_p13 = scmp.lt.s32.totalorder %s631_s23, %s631_s23 }
 0x127   : > { %p6157_p1 = scmp.lt.s32.totalorder %s6155_s27, %s6148_s28 }
 0x128   : > { %p6151_p8 = pnand %p6149_p7, %p6689_p0 }
 0x129   : > { %p6158_p6 = por %p6157_p1, %p6156_p13 }
 0x12a   : > { %p6152_p11 = pneg %p6151_p8 }
 0x12c   : > { %p6159_p9 = pnand %p6158_p6, %p6152_p11 }
 0x12e   : > { %6162 = shalt.err (!%p6159_p9)
}
 0x12f   : > { %5520 = dma.hbm_to_vmem [thread:$0]  (!%p6673_p12), %s7532_s21, 16, %s631_s23, [#allocation6]  }
 0x130   : > { %s7533_s1 = sld [smem:[#allocation55_spill]] }
 0x136   : > { %s6163_s0 = scalar_lea.hbm %s7533_s1, 4096 }
 0x137   : > { %p6164_p5 = scmp.ne.s32.totalorder %s7533_s1, %s6163_s0  ;;  %p6170_p3 = scmp.lt.u32.totalorder %s6163_s0, %s7533_s1 }
 0x139   : > { %p6166_p10 = pnand %p6164_p5, %p6689_p0 }
 0x13b   : > { %p6167_p2 = pneg %p6166_p10 }
 0x13d   : > { %p6172_p4 = pnand %p6170_p3, %p6167_p2 }
 0x13f   : > { %6175 = shalt.err (!%p6172_p4)
}
 0x140   : > { %s6176_s9 = scalar_lea.vmem %s652_s3, 4096  ;;  %p6184_p13 = scmp.lt.s32.totalorder %s652_s3, %s652_s3 }
 0x141   : > { %p6177_p7 = scmp.ne.s32.totalorder %s652_s3, %s6176_s9  ;;  %p6185_p1 = scmp.lt.s32.totalorder %s6176_s9, %s6176_s9 }
 0x143   : > { %p6179_p8 = pnand %p6177_p7, %p6689_p0  ;;  %p6186_p6 = por %p6185_p1, %p6184_p13 }
 0x145   : > { %p6180_p11 = pneg %p6179_p8 }
 0x147   : > { %p6187_p9 = pnand %p6186_p6, %p6180_p11 }
 0x149   : > { %6190 = shalt.err (!%p6187_p9)
}
 0x14a   : > { %s7489_s23 = smov 256   ;;  %s7490_s28 = smov 16  }
 0x14b   : > { %5526 = dma.hbm_to_vmem [thread:$0]  (!%p6673_p12), %s7533_s1, 4096, %s652_s3, [#allocation9], %s7489_s23, %s7489_s23, %s7490_s28  }
 0x14c   : > { %s6476_s20 = smov [#allocation13]   ;;  %s6191_s30 = scalar_lea.hbm %s7446_s10, 4096 }
 0x14d   : > { %s683_s11 = sshll.u32 %s6476_s20, 4  ;;  %p6192_p5 = scmp.ne.s32.totalorder %s7446_s10, %s6191_s30  ;;  %s684_s11 = int_to_ptr.vmem [resolvable:$true] %s683_s11 }
 0x14e   : > { %p6198_p3 = scmp.lt.u32.totalorder %s6191_s30, %s7446_s10 }
 0x14f   : > { %p6194_p10 = pnand %p6192_p5, %p6689_p0 }
 0x151   : > { %p6195_p2 = pneg %p6194_p10 }
 0x153   : > { %p6200_p4 = pnand %p6198_p3, %p6195_p2 }
 0x155   : > { %6203 = shalt.err (!%p6200_p4)
}
 0x156   : > { %s6204_s3 = scalar_lea.vmem %s684_s11, 4096  ;;  %p6212_p13 = scmp.lt.s32.totalorder %s684_s11, %s684_s11 }
 0x157   : > { %p6205_p7 = scmp.ne.s32.totalorder %s684_s11, %s6204_s3  ;;  %p6213_p1 = scmp.lt.s32.totalorder %s6204_s3, %s6204_s3 }
 0x159   : > { %p6207_p8 = pnand %p6205_p7, %p6689_p0  ;;  %p6214_p6 = por %p6213_p1, %p6212_p13 }
 0x15b   : > { %p6208_p11 = pneg %p6207_p8 }
 0x15d   : > { %p6215_p9 = pnand %p6214_p6, %p6208_p11 }
 0x15f   : > { %6218 = shalt.err (!%p6215_p9)
}
 0x160   : > { %s7491_s27 = smov 64   ;;  %s7493_s7 = smov 4  }
 0x161   : > { %5532 = dma.hbm_to_vmem [thread:$0]  (!%p6673_p12), %s7446_s10, 4096, %s684_s11, [#allocation12], %s7491_s27, %s7491_s27, %s7493_s7  }
 0x162   : > { %s6479_s0 = smov [#allocation16]   ;;  %s6480_s4 = smov [#allocation19]  }
 0x163   : > { %s707_s30 = sshll.u32 %s6479_s0, 4  ;;  %s731_s5 = sshll.u32 %s6480_s4, 4  ;;  %s708_s30 = int_to_ptr.vmem [resolvable:$true] %s707_s30  ;;  %s6930_s5 = int_to_ptr.vmem [resolvable:$true] %s731_s5 }
 0x164   : > { %s6219_s3 = scalar_lea.hbm %s7448_s12, 4096 }
 0x165   : > { %p6220_p5 = scmp.ne.s32.totalorder %s7448_s12, %s6219_s3  ;;  %p6226_p3 = scmp.lt.u32.totalorder %s6219_s3, %s7448_s12 }
 0x167   : > { %p6222_p10 = pnand %p6220_p5, %p6689_p0 }
 0x169   : > { %p6223_p2 = pneg %p6222_p10 }
 0x16b   : > { %p6228_p4 = pnand %p6226_p3, %p6223_p2 }
 0x16d   : > { %6231 = shalt.err (!%p6228_p4)
}
 0x16e   : > { %s6232_s6 = scalar_lea.vmem %s708_s30, 4096  ;;  %p6240_p13 = scmp.lt.s32.totalorder %s708_s30, %s708_s30 }
 0x16f   : > { %p6233_p7 = scmp.ne.s32.totalorder %s708_s30, %s6232_s6  ;;  %p6241_p1 = scmp.lt.s32.totalorder %s6232_s6, %s6232_s6 }
 0x171   : > { %p6235_p8 = pnand %p6233_p7, %p6689_p0  ;;  %p6242_p6 = por %p6241_p1, %p6240_p13 }
 0x173   : > { %p6236_p11 = pneg %p6235_p8 }
 0x175   : > { %p6243_p9 = pnand %p6242_p6, %p6236_p11 }
 0x177   : > { %6246 = shalt.err (!%p6243_p9)
}
 0x178   : > { %s7534_s23 = smov 16   ;;  %s7535_s28 = smov 256  }
 0x179   : > { %5538 = dma.hbm_to_vmem [thread:$0]  (!%p6673_p12), %s7448_s12, 4096, %s708_s30, [#allocation15], %s7535_s28, %s7535_s28, %s7534_s23  }
 0x17a   : > { %s6247_s3 = scalar_lea.hbm %s7450_s14, 8192 }
 0x17b   : > { %p6248_p5 = scmp.ne.s32.totalorder %s7450_s14, %s6247_s3  ;;  %p6254_p3 = scmp.lt.u32.totalorder %s6247_s3, %s7450_s14 }
 0x17d   : > { %p6250_p10 = pnand %p6248_p5, %p6689_p0 }
 0x17f   : > { %p6251_p2 = pneg %p6250_p10 }
 0x181   : > { %p6256_p4 = pnand %p6254_p3, %p6251_p2 }
 0x183   : > { %6259 = shalt.err (!%p6256_p4)
}
 0x184   : > { %s6260_s30 = scalar_lea.vmem %s6930_s5, 8192  ;;  %p6268_p13 = scmp.lt.s32.totalorder %s6930_s5, %s6930_s5 }
 0x185   : > { %p6261_p7 = scmp.ne.s32.totalorder %s6930_s5, %s6260_s30  ;;  %p6269_p1 = scmp.lt.s32.totalorder %s6260_s30, %s6260_s30 }
 0x187   : > { %p6263_p8 = pnand %p6261_p7, %p6689_p0  ;;  %p6270_p6 = por %p6269_p1, %p6268_p13 }
 0x189   : > { %p6264_p11 = pneg %p6263_p8 }
 0x18b   : > { %p6271_p9 = pnand %p6270_p6, %p6264_p11 }
 0x18d   : > { %6274 = shalt.err (!%p6271_p9)
}
 0x18e   : > { %s7536_s27 = smov 32   ;;  %s7537_s23 = smov 512  }
 0x18f   : > { %5544 = dma.hbm_to_vmem [thread:$0]  (!%p6673_p12), %s7450_s14, 8192, %s6930_s5, [#allocation18], %s7537_s23, %s7537_s23, %s7536_s27  }
 0x190   : > { %s6481_s4 = smov [#allocation22]   ;;  %s6482_s9 = smov [#allocation25]  }
 0x191   : > { %s755_s24 = sshll.u32 %s6481_s4, 4  ;;  %s780_s3 = sshll.u32 %s6482_s9, 4  ;;  %s756_s24 = int_to_ptr.vmem [resolvable:$true] %s755_s24  ;;  %s6979_s3 = int_to_ptr.vmem [resolvable:$true] %s780_s3 }
 0x192   : > { %s6275_s6 = scalar_lea.hbm %s7452_s16, 4096 }
 0x193   : > { %p6276_p5 = scmp.ne.s32.totalorder %s7452_s16, %s6275_s6  ;;  %p6282_p3 = scmp.lt.u32.totalorder %s6275_s6, %s7452_s16 }
 0x195   : > { %p6278_p10 = pnand %p6276_p5, %p6689_p0 }
 0x197   : > { %p6279_p2 = pneg %p6278_p10 }
 0x199   : > { %p6284_p4 = pnand %p6282_p3, %p6279_p2 }
 0x19b   : > { %6287 = shalt.err (!%p6284_p4)
}
 0x19c   : > { %s6288_s27 = scalar_lea.vmem %s756_s24, 4096  ;;  %p6296_p13 = scmp.lt.s32.totalorder %s756_s24, %s756_s24 }
 0x19d   : > { %p6289_p7 = scmp.ne.s32.totalorder %s756_s24, %s6288_s27  ;;  %p6297_p1 = scmp.lt.s32.totalorder %s6288_s27, %s6288_s27 }
 0x19f   : > { %p6291_p8 = pnand %p6289_p7, %p6689_p0  ;;  %p6298_p6 = por %p6297_p1, %p6296_p13 }
 0x1a1   : > { %p6292_p11 = pneg %p6291_p8 }
 0x1a3   : > { %p6299_p9 = pnand %p6298_p6, %p6292_p11 }
 0x1a5   : > { %6302 = shalt.err (!%p6299_p9)
}
 0x1a6   : > { %s7538_s7 = smov 4   ;;  %s7539_s23 = smov 64  }
 0x1a7   : > { %5550 = dma.hbm_to_vmem [thread:$0]  (!%p6673_p12), %s7452_s16, 4096, %s756_s24, [#allocation21], %s7539_s23, %s7539_s23, %s7538_s7  }
 0x1a8   : > { %s6303_s11 = scalar_lea.hbm %s7454_s18, 64 }
 0x1a9   : > { %p6304_p5 = scmp.ne.s32.totalorder %s7454_s18, %s6303_s11  ;;  %p6310_p3 = scmp.lt.u32.totalorder %s6303_s11, %s7454_s18 }
 0x1ab   : > { %p6306_p10 = pnand %p6304_p5, %p6689_p0 }
 0x1ad   : > { %p6307_p2 = pneg %p6306_p10 }
 0x1af   : > { %p6312_p4 = pnand %p6310_p3, %p6307_p2 }
 0x1b1   : > { %6315 = shalt.err (!%p6312_p4)
}
 0x1b2   : > { %s6316_s24 = scalar_lea.vmem %s6979_s3, 64  ;;  %p6324_p13 = scmp.lt.s32.totalorder %s6979_s3, %s6979_s3 }
 0x1b3   : > { %p6317_p7 = scmp.ne.s32.totalorder %s6979_s3, %s6316_s24  ;;  %p6325_p1 = scmp.lt.s32.totalorder %s6316_s24, %s6316_s24 }
 0x1b5   : > { %p6319_p8 = pnand %p6317_p7, %p6689_p0  ;;  %p6326_p6 = por %p6325_p1, %p6324_p13 }
 0x1b7   : > { %p6320_p11 = pneg %p6319_p8 }
 0x1b9   : > { %p6327_p9 = pnand %p6326_p6, %p6320_p11 }
 0x1bb   : > { %6330 = shalt.err (!%p6327_p9)
}
 0x1bc   : > { %5556 = dma.hbm_to_vmem [thread:$0]  (!%p6673_p12), %s7454_s18, 64, %s6979_s3, [#allocation24]  }
 0x1bd   : > { %s6483_s4 = smov [#allocation28]   ;;  %s6331_s6 = scalar_lea.hbm %s7458_s22, 1024 }
 0x1be   : > { %s807_s9 = sshll.u32 %s6483_s4, 4  ;;  %p6332_p5 = scmp.ne.s32.totalorder %s7458_s22, %s6331_s6  ;;  %s808_s9 = int_to_ptr.vmem [resolvable:$true] %s807_s9 }
 0x1bf   : > { %p6338_p3 = scmp.lt.u32.totalorder %s6331_s6, %s7458_s22 }
 0x1c0   : > { %p6334_p10 = pnand %p6332_p5, %p6689_p0 }
 0x1c2   : > { %p6335_p2 = pneg %p6334_p10 }
 0x1c4   : > { %p6340_p4 = pnand %p6338_p3, %p6335_p2 }
 0x1c6   : > { %6343 = shalt.err (!%p6340_p4)
}
 0x1c7   : > { %s6344_s3 = scalar_lea.vmem %s808_s9, 1024  ;;  %p6352_p13 = scmp.lt.s32.totalorder %s808_s9, %s808_s9 }
 0x1c8   : > { %p6345_p7 = scmp.ne.s32.totalorder %s808_s9, %s6344_s3  ;;  %p6353_p1 = scmp.lt.s32.totalorder %s6344_s3, %s6344_s3 }
 0x1ca   : > { %p6347_p8 = pnand %p6345_p7, %p6689_p0  ;;  %p6354_p6 = por %p6353_p1, %p6352_p13 }
 0x1cc   : > { %p6348_p11 = pneg %p6347_p8 }
 0x1ce   : > { %p6355_p9 = pnand %p6354_p6, %p6348_p11 }
 0x1d0   : > { %6358 = shalt.err (!%p6355_p9)
}
 0x1d1   : > { %5562 = dma.hbm_to_vmem [thread:$0]  (!%p6673_p12), %s7458_s22, 1024, %s808_s9, [#allocation27], %s7539_s23, %s7539_s23, %s7538_s7  }
 0x1d2   : > { %p7540_p5 = scmp.ne.s32.totalorder %s7521_s8, 0 }
 0x1d3   : > { %s7541_s26 = sld [smem:[#allocation44_spill]] (!%p7540_p5) }
 0x1d4   : > { %840 = sbr.rel (%p7540_p5) target bundleno = 4438 (0x1156), region = 116 }
 0x1d9   : > { %p7542_p0 = scmp.eq.s32.totalorder (!%p7540_p5), %s7541_s26, 0 }
 0x1db   : > { %6404 = dma.done.wait (%p7542_p0), [#allocation3], 256   ;;  %p7543_p10 = pmov %p7542_p0 }
 0x1dc   : > { %p7544_p2 = pmov %p7542_p0 }
 0x1dd   : > { %6406 = vsyncadd (%p7543_p10), [#allocation3], 4294967040 }
 0x1de   : > { %6408 = dma.done.wait (%p7544_p2), [#allocation6], 272   ;;  %p7545_p3 = pmov %p7542_p0 }
 0x1df   : > { %p7546_p4 = pmov %p7542_p0 }
 0x1e0   : > { %6410 = vsyncadd (%p7545_p3), [#allocation6], 4294967024 }
 0x1e1   : > { %6412 = dma.done.wait (%p7546_p4), [#allocation9], 4112   ;;  %p7547_p12 = pmov %p7542_p0 }
 0x1e2   : > { %p7548_p7 = pmov %p7542_p0 }
 0x1e3   : > { %6414 = vsyncadd (%p7547_p12), [#allocation9], 4294963184 }
 0x1e4   : > { %6416 = dma.done.wait (%p7548_p7), [#allocation12], 12288   ;;  %p7549_p8 = pmov %p7542_p0 }
 0x1e5   : > { %p7550_p11 = pmov %p7542_p0 }
 0x1e6   : > { %6418 = vsyncadd (%p7549_p8), [#allocation12], 4294955008 }
 0x1e7   : > { %6420 = dma.done.wait (%p7550_p11), [#allocation15], 4112   ;;  %p7551_p13 = pmov %p7542_p0 }
 0x1e8   : > { %p7552_p1 = pmov %p7542_p0 }
 0x1e9   : > { %6422 = vsyncadd (%p7551_p13), [#allocation15], 4294963184 }
 0x1ea   : > { %6424 = dma.done.wait (%p7552_p1), [#allocation18], 8256   ;;  %p7553_p6 = pmov %p7542_p0 }
 0x1eb   : > { %p7554_p9 = pmov %p7542_p0 }
 0x1ec   : > { %6426 = vsyncadd (%p7553_p6), [#allocation18], 4294959040 }
 0x1ed   : > { %6428 = dma.done.wait (%p7554_p9), [#allocation21], 4224   ;;  %p7555_p5 = pmov %p7542_p0 }
 0x1ef   : > { %6430 = vsyncadd (%p7555_p5), [#allocation21], 4294963072 }
 0x1f0   : > { %6432 = dma.done.wait (%p7542_p0), [#allocation24], 80   ;;  %p7556_p10 = pmov %p7542_p0 }
 0x1f1   : > { %p7557_p2 = pmov %p7542_p0 }
 0x1f2   : > { %6434 = vsyncadd (%p7556_p10), [#allocation24], 4294967216 }
 0x1f3   : > { %6436 = dma.done.wait (%p7557_p2), [#allocation27], 1088   ;;  %p7558_p3 = pmov %p7542_p0 }
 0x1f4   : > { %v6484_v0 = vmov 0   ;;  %v5664_v1 = vld [vmem:[#allocation10 + $0x4] ss:$16 sps:$4 sm:$0xff]   ;;  %v5666_v2 = vld [vmem:[#allocation10] ss:$16 sps:$4 sm:$0xff]   ;;  %p973_p4 = scmp.lt.s32.totalorder %s7541_s26, 1 }
 0x1f5   : > { %6438 = vsyncadd (%p7558_p3), [#allocation27], 4294966208  ;;  %1243 = vmatprep.mubr.bf16.mxu0 %v6484_v0  ;;  %1284 = vmatprep.mubr.bf16.mxu1 %v6484_v0  ;;  %v5667_v3 = vld [vmem:[#allocation10 + $0x24] ss:$16 sps:$4 sm:$0xff]   ;;  %v5669_v4 = vld [vmem:[#allocation10 + $0x20] ss:$16 sps:$4 sm:$0xff]  }
 0x1f6   : > { %5663 = vset.pattern.permute.xlu0 %v6484_v0  ;;  %1211 = vmatprep.subr.bf16.mxu0 %v5664_v1  ;;  %v5670_v5 = vld [vmem:[#allocation10 + $0x44] ss:$16 sps:$4 sm:$0xff]   ;;  %v5676_v6 = vld [vmem:[#allocation10 + $0xc] ss:$16 sps:$4 sm:$0xff]   ;;  %v5678_v7 = vld [vmem:[#allocation10 + $0x8] ss:$16 sps:$4 sm:$0xff]  }
 0x1f7   : > { %1212 = vmatpush1.bf16.msra.mxu0 %v5666_v2  ;;  %v5672_v8 = vld [vmem:[#allocation10 + $0x40] ss:$16 sps:$4 sm:$0xff]   ;;  %v5673_v9 = vld [vmem:[#allocation10 + $0x64] ss:$16 sps:$4 sm:$0xff]   ;;  %1252 = vmatprep.subr.bf16.mxu1 %v5676_v6  ;;  %v5682_v10 = vld [vmem:[#allocation10 + $0x2c] ss:$16 sps:$4 sm:$0xff]  }
 0x1f8   : > { %1213 = vmatprep.subr.bf16.mxu0 %v5667_v3  ;;  %1253 = vmatpush1.bf16.msra.mxu1 %v5678_v7  ;;  %v5684_v11 = vld [vmem:[#allocation10 + $0x28] ss:$16 sps:$4 sm:$0xff]   ;;  %v5675_v12 = vld [vmem:[#allocation10 + $0x60] ss:$16 sps:$4 sm:$0xff]   ;;  %v5688_v13 = vld [vmem:[#allocation10 + $0x4c] ss:$16 sps:$4 sm:$0xff]  }
 0x1f9   : > { %1254 = vmatprep.subr.bf16.mxu1 %v5682_v10  ;;  %v5679_v14 = vld [vmem:[#allocation10 + $0x84] ss:$16 sps:$4 sm:$0xff]   ;;  %v5690_v15 = vld [vmem:[#allocation10 + $0x48] ss:$16 sps:$4 sm:$0xff]   ;;  %v5694_v16 = vld [vmem:[#allocation10 + $0x6c] ss:$16 sps:$4 sm:$0xff]  }
 0x1fa   : > { %v5681_v17 = vld [vmem:[#allocation10 + $0x80] ss:$16 sps:$4 sm:$0xff]   ;;  %v5685_v18 = vld [vmem:[#allocation10 + $0xa4] ss:$16 sps:$4 sm:$0xff]   ;;  %v5696_v19 = vld [vmem:[#allocation10 + $0x68] ss:$16 sps:$4 sm:$0xff]  }
 0x1fb   : > { %1214 = vmatpush1.bf16.msra.mxu0 %v5669_v4  ;;  %s7089_s8 = scalar_select %p973_p4, %s7541_s26, 1  ;;  %v5700_v20 = vld [vmem:[#allocation10 + $0x8c] ss:$16 sps:$4 sm:$0xff]   ;;  %v5687_v21 = vld [vmem:[#allocation10 + $0xa0] ss:$16 sps:$4 sm:$0xff]   ;;  %vm6486_vm0 = vmmov 0  }
 0x1fc   : > { %1215 = vmatprep.subr.bf16.mxu0 %v5670_v5  ;;  %1255 = vmatpush1.bf16.msra.mxu1 %v5684_v11  ;;  %v5691_v22 = vld [vmem:[#allocation10 + $0xc4] ss:$16 sps:$4 sm:$0xff]   ;;  %v5702_v23 = vld [vmem:[#allocation10 + $0x88] ss:$16 sps:$4 sm:$0xff]   ;;  %v5703_v24 = vld [vmem:[#allocation10 + $0xac] ss:$16 sps:$4 sm:$0xff]  }
 0x1fd   : > { %1256 = vmatprep.subr.bf16.mxu1 %v5688_v13  ;;  %s4874_s2 = sshll.u32 %s7089_s8, 3  ;;  %v5693_v25 = vld [vmem:[#allocation10 + $0xc0] ss:$16 sps:$4 sm:$0xff]   ;;  %v5697_v26 = vld [vmem:[#allocation10 + $0xe4] ss:$16 sps:$4 sm:$0xff]   ;;  %s7559_s4 = sld [smem:[#allocation49_spill]] }
 0x1fe   : > { %v1293_v27 = vld [vmem:[#allocation11] sm:$0xff]  ;;  %v5705_v29 = vld [vmem:[#allocation10 + $0xa8] ss:$16 sps:$4 sm:$0xff]   ;;  %v5706_v30 = vld [vmem:[#allocation10 + $0xcc] ss:$16 sps:$4 sm:$0xff]   ;;  %s7560_s6 = sld [smem:[#allocation52_spill]] }
 0x1ff   : > { %1216 = vmatpush1.bf16.msra.mxu0 %v5672_v8  ;;  %v1297_v28 = vld [vmem:[#allocation11 + $0x20] sm:$0xff]  ;;  %v5708_v36 = vld [vmem:[#allocation10 + $0xc8] ss:$16 sps:$4 sm:$0xff]   ;;  %v5709_v38 = vld [vmem:[#allocation10 + $0xec] ss:$16 sps:$4 sm:$0xff]   ;;  %s7561_s24 = sld [smem:[#allocation58_spill]] }
 0x200   : > { %1217 = vmatprep.subr.bf16.mxu0 %v5673_v9  ;;  %1257 = vmatpush1.bf16.msra.mxu1 %v5690_v15  ;;  %v5699_v31 = vld [vmem:[#allocation10 + $0xe0] ss:$16 sps:$4 sm:$0xff]   ;;  %v4910_v33 = vcombine.high %v1293_v27, %v1297_v28  ;;  %v4909_v39 = vcombine.low %v1293_v27, %v1297_v28  ;;  %v1294_v40 = vld [vmem:[#allocation11 + $0x8] sm:$0xff]  ;;  %s7562_s0 = sld [smem:[#allocation56_spill]]  ;;  %vm1954_vm2 = vcmask 130048   ;;  %s7563_s7 = sld [smem:[#allocation60_spill]] }
 0x201   : > { %1258 = vmatprep.subr.bf16.mxu1 %v5694_v16  ;;  %v1301_v34 = vld [vmem:[#allocation11 + $0x40] sm:$0xff]  ;;  %v1298_v41 = vld [vmem:[#allocation11 + $0x28] sm:$0xff]  ;;  %s7565_s11 = sld [smem:[#allocation62_spill]]  ;;  %s7567_s5 = sld [smem:[#allocation47_spill]] }
 0x202   : > { %v1305_v35 = vld [vmem:[#allocation11 + $0x60] sm:$0xff]  ;;  %v5711_v45 = vld [vmem:[#allocation10 + $0xe8] ss:$16 sps:$4 sm:$0xff]   ;;  %v4912_v48 = vcombine.high %v1294_v40, %v1298_v41  ;;  %v4911_v53 = vcombine.low %v1294_v40, %v1298_v41  ;;  %v1299_v40 = vld [vmem:[#allocation11 + $0x30] sm:$0xff] }
 0x203   : > { %1218 = vmatpush1.bf16.msra.mxu0 %v5675_v12  ;;  %s7097_s9 = scalar_lea.vmem %s7559_s4, %s4874_s2  ;;  %v4918_v42 = vcombine.high %v1301_v34, %v1305_v35  ;;  %v1309_v43 = vld [vmem:[#allocation11 + $0x80] sm:$0xff]  ;;  %v1302_v46 = vld [vmem:[#allocation11 + $0x48] sm:$0xff]  ;;  %v4917_v49 = vcombine.low %v1301_v34, %v1305_v35  ;;  %s7564_s4 = sld [smem:[#allocation61_spill]] }
 0x204   : > { %1219 = vmatprep.subr.bf16.mxu0 %v5679_v14  ;;  %1259 = vmatpush1.bf16.msra.mxu1 %v5696_v19  ;;  %v989_v32 = vld [vmem:[%s7097_s9] sm:$0xff]  ;;  %v1306_v47 = vld [vmem:[#allocation11 + $0x68] sm:$0xff]  ;;  %s980_s30 = scalar_lea.vmem %s7560_s6, %s4874_s2  ;;  %s7566_s6 = sld [smem:[#allocation41_spill]] }
 0x205   : > { %1260 = vmatprep.subr.bf16.mxu1 %v5700_v20  ;;  %v990_v37 = vpack.c.bf16 %v989_v32, %v989_v32  ;;  %v1313_v44 = vld [vmem:[#allocation11 + $0xa0] sm:$0xff]  ;;  %v1310_v54 = vld [vmem:[#allocation11 + $0x88] sm:$0xff]  ;;  %v4920_v56 = vcombine.high %v1302_v46, %v1306_v47  ;;  %v4919_v61 = vcombine.low %v1302_v46, %v1306_v47  ;;  %v1311_v47 = vld [vmem:[#allocation11 + $0x90] sm:$0xff]  ;;  %s7568_s2 = sld [smem:[#allocation63_spill]] }
 0x206   : > { %v1317_v50 = vld [vmem:[#allocation11 + $0xc0] sm:$0xff]  ;;  %v4926_v52 = vcombine.high %v1309_v43, %v1313_v44  ;;  %v1314_v55 = vld [vmem:[#allocation11 + $0xa8] sm:$0xff]  ;;  %v4925_v57 = vcombine.low %v1309_v43, %v1313_v44  ;;  %v1303_v43 = vld [vmem:[#allocation11 + $0x50] sm:$0xff] }
 0x207   : > { %1220 = vmatpush1.bf16.msra.mxu0 %v5681_v17  ;;  %v1321_v51 = vld [vmem:[#allocation11 + $0xe0] sm:$0xff]  ;;  %v1318_v62 = vld [vmem:[#allocation11 + $0xc8] sm:$0xff]  ;;  %v4928_v1 = vcombine.high %v1310_v54, %v1314_v55  ;;  %v4927_v6 = vcombine.low %v1310_v54, %v1314_v55  ;;  %v1307_v44 = vld [vmem:[#allocation11 + $0x70] sm:$0xff]  ;;  %p7569_p7 = scmp.ne.s32.totalorder %s7567_s5, 0 }
 0x208   : > { %1221 = vmatprep.subr.bf16.mxu0 %v5685_v18  ;;  %1261 = vmatpush1.bf16.msra.mxu1 %v5702_v23  ;;  %v1325_v58 = vld [vmem:[#allocation11 + $0x100] sm:$0xff]  ;;  %v4934_v60 = vcombine.high %v1317_v50, %v1321_v51  ;;  %v1322_v63 = vld [vmem:[#allocation11 + $0xe8] sm:$0xff]  ;;  %v4933_v2 = vcombine.low %v1317_v50, %v1321_v51  ;;  %v4921_v46 = vcombine.low %v1303_v43, %v1307_v44  ;;  %v1323_v51 = vld [vmem:[#allocation11 + $0xf0] sm:$0xff] }
 0x209   : > { %1262 = vmatprep.subr.bf16.mxu1 %v5703_v24  ;;  %v1329_v59 = vld [vmem:[#allocation11 + $0x120] sm:$0xff]  ;;  %v1326_v7 = vld [vmem:[#allocation11 + $0x108] sm:$0xff]  ;;  %v4936_v9 = vcombine.high %v1318_v62, %v1322_v63  ;;  %v4935_v14 = vcombine.low %v1318_v62, %v1322_v63  ;;  %v1327_v55 = vld [vmem:[#allocation11 + $0x110] sm:$0xff] }
 0x20a   : > { %v1333_v3 = vld [vmem:[#allocation11 + $0x140] sm:$0xff]  ;;  %v4942_v5 = vcombine.high %v1325_v58, %v1329_v59  ;;  %v1330_v8 = vld [vmem:[#allocation11 + $0x128] sm:$0xff]  ;;  %v4941_v10 = vcombine.low %v1325_v58, %v1329_v59  ;;  %v1335_v58 = vld [vmem:[#allocation11 + $0x150] sm:$0xff] }
 0x20b   : > { %1222 = vmatpush1.bf16.msra.mxu0 %v5687_v21  ;;  %v1337_v4 = vld [vmem:[#allocation11 + $0x160] sm:$0xff]  ;;  %v1334_v15 = vld [vmem:[#allocation11 + $0x148] sm:$0xff]  ;;  %v4944_v17 = vcombine.high %v1326_v7, %v1330_v8  ;;  %v1339_v59 = vld [vmem:[#allocation11 + $0x170] sm:$0xff] }
 0x20c   : > { %1223 = vmatprep.subr.bf16.mxu0 %v5691_v22  ;;  %1263 = vmatpush1.bf16.msra.mxu1 %v5705_v29  ;;  %v1341_v11 = vld [vmem:[#allocation11 + $0x180] sm:$0xff]  ;;  %v4950_v13 = vcombine.high %v1333_v3, %v1337_v4  ;;  %v1338_v16 = vld [vmem:[#allocation11 + $0x168] sm:$0xff]  ;;  %v4949_v18 = vcombine.low %v1333_v3, %v1337_v4  ;;  %v4943_v22 = vcombine.low %v1326_v7, %v1330_v8  ;;  %v1343_v62 = vld [vmem:[#allocation11 + $0x190] sm:$0xff]  ;;  %v6485_v8 = vmov 0.0  }
 0x20d   : > { %1264 = vmatprep.subr.bf16.mxu1 %v5706_v30  ;;  %v1345_v12 = vld [vmem:[#allocation11 + $0x1a0] sm:$0xff]  ;;  %v1342_v23 = vld [vmem:[#allocation11 + $0x188] sm:$0xff]  ;;  %v4951_v30 = vcombine.low %v1334_v15, %v1338_v16  ;;  %v1347_v63 = vld [vmem:[#allocation11 + $0x1b0] sm:$0xff] }
 0x20e   : > { %v1349_v19 = vld [vmem:[#allocation11 + $0x1c0] sm:$0xff]  ;;  %v4958_v21 = vcombine.high %v1341_v11, %v1345_v12  ;;  %v1346_v24 = vld [vmem:[#allocation11 + $0x1a8] sm:$0xff]  ;;  %v1351_v3 = vld [vmem:[#allocation11 + $0x1d0] sm:$0xff] }
 0x20f   : > { %1224 = vmatpush1.bf16.msra.mxu0 %v5693_v25  ;;  %v1353_v20 = vld [vmem:[#allocation11 + $0x1e0] sm:$0xff]  ;;  %v4952_v25 = vcombine.high %v1334_v15, %v1338_v16  ;;  %v1354_v32 = vld [vmem:[#allocation11 + $0x1e8] sm:$0xff]  ;;  %v4959_v35 = vcombine.low %v1342_v23, %v1346_v24  ;;  %v1355_v4 = vld [vmem:[#allocation11 + $0x1f0] sm:$0xff] }
 0x210   : > { %1225 = vmatprep.subr.bf16.mxu0 %v5697_v26  ;;  %1265 = vmatpush1.bf16.msra.mxu1 %v5708_v36  ;;  %v4957_v26 = vcombine.low %v1341_v11, %v1345_v12  ;;  %v4966_v27 = vcombine.high %v1349_v19, %v1353_v20  ;;  %v991_v28 = vld [vmem:[#allocation2] sm:$0xff]  ;;  %v992_v29 = vld [vmem:[#allocation2 + $0x8] sm:$0xff]  ;;  %v4965_v34 = vcombine.low %v1349_v19, %v1353_v20 }
 0x211   : > { %1266 = vmatprep.subr.bf16.mxu1 %v5709_v38  ;;  %v7102_v36 = vpack.c.bf16 %v992_v29, %v991_v28  ;;  %v4969_v7 = vcombine.low %v1351_v3, %v1355_v4  ;;  %v1304_v11 = vld [vmem:[#allocation11 + $0x58] sm:$0xff] }
 0x212   : > { %v1891_v12 = vld [vmem:[%s980_s30] sm:$0xff]  ;;  %s970_s30 = sand.u32 1, %s7566_s6  }
 0x213   : > { %1226 = vmatpush1.bf16.msra.mxu0 %v5699_v31  ;;  %v1350_v31 = vld [vmem:[#allocation11 + $0x1c8] sm:$0xff]  ;;  %v1308_v15 = vld [vmem:[#allocation11 + $0x78] sm:$0xff]  ;;  %1894 = vperm.xlu0 %5663, %v1891_v12   ;;  %s4873_s28 = sshll.u32 %s970_s30, 3 }
 0x214   : > { %1719 = vmatprep.subr.bf16.mxu0 %v4910_v33  ;;  %1267 = vmatpush1.bf16.msra.mxu1 %v5711_v45  ;;  %v4960_v33 = vcombine.high %v1342_v23, %v1346_v24  ;;  %v4967_v38 = vcombine.low %v1350_v31, %v1354_v32  ;;  %v4922_v45 = vcombine.high %v1303_v43, %v1307_v44  ;;  %v1336_v29 = vld [vmem:[#allocation11 + $0x158] sm:$0xff]  ;;  %s972_s3 = scalar_lea.vmem [#allocation29], %s4873_s28 }
 0x215   : > { %1762 = vmatprep.subr.bf16.mxu1 %v4912_v48  ;;  %v1315_v48 = vld [vmem:[#allocation11 + $0xb0] sm:$0xff]  ;;  %v4924_v16 = vcombine.high %v1304_v11, %v1308_v15  ;;  %v4923_v19 = vcombine.low %v1304_v11, %v1308_v15  ;;  %s4600_s27 = sshll.u32 %s972_s3, 4  ;;  %s7396_s27 = int_to_ptr.vmem [resolvable:$true] %s4600_s27 }
 0x216   : > { %1244 = vmatmul.mubr.bf16.vlgmr.msra.gmra.mrb[0].mxu0 %v990_v37  ;;  %v4930_v50 = vcombine.high %v1311_v47, %v1315_v48 }
 0x217   : > { %1720 = vmatpush1.bf16.msra.mxu0 %v4909_v39  ;;  %1751 = vmatprep.mubr.bf16.mxu0 %v6484_v0  ;;  %v1295_v39 = vld [vmem:[#allocation11 + $0x10] sm:$0xff] }
 0x218   : > { %1721 = vmatprep.subr.bf16.mxu0 %v4918_v42  ;;  %1285 = vmatmul.mubr.bf16.vlgmr.msra.gmra.mrb[0].mxu1 %v990_v37  ;;  %v4968_v37 = vcombine.high %v1350_v31, %v1354_v32  ;;  %v4914_v41 = vcombine.high %v1295_v39, %v1299_v40  ;;  %v4913_v42 = vcombine.low %v1295_v39, %v1299_v40  ;;  %v1352_v39 = vld [vmem:[#allocation11 + $0x1d8] sm:$0xff] }
 0x219   : > { %1763 = vmatpush1.bf16.msra.mxu1 %v4911_v53  ;;  %1794 = vmatprep.mubr.bf16.mxu1 %v6484_v0  ;;  %v1356_v40 = vld [vmem:[#allocation11 + $0x1f8] sm:$0xff] }
 0x21a   : > { %1764 = vmatprep.subr.bf16.mxu1 %v4920_v56  ;;  %v1331_v56 = vld [vmem:[#allocation11 + $0x130] sm:$0xff] }
 0x21b   : > { %1722 = vmatpush1.bf16.msra.mxu0 %v4917_v49  ;;  %v1319_v49 = vld [vmem:[#allocation11 + $0xd0] sm:$0xff] }
 0x21c   : > { %1723 = vmatprep.subr.bf16.mxu0 %v4926_v52  ;;  %v4929_v52 = vcombine.low %v1311_v47, %v1315_v48  ;;  %v4938_v53 = vcombine.high %v1319_v49, %v1323_v51  ;;  %v4937_v54 = vcombine.low %v1319_v49, %v1323_v51  ;;  %v982_v51 = vlaneseq }
 0x21d   : > { %1765 = vmatpush1.bf16.msra.mxu1 %v4919_v61  ;;  %v4954_v61 = vcombine.high %v1335_v58, %v1339_v59 }
 0x21e   : > { %1766 = vmatprep.subr.bf16.mxu1 %v4928_v1  ;;  %v4953_v1 = vcombine.low %v1335_v58, %v1339_v59  ;;  %v1029_v58 = vld [vmem:[%s7562_s0] sm:$0xf] }
 0x21f   : > { %1724 = vmatpush1.bf16.msra.mxu0 %v4925_v57  ;;  %v4946_v57 = vcombine.high %v1327_v55, %v1331_v56 }
 0x220   : > { %1725 = vmatprep.subr.bf16.mxu0 %v4934_v60  ;;  %v4945_v60 = vcombine.low %v1327_v55, %v1331_v56 }
 0x221   : > { %1767 = vmatpush1.bf16.msra.mxu1 %v4927_v6  ;;  %v4970_v6 = vcombine.high %v1351_v3, %v1355_v4 }
 0x222   : > { %1768 = vmatprep.subr.bf16.mxu1 %v4936_v9  ;;  %v1296_v9 = vld [vmem:[#allocation11 + $0x18] sm:$0xff] }
 0x223   : > { %1726 = vmatpush1.bf16.msra.mxu0 %v4933_v2  ;;  %v4962_v2 = vcombine.high %v1343_v62, %v1347_v63 }
 0x224   : > { %1727 = vmatprep.subr.bf16.mxu0 %v4942_v5  ;;  %v4961_v5 = vcombine.low %v1343_v62, %v1347_v63 }
 0x225   : > { %1769 = vmatpush1.bf16.msra.mxu1 %v4935_v14 }
 0x226   : > { %1770 = vmatprep.subr.bf16.mxu1 %v4944_v17  ;;  %v1312_v17 = vld [vmem:[#allocation11 + $0x98] sm:$0xff] }
 0x227   : > { %1728 = vmatpush1.bf16.msra.mxu0 %v4941_v10  ;;  %v1300_v10 = vld [vmem:[#allocation11 + $0x38] sm:$0xff] }
 0x228   : > { %1729 = vmatprep.subr.bf16.mxu0 %v4950_v13  ;;  %v4915_v13 = vcombine.low %v1296_v9, %v1300_v10  ;;  %v4916_v14 = vcombine.high %v1296_v9, %v1300_v10 }
 0x229   : > { %1771 = vmatpush1.bf16.msra.mxu1 %v4943_v22  ;;  %v1324_v22 = vld [vmem:[#allocation11 + $0xf8] sm:$0xff] }
 0x22a   : > { %1772 = vmatprep.subr.bf16.mxu1 %v4952_v25  ;;  %v1328_v25 = vld [vmem:[#allocation11 + $0x118] sm:$0xff] }
 0x22b   : > { %1730 = vmatpush1.bf16.msra.mxu0 %v4949_v18  ;;  %v1316_v18 = vld [vmem:[#allocation11 + $0xb8] sm:$0xff] }
 0x22c   : > { %1731 = vmatprep.subr.bf16.mxu0 %v4958_v21  ;;  %v4932_v20 = vcombine.high %v1312_v17, %v1316_v18  ;;  %v1320_v21 = vld [vmem:[#allocation11 + $0xd8] sm:$0xff]  ;;  %v4931_v23 = vcombine.low %v1312_v17, %v1316_v18 }
 0x22d   : > { %1773 = vmatpush1.bf16.msra.mxu1 %v4951_v30  ;;  %v4940_v24 = vcombine.high %v1320_v21, %v1324_v22  ;;  %v1340_v30 = vld [vmem:[#allocation11 + $0x178] sm:$0xff] }
 0x22e   : > { %1774 = vmatprep.subr.bf16.mxu1 %v4960_v33  ;;  %v4956_v32 = vcombine.high %v1336_v29, %v1340_v30  ;;  %v1344_v33 = vld [vmem:[#allocation11 + $0x198] sm:$0xff] }
 0x22f   : > { %1732 = vmatpush1.bf16.msra.mxu0 %v4957_v26  ;;  %v1332_v26 = vld [vmem:[#allocation11 + $0x138] sm:$0xff] }
 0x230   : > { %1733 = vmatprep.subr.bf16.mxu0 %v4966_v27  ;;  %v4939_v27 = vcombine.low %v1320_v21, %v1324_v22  ;;  %v4948_v28 = vcombine.high %v1328_v25, %v1332_v26  ;;  %v4947_v31 = vcombine.low %v1328_v25, %v1332_v26 }
 0x231   : > { %1775 = vmatpush1.bf16.msra.mxu1 %v4959_v35  ;;  %v4955_v35 = vcombine.low %v1336_v29, %v1340_v30 }
 0x232   : > { %1776 = vmatprep.subr.bf16.mxu1 %v4968_v37 }
 0x233   : > { %1734 = vmatpush1.bf16.msra.mxu0 %v4965_v34  ;;  %v1348_v34 = vld [vmem:[#allocation11 + $0x1b8] sm:$0xff] }
 0x234   : > { %1805 = vmatprep.subr.bf16.mxu0 %v4914_v41  ;;  %v4964_v37 = vcombine.high %v1344_v33, %v1348_v34  ;;  %v4971_v41 = vcombine.low %v1352_v39, %v1356_v40 }
 0x235   : > { %1777 = vmatpush1.bf16.msra.mxu1 %v4967_v38  ;;  %v4963_v38 = vcombine.low %v1344_v33, %v1348_v34 }
 0x236   : > { %1752 = vmatmul.mubr.bf16.vlgmr.msra.gmra.mrb[4].mxu0 %v7102_v36  ;;  %1848 = vmatprep.subr.bf16.mxu1 %v4916_v14 }
 0x237   : > { %1837 = vmatprep.mubr.bf16.mxu0 %v6484_v0  ;;  %1806 = vmatpush1.bf16.msra.mxu0 %v4913_v42  ;;  %v4972_v42 = vcombine.high %v1352_v39, %v1356_v40 }
 0x238   : > { %1795 = vmatmul.mubr.bf16.vlgmr.msra.gmra.mrb[4].mxu1 %v7102_v36  ;;  %1807 = vmatprep.subr.bf16.mxu0 %v4922_v45 }
 0x239   : > { %1880 = vmatprep.mubr.bf16.mxu1 %v6484_v0  ;;  %1849 = vmatpush1.bf16.msra.mxu1 %v4915_v13 }
 0x23a   : > { %1850 = vmatprep.subr.bf16.mxu1 %v4924_v16 }
 0x23b   : > { %1808 = vmatpush1.bf16.msra.mxu0 %v4921_v46 }
 0x23c   : > { %1809 = vmatprep.subr.bf16.mxu0 %v4930_v50 }
 0x23d   : > { %1851 = vmatpush1.bf16.msra.mxu1 %v4923_v19 }
 0x23e   : > { %1852 = vmatprep.subr.bf16.mxu1 %v4932_v20 }
 0x23f   : > { %1810 = vmatpush1.bf16.msra.mxu0 %v4929_v52  ;;  %v7122_v52 = vshrl.u32 %v982_v51, 7 }
 0x240   : > { %1811 = vmatprep.subr.bf16.mxu0 %v4938_v53  ;;  %v7127_v53 = vld [vmem:[%s7561_s24] sm:$0xff]  ;;  %s5164_s24 = sshll.u32 %s7541_s26, 7  ;;  %s6488_s26 = smov [#allocation29]  }
 0x241   : > { %1853 = vmatpush1.bf16.msra.mxu1 %v4931_v23  ;;  %v7143_v59 = vsub.s32 2, %v7122_v52  ;;  %v1381_v33 = vsub.s32 5, %v7122_v52  ;;  %s7394_s23 = scalar_lea.hbm %s7568_s2, %s5164_s24  ;;  %s6363_s20 = sshll.u32 %s6488_s26, 4  ;;  %s6364_s20 = int_to_ptr.vmem [resolvable:$false] %s6363_s20 }
 0x242   : > { %1854 = vmatprep.subr.bf16.mxu1 %v4940_v24  ;;  %p6366_p13 = scmp.lt.s32.totalorder %s7396_s27, %s6364_s20 }
 0x243   : > { %1812 = vmatpush1.bf16.msra.mxu0 %v4937_v54  ;;  %v7133_v54 = vsub.s32 1, %v7122_v52  ;;  %v1370_v3 = vrot.slane %v7127_v53, %v7143_v59  ;;  %v1042_v26 = vrot.slane %v1029_v58, %v7143_v59 }
 0x244   : > { %1813 = vmatprep.subr.bf16.mxu0 %v4946_v57 }
 0x245   : > { %1855 = vmatpush1.bf16.msra.mxu1 %v4939_v27  ;;  %v1366_v57 = vrot.slane %v7127_v53, %v7133_v54  ;;  %v1038_v22 = vrot.slane %v1029_v58, %v7133_v54 }
 0x246   : > { %1856 = vmatprep.subr.bf16.mxu1 %v4948_v28 }
 0x247   : > { %1814 = vmatpush1.bf16.msra.mxu0 %v4945_v60 }
 0x248   : > { %1815 = vmatprep.subr.bf16.mxu0 %v4954_v61  ;;  %v7146_v61 = vsub.s32 3, %v7122_v52 }
 0x249   : > { %1857 = vmatpush1.bf16.msra.mxu1 %v4947_v31 }
 0x24a   : > { %1858 = vmatprep.subr.bf16.mxu1 %v4956_v32  ;;  %v1046_v29 = vrot.slane %v1029_v58, %v7146_v61  ;;  %v1377_v32 = vsub.s32 4, %v7122_v52 }
 0x24b   : > { %1816 = vmatpush1.bf16.msra.mxu0 %v4953_v1 }
 0x24c   : > { %1817 = vmatprep.subr.bf16.mxu0 %v4962_v2  ;;  %v1378_v34 = vrot.slane %v7127_v53, %v1377_v32 }
 0x24d   : > { %1859 = vmatpush1.bf16.msra.mxu1 %v4955_v35  ;;  %v1382_v35 = vrot.slane %v7127_v53, %v1381_v33 }
 0x24e   : > { %1860 = vmatprep.subr.bf16.mxu1 %v4964_v37 }
 0x24f   : > { %1818 = vmatpush1.bf16.msra.mxu0 %v4961_v5 }
 0x250   : > { %1819 = vmatprep.subr.bf16.mxu0 %v4970_v6 }
 0x251   : > { %1861 = vmatpush1.bf16.msra.mxu1 %v4963_v38 }
 0x252   : > { %1862 = vmatprep.subr.bf16.mxu1 %v4972_v42 }
 0x253   : > { %1820 = vmatpush1.bf16.msra.mxu0 %v4969_v7  ;;  %v1374_v7 = vrot.slane %v7127_v53, %v7146_v61 }
 0x254   : > { %5305 = vmatprep.subr.bf16.mxu0 %v6485_v8 }
 0x255   : > { %1863 = vmatpush1.bf16.msra.mxu1 %v4971_v41 }
 0x256   : > { %1838 = vmatmul.mubr.bf16.vlgmr.msra.gmra.mrb[8].mxu0 %v7102_v36  ;;  %5311 = vmatprep.subr.bf16.mxu1 %v6485_v8 }
 0x257   : > { %5307 = vmatprep.mubr.msk.bf16.mxu0 %vm6486_vm0, %v6485_v8 }
 0x258   : > { %1881 = vmatmul.mubr.bf16.vlgmr.msra.gmra.mrb[8].mxu1 %v7102_v36  ;;  %v7130_v36 = vsub.s32 0, %v7122_v52 }
 0x259   : > { %5313 = vmatprep.mubr.msk.bf16.mxu1 %vm6486_vm0, %v6485_v8 }
 0x25a   : > { %v1362_v55 = vrot.slane %v7127_v53, %v7130_v36  ;;  %v1034_v4 = vrot.slane %v1029_v58, %v7130_v36 }
 0x2e9   : > { %v1245_v43 = vpop.f32.mrb[0].mxu0 }
 0x2ea   : > { %v1247_v44 = vpop.f32.mrb[1].mxu0  ;;  %v1246_v14 = vadd.f32 %v1245_v43, %v1034_v4 }
 0x2eb   : > { %v1249_v45 = vpop.f32.mrb[2].mxu0  ;;  %v1286_v47 = vpop.f32.mrb[0].mxu1  ;;  %v1248_v24 = vadd.f32 %v1247_v44, %v1038_v22 }
 0x2ec   : > { %v1250_v46 = vpop.f32.mrb[3].mxu0  ;;  %v1288_v48 = vpop.f32.mrb[1].mxu1  ;;  %v1902_v21 = vpack.c.bf16 %v1246_v14, %v1246_v14  ;;  %v1287_v27 = vadd.f32 %v1286_v47, %v1042_v26  ;;  %v4973_v47 = vld [vmem:[#allocation7] ss:$0 sm:$0xff] }
 0x2ed   : > { %v1290_v49 = vpop.f32.mrb[2].mxu1  ;;  %v1903_v25 = vpack.c.bf16 %v1248_v24, %v1248_v24  ;;  %v1289_v30 = vadd.f32 %v1288_v48, %v1046_v29  ;;  %v7180_v48 = vpop.permute.xlu0 %1894 }
 0x2ee   : > { %v1291_v50 = vpop.f32.mrb[3].mxu1  ;;  %v1904_v28 = vpack.c.bf16 %v1287_v27, %v1287_v27  ;;  %vm1900_vm1 = vcmp.eq.s32.totalorder %v7180_v48, %v4973_v47  ;;  %v6487_v49 = vmov -1e+30   ;;  %v1389_v47 = vsub.s32 7, %v7122_v52 }
 0x2ef   : > { %v1905_v31 = vpack.c.bf16 %v1289_v30, %v1289_v30  ;;  %v1901_v50 = vsel %vm1900_vm1, 0.0, %v6487_v49 }
 0x309   : > { %v1753_v56 = vpop.f32.mrb[4].mxu0 }
 0x30a   : > { %v1755_v60 = vpop.f32.mrb[5].mxu0  ;;  %v1754_v63 = vadd.f32 %v1753_v56, %v1362_v55 }
 0x30b   : > { %v1757_v62 = vpop.f32.mrb[6].mxu0  ;;  %v1756_v5 = vadd.f32 %v1755_v60, %v1366_v57  ;;  %v1796_v11 = vpop.f32.mrb[4].mxu1 }
 0x30c   : > { %v1758_v1 = vadd.f32 %v1757_v62, %v1362_v55  ;;  %v1759_v2 = vpop.f32.mrb[7].mxu0  ;;  %v1797_v12 = vadd.f32 %v1796_v11, %v1370_v3  ;;  %v1798_v13 = vpop.f32.mrb[5].mxu1 }
 0x30d   : > { %v1760_v6 = vadd.f32 %v1759_v2, %v1366_v57  ;;  %v1799_v15 = vadd.f32 %v1798_v13, %v1374_v7  ;;  %v1800_v16 = vpop.f32.mrb[6].mxu1 }
 0x30e   : > { %v1906_v9 = vpack.c.bf16 %v1758_v1, %v1754_v63  ;;  %v1801_v17 = vadd.f32 %v1800_v16, %v1370_v3  ;;  %v1802_v18 = vpop.f32.mrb[7].mxu1 }
 0x30f   : > { %v1907_v10 = vpack.c.bf16 %v1760_v6, %v1756_v5  ;;  %v1803_v19 = vadd.f32 %v1802_v18, %v1374_v7 }
 0x310   : > { %5306 = vmatpush3.bf16.xpose.msra.mxu0 %v1906_v9  ;;  %v1908_v20 = vpack.c.bf16 %v1801_v17, %v1797_v12 }
 0x311   : > { %5317 = vmatprep.subr.bf16.mxu0 %v6485_v8  ;;  %v1909_v23 = vpack.c.bf16 %v1803_v19, %v1799_v15 }
 0x317   : > { %5308 = vmatmul.mubr.bf16.vlgmr.msra.gmra.mrb[12].mxu0 %v1902_v21 }
 0x318   : > { %5318 = vmatpush3.bf16.xpose.msra.mxu0 %v1907_v10  ;;  %5319 = vmatprep.mubr.msk.bf16.mxu0 %vm6486_vm0, %v6485_v8 }
 0x319   : > { %5329 = vmatprep.subr.bf16.mxu0 %v6485_v8 }
 0x31f   : > { %5320 = vmatmul.mubr.bf16.vlgmr.msra.gmra.mrb[16].mxu0 %v1903_v25 }
 0x320   : > { %5330 = vmatpush3.bf16.xpose.msra.mxu0 %v1908_v20  ;;  %5331 = vmatprep.mubr.msk.bf16.mxu0 %vm6486_vm0, %v6485_v8 }
 0x321   : > { %5341 = vmatprep.subr.bf16.mxu0 %v6485_v8 }
 0x327   : > { %5332 = vmatmul.mubr.bf16.vlgmr.msra.gmra.mrb[20].mxu0 %v1904_v28 }
 0x328   : > { %5342 = vmatpush3.bf16.xpose.msra.mxu0 %v1909_v23  ;;  %5343 = vmatprep.mubr.msk.bf16.mxu0 %vm6486_vm0, %v6485_v8 }
 0x329   : > { %v1839_v37 = vpop.f32.mrb[8].mxu0 }
 0x32a   : > { %v1840_v38 = vadd.f32 %v1839_v37, %v1378_v34  ;;  %v1841_v39 = vpop.f32.mrb[9].mxu0 }
 0x32b   : > { %v7173_v40 = vadd.f32 %v1841_v39, %v1382_v35  ;;  %v1843_v41 = vpop.f32.mrb[10].mxu0 }
 0x32c   : > { %v1844_v42 = vadd.f32 %v1843_v41, %v1378_v34  ;;  %v1845_v43 = vpop.f32.mrb[11].mxu0 }
 0x32d   : > { %v7175_v44 = vadd.f32 %v1845_v43, %v1382_v35  ;;  %v1385_v43 = vsub.s32 6, %v7122_v52  ;;  %v5797_v52 = vld [vmem:[#allocation22 + $0x10] sm:$0xff]  }
 0x32e   : > { %v1910_v45 = vpack.c.bf16 %v1844_v42, %v1840_v38 }
 0x32f   : > { %5344 = vmatmul.mubr.bf16.vlgmr.msra.gmra.mrb[24].mxu0 %v1905_v31  ;;  %v1911_v46 = vpack.c.bf16 %v7175_v44, %v7173_v40 }
 0x330   : > { %5312 = vmatpush3.bf16.msra.mxu1 %v1910_v45  ;;  %v1882_v45 = vpop.f32.mrb[8].mxu1 }
 0x331   : > { %5323 = vmatprep.subr.bf16.mxu1 %v6485_v8 }
 0x3ea   : > { %v1948_v55 = vpop.f32.mrb[12].mxu0 }
 0x3eb   : > { %v1949_v56 = vadd.f32 %v1948_v55, %v1901_v50  ;;  %v5309_v57 = vpop.f32.mrb[13].mxu0  ;;  %v1386_v55 = vrot.slane %v7127_v53, %v1385_v43 }
 0x3ec   : > { %v1951_v58 = vpop.f32.mrb[14].mxu0 }
 0x3ed   : > { %v5310_v60 = vpop.f32.mrb[15].mxu0  ;;  %v1955_v62 = vsel %vm1954_vm2, %v1949_v56, -inf  ;;  %v1883_v58 = vadd.f32 %v1882_v45, %v1386_v55  ;;  %v5734_v45 = vld [vmem:[#allocation13 + $0x38] sm:$0xff]  }
 0x3ee   : > { %1956 = vmax.xlane.f32.xlu0 %v1955_v62 }
 0x3f2   : > { %v2044_v63 = vpop.f32.mrb[16].mxu0 }
 0x3f3   : > { %v2045_v1 = vadd.f32 %v2044_v63, %v1901_v50  ;;  %v5321_v2 = vpop.f32.mrb[17].mxu0 }
 0x3f4   : > { %v2047_v3 = vpop.f32.mrb[18].mxu0 }
 0x3f5   : > { %v5322_v4 = vpop.f32.mrb[19].mxu0  ;;  %v2050_v5 = vsel %vm1954_vm2, %v2045_v1, -inf }
 0x3f6   : > { %2051 = vmax.xlane.f32.xlu1 %v2050_v5  ;;  %v5712_v4 = vld [vmem:[#allocation13 + $0x40] sm:$0xff]  }
 0x3f7   : > { %v5713_v5 = vld [vmem:[#allocation13] sm:$0xff]   ;;  %5183 = vmatprep.subr.bf16.mxu0 %v5712_v4 }
 0x3f8   : > { %5184 = vmatpush3.bf16.msra.mxu0 %v5713_v5 }
 0x3fa   : > { %v2139_v6 = vpop.f32.mrb[20].mxu0 }
 0x3fb   : > { %v2140_v7 = vadd.f32 %v2139_v6, %v1901_v50  ;;  %v5333_v9 = vpop.f32.mrb[21].mxu0  ;;  %v5714_v6 = vld [vmem:[#allocation13 + $0x48] sm:$0xff]  }
 0x3fc   : > { %v2142_v10 = vpop.f32.mrb[22].mxu0  ;;  %5185 = vmatprep.subr.bf16.mxu0 %v5714_v6  ;;  %v5716_v9 = vld [vmem:[#allocation13 + $0x50] sm:$0xff]  }
 0x3fd   : > { %v5334_v11 = vpop.f32.mrb[23].mxu0  ;;  %v2145_v12 = vsel %vm1954_vm2, %v2140_v7, -inf  ;;  %v5717_v10 = vld [vmem:[#allocation13 + $0x10] sm:$0xff]  }
 0x3fe   : > { %2146 = vmax.xlane.f32.xlu1 %v2145_v12  ;;  %v5719_v11 = vld [vmem:[#allocation13 + $0x18] sm:$0xff]   ;;  %v5720_v12 = vld [vmem:[#allocation13 + $0x60] sm:$0xff]  }
 0x402   : > { %v2234_v13 = vpop.f32.mrb[24].mxu0 }
 0x403   : > { %v2235_v14 = vadd.f32 %v2234_v13, %v1901_v50  ;;  %v5345_v15 = vpop.f32.mrb[25].mxu0  ;;  %v1884_v50 = vpop.f32.mrb[9].mxu1  ;;  %v5722_v13 = vld [vmem:[#allocation13 + $0x20] sm:$0xff]  }
 0x404   : > { %v2237_v16 = vpop.f32.mrb[26].mxu0  ;;  %v1886_v57 = vpop.f32.mrb[10].mxu1 }
 0x405   : > { %v5346_v17 = vpop.f32.mrb[27].mxu0  ;;  %v2240_v18 = vsel %vm1954_vm2, %v2235_v14, -inf  ;;  %v1888_v62 = vpop.f32.mrb[11].mxu1  ;;  %v1887_v63 = vadd.f32 %v1886_v57, %v1386_v55  ;;  %v5736_v55 = vld [vmem:[#allocation13 + $0xe0] sm:$0xff]   ;;  %v5738_v57 = vld [vmem:[#allocation13 + $0xe8] sm:$0xff]  }
 0x406   : > { %2241 = vmax.xlane.f32.xlu1 %v2240_v18 }
 0x407   : > { %v1912_v2 = vpack.c.bf16 %v1887_v63, %v1883_v58  ;;  %v5739_v58 = vld [vmem:[#allocation13 + $0xa8] sm:$0xff]   ;;  %v5742_v63 = vld [vmem:[#allocation13 + $0xf8] sm:$0xff]  }
 0x47b   : > { %v1957_v19 = vpop.xlane.xlu0 %1956 }
 0x47c   : > { %v1958_v20 = vsub.f32 %v1949_v56, %v1957_v19  ;;  %v1390_v56 = vrot.slane %v7127_v53, %v1389_v47  ;;  %v5718_v53 = vld [vmem:[#allocation13 + $0x58] sm:$0xff]  }
 0x47e   : > { %v1959_v21 = vmul.f32 1.442695, %v1958_v20  ;;  %v1885_v60 = vadd.f32 %v1884_v50, %v1390_v56  ;;  %v5735_v50 = vld [vmem:[#allocation13 + $0x98] sm:$0xff]  }
 0x480   : > { %5840 = vpow2.f32 %v1959_v21 }
 0x483   : > { %v2052_v22 = vpop.xlane.xlu1 %2051 }
 0x484   : > { %v2053_v23 = vsub.f32 %v2045_v1, %v2052_v22  ;;  %v1889_v1 = vadd.f32 %v1888_v62, %v1390_v56  ;;  %v5737_v56 = vld [vmem:[#allocation13 + $0xa0] sm:$0xff]   ;;  %v5741_v62 = vld [vmem:[#allocation13 + $0xb0] sm:$0xff]  }
 0x486   : > { %v2054_v24 = vmul.f32 1.442695, %v2053_v23  ;;  %v1913_v3 = vpack.c.bf16 %v1889_v1, %v1885_v60  ;;  %v5740_v60 = vld [vmem:[#allocation13 + $0xf0] sm:$0xff]   ;;  %v5743_v1 = vld [vmem:[#allocation13 + $0xb8] sm:$0xff]  }
 0x488   : > { %5842 = vpow2.f32 %v2054_v24  ;;  %v5721_v24 = vld [vmem:[#allocation13 + $0xc0] sm:$0xff]  }
 0x48a   : > { %v5841_v25 = vpop.eup %5840 }
 0x48b   : > { %v2147_v26 = vpop.xlane.xlu1 %2146  ;;  %v1961_v27 = vsel %vm1954_vm2, %v5841_v25, 0.0 }
 0x48c   : > { %v2148_v28 = vsub.f32 %v2140_v7, %v2147_v26  ;;  %1962 = vadd.xlane.f32.xlu1 %v1961_v27  ;;  %v5715_v7 = vld [vmem:[#allocation13 + $0x8] sm:$0xff]   ;;  %v5723_v27 = vld [vmem:[#allocation13 + $0x80] sm:$0xff]  }
 0x48d   : > { %5186 = vmatpush3.bf16.msra.mxu0 %v5715_v7 }
 0x48e   : > { %v2149_v29 = vmul.f32 1.442695, %v2148_v28  ;;  %5187 = vmatprep.subr.bf16.mxu0 %v5716_v9 }
 0x490   : > { %5844 = vpow2.f32 %v2149_v29  ;;  %v5724_v29 = vld [vmem:[#allocation13 + $0x68] sm:$0xff]  }
 0x491   : > { %5188 = vmatpush3.bf16.msra.mxu0 %v5717_v10 }
 0x492   : > { %v5843_v30 = vpop.eup %5842  ;;  %5189 = vmatprep.subr.bf16.mxu0 %v5718_v53 }
 0x493   : > { %v2242_v31 = vpop.xlane.xlu1 %2241  ;;  %v2056_v34 = vsel %vm1954_vm2, %v5843_v30, 0.0 }
 0x494   : > { %v2243_v35 = vsub.f32 %v2235_v14, %v2242_v31  ;;  %2057 = vadd.xlane.f32.xlu1 %v2056_v34  ;;  %v5726_v31 = vld [vmem:[#allocation13 + $0x28] sm:$0xff]  }
 0x495   : > { %5190 = vmatpush3.bf16.msra.mxu0 %v5719_v11  ;;  %v5727_v34 = vld [vmem:[#allocation13 + $0x88] sm:$0xff]  }
 0x496   : > { %v2244_v37 = vmul.f32 1.442695, %v2243_v35  ;;  %5191 = vmatprep.subr.bf16.mxu0 %v5720_v12  ;;  %v5728_v35 = vld [vmem:[#allocation13 + $0x70] sm:$0xff]  }
 0x498   : > { %5846 = vpow2.f32 %v2244_v37  ;;  %v5729_v37 = vld [vmem:[#allocation13 + $0xd0] sm:$0xff]  }
 0x499   : > { %5192 = vmatpush3.bf16.msra.mxu0 %v5722_v13 }
 0x49a   : > { %v7190_v38 = vpop.eup %5844  ;;  %5193 = vmatprep.subr.bf16.mxu0 %v5724_v29 }
 0x49b   : > { %v2151_v39 = vsel %vm1954_vm2, %v7190_v38, 0.0 }
 0x49c   : > { %2152 = vadd.xlane.f32.xlu1 %v2151_v39  ;;  %v5731_v39 = vld [vmem:[#allocation13 + $0x90] sm:$0xff]  }
 0x49d   : > { %5194 = vmatpush3.bf16.msra.mxu0 %v5726_v31 }
 0x49e   : > { %5195 = vmatprep.subr.bf16.mxu0 %v5728_v35 }
 0x4a2   : > { %v7194_v41 = vpop.eup %5846 }
 0x4a3   : > { %v2246_v42 = vsel %vm1954_vm2, %v7194_v41, 0.0 }
 0x4a4   : > { %2247 = vadd.xlane.f32.xlu1 %v2246_v42  ;;  %v5733_v42 = vld [vmem:[#allocation13 + $0xd8] sm:$0xff]  }
 0x519   : > { %v1963_v14 = vpop.xlane.xlu1 %1962 }
 0x51a   : > { %5848 = vrcp.f32 %v1963_v14 }
 0x521   : > { %v2058_v15 = vpop.xlane.xlu1 %2057 }
 0x522   : > { %5850 = vrcp.f32 %v2058_v15 }
 0x524   : > { %v5849_v16 = vpop.eup %5848 }
 0x525   : > { %v1965_v17 = vmul.f32 %v5849_v16, %v5841_v25 }
 0x527   : > { %v1966_v18 = vpack.c.bf16 %v1965_v17, %v1965_v17 }
 0x529   : > { %5314 = vmatmul.mubr.msk.bf16.vlgmr.msra.gmra.mrb[12].mxu1 %vm1954_vm2, %v1966_v18  ;;  %v2153_v19 = vpop.xlane.xlu1 %2152 }
 0x52a   : > { %5324 = vmatpush3.bf16.msra.mxu1 %v1911_v46  ;;  %5852 = vrcp.f32 %v2153_v19  ;;  %5325 = vmatprep.mubr.msk.bf16.mxu1 %vm6486_vm0, %v6485_v8 }
 0x52b   : > { %5335 = vmatprep.subr.bf16.mxu1 %v6485_v8 }
 0x52c   : > { %v5851_v20 = vpop.eup %5850 }
 0x52d   : > { %v2060_v21 = vmul.f32 %v5851_v20, %v5843_v30  ;;  %v5725_v30 = vld [vmem:[#allocation13 + $0xc8] sm:$0xff]  }
 0x52f   : > { %v2061_v22 = vpack.c.bf16 %v2060_v21, %v2060_v21 }
 0x531   : > { %5326 = vmatmul.mubr.msk.bf16.vlgmr.msra.gmra.mrb[16].mxu1 %vm1954_vm2, %v2061_v22  ;;  %v2248_v23 = vpop.xlane.xlu1 %2247 }
 0x532   : > { %5336 = vmatpush3.bf16.msra.mxu1 %v1912_v2  ;;  %5854 = vrcp.f32 %v2248_v23  ;;  %5337 = vmatprep.mubr.msk.bf16.mxu1 %vm6486_vm0, %v6485_v8 }
 0x533   : > { %5347 = vmatprep.subr.bf16.mxu1 %v6485_v8 }
 0x534   : > { %v5853_v40 = vpop.eup %5852 }
 0x535   : > { %v2155_v44 = vmul.f32 %v5853_v40, %v7190_v38  ;;  %v5730_v38 = vld [vmem:[#allocation13 + $0x30] sm:$0xff]  }
 0x536   : > { %5196 = vmatpush3.bf16.msra.mxu0 %v5730_v38  ;;  %v5746_v38 = vld [vmem:[#allocation16 + $0x4] ss:$16 sps:$4 sm:$0xff]  }
 0x537   : > { %v2156_v46 = vpack.c.bf16 %v2155_v44, %v2155_v44 }
 0x539   : > { %5338 = vmatmul.mubr.msk.bf16.vlgmr.msra.gmra.mrb[20].mxu1 %vm1954_vm2, %v2156_v46 }
 0x53a   : > { %5348 = vmatpush3.bf16.msra.mxu1 %v1913_v3  ;;  %5349 = vmatprep.mubr.msk.bf16.mxu1 %vm6486_vm0, %v6485_v8 }
 0x53b   : > { %5205 = vmatprep.subr.bf16.mxu1 %v5721_v24  ;;  %v4978_v24 = vld [vmem:[#allocation14] ss:$0 sm:$0xff] }
 0x53c   : > { %v5855_v25 = vpop.eup %5854 }
 0x53d   : > { %v2250_v26 = vmul.f32 %v5855_v25, %v7194_v41  ;;  %v5732_v41 = vld [vmem:[#allocation13 + $0x78] sm:$0xff]  }
 0x53e   : > { %5197 = vmatprep.subr.bf16.mxu0 %v5732_v41  ;;  %v5749_v41 = vld [vmem:[#allocation16 + $0xc] ss:$16 sps:$4 sm:$0xff]  }
 0x53f   : > { %v2251_v28 = vpack.c.bf16 %v2250_v26, %v2250_v26  ;;  %5198 = vmatpush3.bf16.msra.mxu0 %v5734_v45  ;;  %v5755_v45 = vld [vmem:[#allocation16 + $0x2c] ss:$16 sps:$4 sm:$0xff]  }
 0x540   : > { %2880 = vmatprep.subr.bf16.mxu0 %v5746_v38 }
 0x541   : > { %5350 = vmatmul.mubr.msk.bf16.vlgmr.msra.gmra.mrb[24].mxu1 %vm1954_vm2, %v2251_v28 }
 0x542   : > { %5206 = vmatpush3.bf16.msra.mxu1 %v5723_v27 }
 0x543   : > { %5207 = vmatprep.subr.bf16.mxu1 %v5725_v30 }
 0x546   : > { %5208 = vmatpush3.bf16.msra.mxu1 %v5727_v34  ;;  %v5880_v34 = vld [vmem:[%s7097_s9] sm:$0xff]  ;;  %s6359_s9 = scalar_lea.vmem %s7396_s27, 128 }
 0x547   : > { %5209 = vmatprep.subr.bf16.mxu1 %v5729_v37  ;;  %v5744_v37 = vld [vmem:[#allocation16] ss:$16 sps:$4 sm:$0xff]   ;;  %p6360_p12 = scmp.ne.s32.totalorder %s7396_s27, %s6359_s9 }
 0x549   : > { %p6361_p8 = pnand %p6360_p12, %p7569_p7 }
 0x54a   : > { %5210 = vmatpush3.bf16.msra.mxu1 %v5731_v39  ;;  %v5747_v39 = vld [vmem:[#allocation16 + $0x8] ss:$16 sps:$4 sm:$0xff]  }
 0x54b   : > { %5211 = vmatprep.subr.bf16.mxu1 %v5733_v42  ;;  %v5752_v42 = vld [vmem:[#allocation16 + $0x24] ss:$16 sps:$4 sm:$0xff]   ;;  %p6362_p11 = pneg %p6361_p8 }
 0x54e   : > { %5212 = vmatpush3.bf16.msra.mxu1 %v5735_v50  ;;  %v5750_v50 = vld [vmem:[#allocation16 + $0x20] ss:$16 sps:$4 sm:$0xff]  }
 0x54f   : > { %5213 = vmatprep.subr.bf16.mxu1 %v5736_v55  ;;  %v5753_v55 = vld [vmem:[#allocation16 + $0x28] ss:$16 sps:$4 sm:$0xff]  }
 0x552   : > { %5214 = vmatpush3.bf16.msra.mxu1 %v5737_v56  ;;  %v5758_v56 = vld [vmem:[#allocation16 + $0x44] ss:$16 sps:$4 sm:$0xff]  }
 0x553   : > { %5215 = vmatprep.subr.bf16.mxu1 %v5738_v57  ;;  %v5761_v57 = vld [vmem:[#allocation16 + $0x4c] ss:$16 sps:$4 sm:$0xff]  }
 0x556   : > { %5216 = vmatpush3.bf16.msra.mxu1 %v5739_v58  ;;  %v5756_v58 = vld [vmem:[#allocation16 + $0x40] ss:$16 sps:$4 sm:$0xff]  }
 0x557   : > { %5217 = vmatprep.subr.bf16.mxu1 %v5740_v60  ;;  %v5759_v60 = vld [vmem:[#allocation16 + $0x48] ss:$16 sps:$4 sm:$0xff]  }
 0x55a   : > { %5218 = vmatpush3.bf16.msra.mxu1 %v5741_v62  ;;  %v983_v62 = vand.u32 127, %v982_v51  ;;  %v5770_v51 = vld [vmem:[#allocation16 + $0x84] ss:$16 sps:$4 sm:$0xff]  }
 0x55b   : > { %5219 = vmatprep.subr.bf16.mxu1 %v5742_v63 }
 0x55c   : > { %vm984_vm3 = vcmp.lt.s32.totalorder %v983_v62, 32 }
 0x55e   : > { %5220 = vmatpush3.bf16.msra.mxu1 %v5743_v1 }
 0x55f   : > { %2921 = vmatprep.subr.bf16.mxu1 %v5749_v41 }
 0x5fc   : > { %v2004_v2 = vpop.f32.mrb[12].mxu1 }
 0x5fd   : > { %v5315_v3 = vpop.f32.mrb[13].mxu1  ;;  %v2295_v10 = vpack.c.bf16 %v2004_v2, %v2004_v2  ;;  %v7228_v2 = vsel %vm984_vm3, 1.0, %v6485_v8 }
 0x5fe   : > { %v2007_v4 = vpop.f32.mrb[14].mxu1 }
 0x5ff   : > { %v5316_v5 = vpop.f32.mrb[15].mxu1 }
 0x604   : > { %v2099_v6 = vpop.f32.mrb[16].mxu1 }
 0x605   : > { %v2296_v7 = vpack.c.bf16 %v2099_v6, %v2099_v6  ;;  %v5327_v9 = vpop.f32.mrb[17].mxu1  ;;  %v5764_v6 = vld [vmem:[#allocation16 + $0x64] ss:$16 sps:$4 sm:$0xff]  }
 0x606   : > { %v2102_v53 = vpop.f32.mrb[18].mxu1  ;;  %v5767_v9 = vld [vmem:[#allocation16 + $0x6c] ss:$16 sps:$4 sm:$0xff]  }
 0x607   : > { %v5328_v11 = vpop.f32.mrb[19].mxu1  ;;  %2594 = vmatprep.mubr.bf16.mxu0 %v2296_v7  ;;  %v5762_v7 = vld [vmem:[#allocation16 + $0x60] ss:$16 sps:$4 sm:$0xff]  }
 0x608   : > { %2595 = vmatmul.mubr.bf16.vlgmr.msra.gmra.mrb[28].mxu0 %v2295_v10  ;;  %v5765_v10 = vld [vmem:[#allocation16 + $0x68] ss:$16 sps:$4 sm:$0xff]   ;;  %v5768_v53 = vld [vmem:[#allocation16 + $0x80] ss:$16 sps:$4 sm:$0xff]   ;;  %v5773_v11 = vld [vmem:[#allocation16 + $0x8c] ss:$16 sps:$4 sm:$0xff]  }
 0x609   : > { %2912 = vmatprep.mubr.bf16.mxu0 %v6484_v0  ;;  %2881 = vmatpush1.bf16.msra.mxu0 %v5744_v37  ;;  %v988_v37 = vld [vmem:[#allocation26] sm:$0x7] }
 0x60a   : > { %2882 = vmatprep.subr.bf16.mxu0 %v5752_v42  ;;  %v2663_v42 = vrot.slane %v988_v37, %v7130_v36 }
 0x60c   : > { %v2194_v12 = vpop.f32.mrb[20].mxu1 }
 0x60d   : > { %v5339_v13 = vpop.f32.mrb[21].mxu1  ;;  %v2297_v19 = vpack.c.bf16 %v2194_v12, %v2194_v12  ;;  %2883 = vmatpush1.bf16.msra.mxu0 %v5750_v50  ;;  %v5771_v12 = vld [vmem:[#allocation16 + $0x88] ss:$16 sps:$4 sm:$0xff]  }
 0x60e   : > { %v2197_v14 = vpop.f32.mrb[22].mxu1  ;;  %2884 = vmatprep.subr.bf16.mxu0 %v5758_v56  ;;  %v5776_v13 = vld [vmem:[#allocation16 + $0xa4] ss:$16 sps:$4 sm:$0xff]   ;;  %v2971_v56 = vld [vmem:[#allocation19 + $0x48] sm:$0xff] }
 0x60f   : > { %v5340_v15 = vpop.f32.mrb[23].mxu1  ;;  %v5774_v14 = vld [vmem:[#allocation16 + $0xa0] ss:$16 sps:$4 sm:$0xff]   ;;  %v2970_v50 = vld [vmem:[#allocation19 + $0x40] sm:$0xff] }
 0x610   : > { %v5779_v15 = vld [vmem:[#allocation16 + $0xac] ss:$16 sps:$4 sm:$0xff]  }
 0x611   : > { %2885 = vmatpush1.bf16.msra.mxu0 %v5756_v58 }
 0x612   : > { %2886 = vmatprep.subr.bf16.mxu0 %v5764_v6  ;;  %v2983_v6 = vld [vmem:[#allocation19 + $0xa8] sm:$0xff] }
 0x614   : > { %v2289_v16 = vpop.f32.mrb[24].mxu1 }
 0x615   : > { %v2298_v17 = vpack.c.bf16 %v2289_v16, %v2289_v16  ;;  %v5351_v18 = vpop.f32.mrb[25].mxu1  ;;  %2887 = vmatpush1.bf16.msra.mxu0 %v5762_v7  ;;  %v5777_v16 = vld [vmem:[#allocation16 + $0xa8] ss:$16 sps:$4 sm:$0xff]  }
 0x616   : > { %v2292_v20 = vpop.f32.mrb[26].mxu1  ;;  %2888 = vmatprep.subr.bf16.mxu0 %v5770_v51  ;;  %v5780_v18 = vld [vmem:[#allocation16 + $0xc0] ss:$16 sps:$4 sm:$0xff]  }
 0x617   : > { %v5352_v21 = vpop.f32.mrb[27].mxu1  ;;  %2634 = vmatprep.mubr.bf16.mxu1 %v2298_v17  ;;  %v5782_v17 = vld [vmem:[#allocation16 + $0xc4] ss:$16 sps:$4 sm:$0xff]   ;;  %v5783_v20 = vld [vmem:[#allocation16 + $0xc8] ss:$16 sps:$4 sm:$0xff]  }
 0x618   : > { %2635 = vmatmul.mubr.bf16.vlgmr.msra.gmra.mrb[28].mxu1 %v2297_v19  ;;  %v5785_v19 = vld [vmem:[#allocation16 + $0xcc] ss:$16 sps:$4 sm:$0xff]   ;;  %v5788_v21 = vld [vmem:[#allocation16 + $0xe4] ss:$16 sps:$4 sm:$0xff]  }
 0x619   : > { %2953 = vmatprep.mubr.bf16.mxu1 %v6484_v0  ;;  %2922 = vmatpush1.bf16.msra.mxu1 %v5747_v39 }
 0x61a   : > { %2923 = vmatprep.subr.bf16.mxu1 %v5755_v45  ;;  %2889 = vmatpush1.bf16.msra.mxu0 %v5768_v53  ;;  %v2990_v53 = vld [vmem:[#allocation19 + $0xe0] sm:$0xff] }
 0x61b   : > { %2890 = vmatprep.subr.bf16.mxu0 %v5776_v13 }
 0x61d   : > { %2924 = vmatpush1.bf16.msra.mxu1 %v5753_v55  ;;  %v2974_v55 = vld [vmem:[#allocation19 + $0x60] sm:$0xff] }
 0x61e   : > { %2925 = vmatprep.subr.bf16.mxu1 %v5761_v57  ;;  %2891 = vmatpush1.bf16.msra.mxu0 %v5774_v14  ;;  %v2975_v57 = vld [vmem:[#allocation19 + $0x68] sm:$0xff]  ;;  %v5052_v62 = vcombine.high %v2970_v50, %v2974_v55 }
 0x61f   : > { %2892 = vmatprep.subr.bf16.mxu0 %v5782_v17  ;;  %v5053_v7 = vcombine.low %v2971_v56, %v2975_v57 }
 0x621   : > { %2926 = vmatpush1.bf16.msra.mxu1 %v5759_v60 }
 0x622   : > { %2927 = vmatprep.subr.bf16.mxu1 %v5767_v9  ;;  %2893 = vmatpush1.bf16.msra.mxu0 %v5780_v18  ;;  %v2998_v18 = vld [vmem:[#allocation19 + $0x120] sm:$0xff] }
 0x623   : > { %2894 = vmatprep.subr.bf16.mxu0 %v5788_v21 }
 0x625   : > { %2928 = vmatpush1.bf16.msra.mxu1 %v5765_v10  ;;  %v2986_v10 = vld [vmem:[#allocation19 + $0xc0] sm:$0xff] }
 0x626   : > { %2929 = vmatprep.subr.bf16.mxu1 %v5773_v11  ;;  %v2987_v11 = vld [vmem:[#allocation19 + $0xc8] sm:$0xff]  ;;  %v5067_v21 = vcombine.low %v2986_v10, %v2990_v53 }
 0x629   : > { %2930 = vmatpush1.bf16.msra.mxu1 %v5771_v12  ;;  %v2991_v12 = vld [vmem:[#allocation19 + $0xe8] sm:$0xff] }
 0x62a   : > { %2931 = vmatprep.subr.bf16.mxu1 %v5779_v15  ;;  %v5068_v15 = vcombine.high %v2986_v10, %v2990_v53  ;;  %v5070_v17 = vcombine.high %v2987_v11, %v2991_v12  ;;  %v2976_v53 = vld [vmem:[#allocation19 + $0x70] sm:$0xff] }
 0x62d   : > { %2932 = vmatpush1.bf16.msra.mxu1 %v5777_v16  ;;  %v2994_v16 = vld [vmem:[#allocation19 + $0x100] sm:$0xff] }
 0x62e   : > { %2933 = vmatprep.subr.bf16.mxu1 %v5785_v19  ;;  %v2995_v19 = vld [vmem:[#allocation19 + $0x108] sm:$0xff] }
 0x631   : > { %2934 = vmatpush1.bf16.msra.mxu1 %v5783_v20  ;;  %v2999_v20 = vld [vmem:[#allocation19 + $0x128] sm:$0xff] }
 0x6db   : > { %v5199_v22 = vpop.f32.mrb[28].mxu0 }
 0x6dc   : > { %v5200_v23 = vpop.f32.mrb[29].mxu0 }
 0x6dd   : > { %v5201_v40 = vadd.f32 %v5200_v23, %v5199_v22  ;;  %v5202_v44 = vpop.f32.mrb[30].mxu0  ;;  %v5786_v22 = vld [vmem:[#allocation16 + $0xe0] ss:$16 sps:$4 sm:$0xff]   ;;  %v5791_v23 = vld [vmem:[#allocation16 + $0xec] ss:$16 sps:$4 sm:$0xff]  }
 0x6de   : > { %v5203_v46 = vpop.f32.mrb[31].mxu0  ;;  %v5789_v44 = vld [vmem:[#allocation16 + $0xe8] ss:$16 sps:$4 sm:$0xff]   ;;  %2935 = vmatprep.subr.bf16.mxu1 %v5791_v23  ;;  %2895 = vmatpush1.bf16.msra.mxu0 %v5786_v22  ;;  %v5069_v22 = vcombine.low %v2987_v11, %v2991_v12  ;;  %v5076_v23 = vcombine.high %v2994_v16, %v2998_v18 }
 0x6df   : > { %v2597_v27 = vadd.f32 %v5201_v40, %v4978_v24  ;;  %v2962_v40 = vld [vmem:[#allocation19] sm:$0xff]  ;;  %2936 = vmatpush1.bf16.msra.mxu1 %v5789_v44  ;;  %v5078_v44 = vcombine.high %v2995_v19, %v2999_v20 }
 0x6e0   : > { %v2966_v46 = vld [vmem:[#allocation19 + $0x20] sm:$0xff] }
 0x6e1   : > { %v5043_v24 = vcombine.low %v2962_v40, %v2966_v46 }
 0x6eb   : > { %v5221_v25 = vpop.f32.mrb[28].mxu1 }
 0x6ec   : > { %v5222_v26 = vpop.f32.mrb[29].mxu1 }
 0x6ed   : > { %v5223_v28 = vadd.f32 %v5222_v26, %v5221_v25  ;;  %v5224_v29 = vpop.f32.mrb[30].mxu1  ;;  %v5044_v25 = vcombine.high %v2962_v40, %v2966_v46  ;;  %v2963_v26 = vld [vmem:[#allocation19 + $0x8] sm:$0xff]  ;;  %v3002_v40 = vld [vmem:[#allocation19 + $0x140] sm:$0xff] }
 0x6ee   : > { %v5225_v30 = vpop.f32.mrb[31].mxu1  ;;  %v3006_v46 = vld [vmem:[#allocation19 + $0x160] sm:$0xff] }
 0x6ef   : > { %v2637_v31 = vadd.f32 %v5223_v28, %v2597_v27  ;;  %3388 = vmatprep.subr.bf16.mxu0 %v5044_v25  ;;  %v2967_v27 = vld [vmem:[#allocation19 + $0x28] sm:$0xff]  ;;  %v5083_v37 = vcombine.low %v3002_v40, %v3006_v46 }
 0x6f0   : > { %v5046_v28 = vcombine.high %v2963_v26, %v2967_v27  ;;  %v5045_v29 = vcombine.low %v2963_v26, %v2967_v27  ;;  %v3007_v25 = vld [vmem:[#allocation19 + $0x168] sm:$0xff]  ;;  %v5075_v26 = vcombine.low %v2994_v16, %v2998_v18  ;;  %v5077_v27 = vcombine.low %v2995_v19, %v2999_v20  ;;  %v2996_v19 = vld [vmem:[#allocation19 + $0x110] sm:$0xff] }
 0x6f1   : > { %v2642_v35 = vadd.f32 %v5880_v34, %v2637_v31  ;;  %v3000_v20 = vld [vmem:[#allocation19 + $0x130] sm:$0xff] }
 0x6f2   : > { %3431 = vmatprep.subr.bf16.mxu1 %v5046_v28  ;;  %v5084_v28 = vcombine.high %v3002_v40, %v3006_v46  ;;  %v3008_v40 = vld [vmem:[#allocation19 + $0x170] sm:$0xff] }
 0x6f3   : > { %2643 = vadd.xlane.f32.xlu1 %v2642_v35 }
 0x780   : > { %v2644_v63 = vpop.xlane.xlu1 %2643 }
 0x781   : > { %v2645_v1 = vmul.f32 0.03125, %v2644_v63  ;;  %v2978_v63 = vld [vmem:[#allocation19 + $0x80] sm:$0xff] }
 0x783   : > { %v2646_v3 = vsub.f32 %v2642_v35, %v2645_v1  ;;  %v987_v35 = vld [vmem:[#allocation25] sm:$0x7]  ;;  %v5054_v1 = vcombine.high %v2971_v56, %v2975_v57 }
 0x784   : > { %v2658_v38 = vrot.slane %v987_v35, %v7130_v36  ;;  %v3015_v35 = vld [vmem:[#allocation19 + $0x1a8] sm:$0xff] }
 0x785   : > { %v2647_v4 = vmul.f32 %v7228_v2, %v2646_v3  ;;  %v2982_v3 = vld [vmem:[#allocation19 + $0xa0] sm:$0xff] }
 0x786   : > { %v5060_v9 = vcombine.high %v2978_v63, %v2982_v3  ;;  %v5059_v13 = vcombine.low %v2978_v63, %v2982_v3  ;;  %v995_v3 = vld [vmem:[#allocation5 + $0x8] sm:$0xff] }
 0x787   : > { %v2648_v5 = vmul.f32 %v2647_v4, %v2647_v4 }
 0x789   : > { %2649 = vadd.xlane.f32.xlu1 %v2648_v5  ;;  %v2979_v5 = vld [vmem:[#allocation19 + $0x88] sm:$0xff] }
 0x78a   : > { %v5062_v51 = vcombine.high %v2979_v5, %v2983_v6  ;;  %v5061_v14 = vcombine.low %v2979_v5, %v2983_v6 }
 0x816   : > { %v2650_v30 = vpop.xlane.xlu1 %2649 }
 0x817   : > { %v2651_v31 = vmul.f32 0.03125, %v2650_v30 }
 0x819   : > { %v2652_v34 = vadd.f32 1e-05, %v2651_v31  ;;  %v3014_v31 = vld [vmem:[#allocation19 + $0x1a0] sm:$0xff] }
 0x81b   : > { %5856 = vrsqrt.f32 %v2652_v34  ;;  %v3011_v34 = vld [vmem:[#allocation19 + $0x188] sm:$0xff] }
 0x81c   : > { %v5093_v57 = vcombine.low %v3011_v34, %v3015_v35 }
 0x825   : > { %v5857_v39 = vpop.eup %5856 }
 0x826   : > { %v2654_v41 = vmul.f32 %v5857_v39, %v2647_v4  ;;  %v5051_v4 = vcombine.low %v2970_v50, %v2974_v55  ;;  %v3019_v50 = vld [vmem:[#allocation19 + $0x1c8] sm:$0xff] }
 0x827   : > { %v3023_v55 = vld [vmem:[#allocation19 + $0x1e8] sm:$0xff] }
 0x828   : > { %v2659_v45 = vmul.f32 %v2658_v38, %v2654_v41  ;;  %v3018_v41 = vld [vmem:[#allocation19 + $0x1c0] sm:$0xff]  ;;  %v5101_v5 = vcombine.low %v3019_v50, %v3023_v55 }
 0x82a   : > { %v7233_v58 = vadd.f32 %v2663_v42, %v2659_v45  ;;  %v5094_v42 = vcombine.high %v3011_v34, %v3015_v35  ;;  %v3022_v45 = vld [vmem:[#allocation19 + $0x1e0] sm:$0xff]  ;;  %v2965_v35 = vld [vmem:[#allocation19 + $0x18] sm:$0xff] }
 0x82b   : > { %v5099_v63 = vcombine.low %v3018_v41, %v3022_v45 }
 0x82c   : > { %v2665_v60 = vpack.c.bf16 %v7233_v58, %v7233_v58 }
 0x82e   : > { %2913 = vmatmul.mubr.bf16.vlgmr.msra.gmra.mrb[32].mxu0 %v2665_v60  ;;  %2954 = vmatmul.mubr.bf16.vlgmr.msra.gmra.mrb[32].mxu1 %v2665_v60  ;;  %v5100_v60 = vcombine.high %v3018_v41, %v3022_v45 }
 0x82f   : > { %3389 = vmatpush1.bf16.msra.mxu0 %v5043_v24  ;;  %3432 = vmatpush1.bf16.msra.mxu1 %v5045_v29  ;;  %v3003_v24 = vld [vmem:[#allocation19 + $0x148] sm:$0xff]  ;;  %v3010_v29 = vld [vmem:[#allocation19 + $0x180] sm:$0xff] }
 0x830   : > { %3390 = vmatprep.subr.bf16.mxu0 %v5052_v62  ;;  %3433 = vmatprep.subr.bf16.mxu1 %v5054_v1  ;;  %v5086_v30 = vcombine.high %v3003_v24, %v3007_v25  ;;  %v5085_v38 = vcombine.low %v3003_v24, %v3007_v25  ;;  %v5092_v39 = vcombine.high %v3010_v29, %v3014_v31  ;;  %v994_v1 = vld [vmem:[#allocation5] sm:$0xff]  ;;  %v3012_v24 = vld [vmem:[#allocation19 + $0x190] sm:$0xff] }
 0x831   : > { %3420 = vmatprep.mubr.bf16.mxu0 %v6484_v0  ;;  %3463 = vmatprep.mubr.bf16.mxu1 %v6484_v0  ;;  %v5091_v56 = vcombine.low %v3010_v29, %v3014_v31  ;;  %v5102_v62 = vcombine.high %v3019_v50, %v3023_v55  ;;  %v7239_v6 = vpack.c.bf16 %v995_v3, %v994_v1  ;;  %v3016_v25 = vld [vmem:[#allocation19 + $0x1b0] sm:$0xff]  ;;  %v2981_v50 = vld [vmem:[#allocation19 + $0x98] sm:$0xff] }
 0x832   : > { %v3024_v29 = vld [vmem:[#allocation19 + $0x1f0] sm:$0xff]  ;;  %v2985_v55 = vld [vmem:[#allocation19 + $0xb8] sm:$0xff] }
 0x833   : > { %3391 = vmatpush1.bf16.msra.mxu0 %v5051_v4  ;;  %3434 = vmatpush1.bf16.msra.mxu1 %v5053_v7  ;;  %v2964_v4 = vld [vmem:[#allocation19 + $0x10] sm:$0xff]  ;;  %v2997_v3 = vld [vmem:[#allocation19 + $0x118] sm:$0xff] }
 0x834   : > { %3392 = vmatprep.subr.bf16.mxu0 %v5060_v9  ;;  %3435 = vmatprep.subr.bf16.mxu1 %v5062_v51  ;;  %v2968_v7 = vld [vmem:[#allocation19 + $0x30] sm:$0xff] }
 0x835   : > { %v5048_v9 = vcombine.high %v2964_v4, %v2968_v7  ;;  %v5047_v10 = vcombine.low %v2964_v4, %v2968_v7  ;;  %v2972_v51 = vld [vmem:[#allocation19 + $0x50] sm:$0xff] }
 0x836   : > { %v5056_v11 = vcombine.high %v2972_v51, %v2976_v53  ;;  %v5055_v12 = vcombine.low %v2972_v51, %v2976_v53 }
 0x837   : > { %3393 = vmatpush1.bf16.msra.mxu0 %v5059_v13  ;;  %3436 = vmatpush1.bf16.msra.mxu1 %v5061_v14  ;;  %v2980_v13 = vld [vmem:[#allocation19 + $0x90] sm:$0xff] }
 0x838   : > { %3394 = vmatprep.subr.bf16.mxu0 %v5068_v15  ;;  %3437 = vmatprep.subr.bf16.mxu1 %v5070_v17  ;;  %v2984_v14 = vld [vmem:[#allocation19 + $0xb0] sm:$0xff] }
 0x839   : > { %v2988_v15 = vld [vmem:[#allocation19 + $0xd0] sm:$0xff]  ;;  %v5064_v16 = vcombine.high %v2980_v13, %v2984_v14  ;;  %v5063_v18 = vcombine.low %v2980_v13, %v2984_v14 }
 0x83a   : > { %v2992_v17 = vld [vmem:[#allocation19 + $0xf0] sm:$0xff] }
 0x83b   : > { %3395 = vmatpush1.bf16.msra.mxu0 %v5067_v21  ;;  %3438 = vmatpush1.bf16.msra.mxu1 %v5069_v22  ;;  %v5071_v21 = vcombine.low %v2988_v15, %v2992_v17  ;;  %v5080_v22 = vcombine.high %v2996_v19, %v3000_v20 }
 0x83c   : > { %3396 = vmatprep.subr.bf16.mxu0 %v5076_v23  ;;  %3439 = vmatprep.subr.bf16.mxu1 %v5078_v44  ;;  %v3004_v23 = vld [vmem:[#allocation19 + $0x150] sm:$0xff]  ;;  %v5079_v44 = vcombine.low %v2996_v19, %v3000_v20 }
 0x83d   : > { %v5088_v46 = vcombine.high %v3004_v23, %v3008_v40 }
 0x83f   : > { %3397 = vmatpush1.bf16.msra.mxu0 %v5075_v26  ;;  %3440 = vmatpush1.bf16.msra.mxu1 %v5077_v27  ;;  %v5087_v26 = vcombine.low %v3004_v23, %v3008_v40  ;;  %v5096_v27 = vcombine.high %v3012_v24, %v3016_v25 }
 0x840   : > { %3398 = vmatprep.subr.bf16.mxu0 %v5084_v28  ;;  %3441 = vmatprep.subr.bf16.mxu1 %v5086_v30  ;;  %v3020_v28 = vld [vmem:[#allocation19 + $0x1d0] sm:$0xff]  ;;  %v5095_v30 = vcombine.low %v3012_v24, %v3016_v25  ;;  %v7253_v24 = vld [vmem:[#allocation20] sm:$0xff] }
 0x841   : > { %v5104_v31 = vcombine.high %v3020_v28, %v3024_v29  ;;  %v5103_v34 = vcombine.low %v3020_v28, %v3024_v29  ;;  %v3039_v25 = vrot.slane %v7253_v24, %v7143_v59 }
 0x843   : > { %3399 = vmatpush1.bf16.msra.mxu0 %v5083_v37  ;;  %3442 = vmatpush1.bf16.msra.mxu1 %v5085_v38  ;;  %v2969_v37 = vld [vmem:[#allocation19 + $0x38] sm:$0xff] }
 0x844   : > { %3400 = vmatprep.subr.bf16.mxu0 %v5092_v39  ;;  %3443 = vmatprep.subr.bf16.mxu1 %v5094_v42  ;;  %v2973_v38 = vld [vmem:[#allocation19 + $0x58] sm:$0xff]  ;;  %v5049_v39 = vcombine.low %v2965_v35, %v2969_v37  ;;  %v5050_v41 = vcombine.high %v2965_v35, %v2969_v37 }
 0x845   : > { %v2977_v42 = vld [vmem:[#allocation19 + $0x78] sm:$0xff] }
 0x846   : > { %v5058_v45 = vcombine.high %v2973_v38, %v2977_v42 }
 0x847   : > { %3401 = vmatpush1.bf16.msra.mxu0 %v5091_v56  ;;  %3444 = vmatpush1.bf16.msra.mxu1 %v5093_v57  ;;  %v5057_v56 = vcombine.low %v2973_v38, %v2977_v42  ;;  %v5066_v57 = vcombine.high %v2981_v50, %v2985_v55 }
 0x848   : > { %3402 = vmatprep.subr.bf16.mxu0 %v5100_v60  ;;  %3445 = vmatprep.subr.bf16.mxu1 %v5102_v62  ;;  %v2989_v60 = vld [vmem:[#allocation19 + $0xd8] sm:$0xff] }
 0x849   : > { %v2993_v62 = vld [vmem:[#allocation19 + $0xf8] sm:$0xff] }
 0x84a   : > { %v5074_v1 = vcombine.high %v2989_v60, %v2993_v62  ;;  %v5073_v4 = vcombine.low %v2989_v60, %v2993_v62 }
 0x84b   : > { %3403 = vmatpush1.bf16.msra.mxu0 %v5099_v63  ;;  %3446 = vmatpush1.bf16.msra.mxu1 %v5101_v5  ;;  %v5065_v63 = vcombine.low %v2981_v50, %v2985_v55  ;;  %v3001_v5 = vld [vmem:[#allocation19 + $0x138] sm:$0xff] }
 0x84c   : > { %3474 = vmatprep.subr.bf16.mxu0 %v5048_v9  ;;  %3517 = vmatprep.subr.bf16.mxu1 %v5050_v41  ;;  %v5082_v7 = vcombine.high %v2997_v3, %v3001_v5  ;;  %v3005_v9 = vld [vmem:[#allocation19 + $0x158] sm:$0xff]  ;;  %v5081_v51 = vcombine.low %v2997_v3, %v3001_v5 }
 0x84e   : > { %3421 = vmatmul.mubr.bf16.vlgmr.msra.gmra.mrb[36].mxu0 %v7239_v6  ;;  %3464 = vmatmul.mubr.bf16.vlgmr.msra.gmra.mrb[36].mxu1 %v7239_v6 }
 0x84f   : > { %3506 = vmatprep.mubr.bf16.mxu0 %v6484_v0  ;;  %3549 = vmatprep.mubr.bf16.mxu1 %v6484_v0  ;;  %v5072_v0 = vcombine.high %v2988_v15, %v2992_v17  ;;  %v3025_v17 = vld [vmem:[#allocation19 + $0x1f8] sm:$0xff] }
 0x850   : > { %3475 = vmatpush1.bf16.msra.mxu0 %v5047_v10  ;;  %3518 = vmatpush1.bf16.msra.mxu1 %v5049_v39  ;;  %v3009_v10 = vld [vmem:[#allocation19 + $0x178] sm:$0xff] }
 0x851   : > { %3476 = vmatprep.subr.bf16.mxu0 %v5056_v11  ;;  %3519 = vmatprep.subr.bf16.mxu1 %v5058_v45  ;;  %v5090_v53 = vcombine.high %v3005_v9, %v3009_v10  ;;  %v3013_v11 = vld [vmem:[#allocation19 + $0x198] sm:$0xff]  ;;  %v5089_v13 = vcombine.low %v3005_v9, %v3009_v10 }
 0x854   : > { %3477 = vmatpush1.bf16.msra.mxu0 %v5055_v12  ;;  %3520 = vmatpush1.bf16.msra.mxu1 %v5057_v56  ;;  %v3017_v12 = vld [vmem:[#allocation19 + $0x1b8] sm:$0xff] }
 0x855   : > { %3478 = vmatprep.subr.bf16.mxu0 %v5064_v16  ;;  %3521 = vmatprep.subr.bf16.mxu1 %v5066_v57  ;;  %v5098_v14 = vcombine.high %v3013_v11, %v3017_v12  ;;  %v5097_v15 = vcombine.low %v3013_v11, %v3017_v12  ;;  %v3021_v16 = vld [vmem:[#allocation19 + $0x1d8] sm:$0xff] }
 0x858   : > { %3479 = vmatpush1.bf16.msra.mxu0 %v5063_v18  ;;  %3522 = vmatpush1.bf16.msra.mxu1 %v5065_v63  ;;  %v5105_v18 = vcombine.low %v3021_v16, %v3025_v17 }
 0x859   : > { %3480 = vmatprep.subr.bf16.mxu0 %v5072_v0  ;;  %3523 = vmatprep.subr.bf16.mxu1 %v5074_v1  ;;  %v5106_v0 = vcombine.high %v3021_v16, %v3025_v17  ;;  %v3051_v16 = vrot.slane %v7253_v24, %v1381_v33 }
 0x85c   : > { %3481 = vmatpush1.bf16.msra.mxu0 %v5071_v21  ;;  %3524 = vmatpush1.bf16.msra.mxu1 %v5073_v4 }
 0x85d   : > { %3482 = vmatprep.subr.bf16.mxu0 %v5080_v22  ;;  %3525 = vmatprep.subr.bf16.mxu1 %v5082_v7 }
 0x860   : > { %3483 = vmatpush1.bf16.msra.mxu0 %v5079_v44  ;;  %3526 = vmatpush1.bf16.msra.mxu1 %v5081_v51 }
 0x861   : > { %3484 = vmatprep.subr.bf16.mxu0 %v5088_v46  ;;  %3527 = vmatprep.subr.bf16.mxu1 %v5090_v53 }
 0x864   : > { %3485 = vmatpush1.bf16.msra.mxu0 %v5087_v26  ;;  %3528 = vmatpush1.bf16.msra.mxu1 %v5089_v13  ;;  %v3043_v26 = vrot.slane %v7253_v24, %v7146_v61 }
 0x865   : > { %3486 = vmatprep.subr.bf16.mxu0 %v5096_v27  ;;  %3529 = vmatprep.subr.bf16.mxu1 %v5098_v14  ;;  %v3031_v27 = vrot.slane %v7253_v24, %v7130_v36 }
 0x868   : > { %3487 = vmatpush1.bf16.msra.mxu0 %v5095_v30  ;;  %3530 = vmatpush1.bf16.msra.mxu1 %v5097_v15  ;;  %v2698_v30 = vld [vmem:[#allocation17] sm:$0xf]  ;;  %v3047_v15 = vrot.slane %v7253_v24, %v1377_v32  ;;  %v5107_v32 = vld [vmem:[#allocation8] ss:$0 sm:$0xff] }
 0x869   : > { %3488 = vmatprep.subr.bf16.mxu0 %v5104_v31  ;;  %3531 = vmatprep.subr.bf16.mxu1 %v5106_v0  ;;  %v2703_v56 = vrot.slane %v2698_v30, %v7130_v36  ;;  %v2707_v9 = vrot.slane %v2698_v30, %v7133_v54  ;;  %v2711_v10 = vrot.slane %v2698_v30, %v7143_v59 }
 0x86a   : > { %v2715_v12 = vrot.slane %v2698_v30, %v7146_v61  ;;  %vm3565_vm4 = vcmp.eq.s32.totalorder %v7180_v48, %v5107_v32 }
 0x86b   : > { %v3566_v33 = vsel %vm3565_vm4, 0.0, %v6487_v49 }
 0x86c   : > { %3489 = vmatpush1.bf16.msra.mxu0 %v5103_v34  ;;  %3532 = vmatpush1.bf16.msra.mxu1 %v5105_v18 }
 0x86d   : > { %5353 = vmatprep.subr.bf16.mxu0 %v6485_v8  ;;  %5359 = vmatprep.subr.bf16.mxu1 %v6485_v8 }
 0x86f   : > { %3507 = vmatmul.mubr.bf16.vlgmr.msra.gmra.mrb[40].mxu0 %v7239_v6  ;;  %3550 = vmatmul.mubr.bf16.vlgmr.msra.gmra.mrb[40].mxu1 %v7239_v6  ;;  %v3035_v6 = vrot.slane %v7253_v24, %v7133_v54 }
 0x870   : > { %5355 = vmatprep.mubr.msk.bf16.mxu0 %vm6486_vm0, %v6485_v8  ;;  %5361 = vmatprep.mubr.msk.bf16.mxu1 %vm6486_vm0, %v6485_v8 }
 0x901   : > { %v2914_v19 = vpop.f32.mrb[32].mxu0  ;;  %v2955_v20 = vpop.f32.mrb[32].mxu1 }
 0x902   : > { %v2916_v21 = vpop.f32.mrb[33].mxu0  ;;  %v2957_v22 = vpop.f32.mrb[33].mxu1  ;;  %v2915_v4 = vadd.f32 %v2914_v19, %v2703_v56  ;;  %v2956_v53 = vadd.f32 %v2955_v20, %v2711_v10 }
 0x903   : > { %v2918_v23 = vpop.f32.mrb[34].mxu0  ;;  %v2959_v40 = vpop.f32.mrb[34].mxu1  ;;  %v2917_v36 = vadd.f32 %v2916_v21, %v2707_v9  ;;  %v2958_v13 = vadd.f32 %v2957_v22, %v2715_v12 }
 0x904   : > { %v2919_v44 = vpop.f32.mrb[35].mxu0  ;;  %v2960_v46 = vpop.f32.mrb[35].mxu1  ;;  %v3567_v7 = vpack.c.bf16 %v2915_v4, %v2915_v4  ;;  %v3569_v11 = vpack.c.bf16 %v2956_v53, %v2956_v53 }
 0x905   : > { %v3568_v51 = vpack.c.bf16 %v2917_v36, %v2917_v36  ;;  %v3570_v14 = vpack.c.bf16 %v2958_v13, %v2958_v13 }
 0x921   : > { %v3422_v28 = vpop.f32.mrb[36].mxu0  ;;  %v3465_v29 = vpop.f32.mrb[36].mxu1 }
 0x922   : > { %v3424_v31 = vpop.f32.mrb[37].mxu0  ;;  %v3466_v34 = vadd.f32 %v3465_v29, %v3039_v25  ;;  %v3467_v35 = vpop.f32.mrb[37].mxu1  ;;  %v3423_v41 = vadd.f32 %v3422_v28, %v3031_v27 }
 0x923   : > { %v3426_v37 = vpop.f32.mrb[38].mxu0  ;;  %v3468_v38 = vadd.f32 %v3467_v35, %v3043_v26  ;;  %v3469_v39 = vpop.f32.mrb[38].mxu1  ;;  %v3425_v57 = vadd.f32 %v3424_v31, %v3035_v6 }
 0x924   : > { %v3427_v42 = vadd.f32 %v3426_v37, %v3031_v27  ;;  %v3428_v45 = vpop.f32.mrb[39].mxu0  ;;  %v3470_v50 = vadd.f32 %v3469_v39, %v3039_v25  ;;  %v3471_v55 = vpop.f32.mrb[39].mxu1 }
 0x925   : > { %v3429_v60 = vadd.f32 %v3428_v45, %v3035_v6  ;;  %v3472_v62 = vadd.f32 %v3471_v55, %v3043_v26 }
 0x926   : > { %v3571_v63 = vpack.c.bf16 %v3427_v42, %v3423_v41  ;;  %v3573_v1 = vpack.c.bf16 %v3470_v50, %v3466_v34 }
 0x927   : > { %v3572_v3 = vpack.c.bf16 %v3429_v60, %v3425_v57  ;;  %v3574_v5 = vpack.c.bf16 %v3472_v62, %v3468_v38 }
 0x928   : > { %5354 = vmatpush3.bf16.xpose.msra.mxu0 %v3571_v63 }
 0x929   : > { %5365 = vmatprep.subr.bf16.mxu0 %v6485_v8 }
 0x92f   : > { %5356 = vmatmul.mubr.bf16.vlgmr.msra.gmra.mrb[44].mxu0 %v3567_v7 }
 0x930   : > { %5366 = vmatpush3.bf16.xpose.msra.mxu0 %v3572_v3  ;;  %5367 = vmatprep.mubr.msk.bf16.mxu0 %vm6486_vm0, %v6485_v8 }
 0x931   : > { %5377 = vmatprep.subr.bf16.mxu0 %v6485_v8 }
 0x937   : > { %5368 = vmatmul.mubr.bf16.vlgmr.msra.gmra.mrb[48].mxu0 %v3568_v51 }
 0x938   : > { %5378 = vmatpush3.bf16.xpose.msra.mxu0 %v3573_v1  ;;  %5379 = vmatprep.mubr.msk.bf16.mxu0 %vm6486_vm0, %v6485_v8 }
 0x939   : > { %5389 = vmatprep.subr.bf16.mxu0 %v6485_v8 }
 0x93f   : > { %5380 = vmatmul.mubr.bf16.vlgmr.msra.gmra.mrb[52].mxu0 %v3569_v11 }
 0x940   : > { %5390 = vmatpush3.bf16.xpose.msra.mxu0 %v3574_v5  ;;  %5391 = vmatprep.mubr.msk.bf16.mxu0 %vm6486_vm0, %v6485_v8 }
 0x942   : > { %v3508_v17 = vpop.f32.mrb[40].mxu0 }
 0x943   : > { %v3509_v18 = vadd.f32 %v3508_v17, %v3047_v15  ;;  %v3510_v0 = vpop.f32.mrb[41].mxu0 }
 0x944   : > { %v7282_v61 = vadd.f32 %v3510_v0, %v3051_v16  ;;  %v3512_v19 = vpop.f32.mrb[42].mxu0  ;;  %v3055_v0 = vrot.slane %v7253_v24, %v1385_v43  ;;  %v5796_v43 = vld [vmem:[#allocation22 + $0x50] sm:$0xff]  }
 0x945   : > { %v3513_v20 = vadd.f32 %v3512_v19, %v3047_v15  ;;  %v3514_v21 = vpop.f32.mrb[43].mxu0  ;;  %v3059_v19 = vrot.slane %v7253_v24, %v1389_v47  ;;  %v5798_v47 = vld [vmem:[#allocation22 + $0x58] sm:$0xff]  }
 0x946   : > { %v7284_v23 = vadd.f32 %v3514_v21, %v3051_v16  ;;  %v5799_v24 = vld [vmem:[#allocation22 + $0x18] sm:$0xff]  }
 0x947   : > { %5392 = vmatmul.mubr.bf16.vlgmr.msra.gmra.mrb[56].mxu0 %v3570_v14  ;;  %v3575_v22 = vpack.c.bf16 %v3513_v20, %v3509_v18  ;;  %v3551_v18 = vpop.f32.mrb[40].mxu1 }
 0x948   : > { %v3576_v40 = vpack.c.bf16 %v7284_v23, %v7282_v61  ;;  %v3553_v20 = vpop.f32.mrb[41].mxu1  ;;  %v3552_v21 = vadd.f32 %v3551_v18, %v3055_v0  ;;  %v5823_v18 = vld [vmem:[#allocation22 + $0xb8] sm:$0xff]  }
 0x949   : > { %5360 = vmatpush3.bf16.msra.mxu1 %v3575_v22  ;;  %v3554_v22 = vadd.f32 %v3553_v20, %v3059_v19  ;;  %v3555_v32 = vpop.f32.mrb[42].mxu1 }
 0x94a   : > { %5371 = vmatprep.subr.bf16.mxu1 %v6485_v8 }
 0xa02   : > { %v3613_v44 = vpop.f32.mrb[44].mxu0 }
 0xa03   : > { %v3614_v46 = vadd.f32 %v3613_v44, %v3566_v33  ;;  %v5357_v25 = vpop.f32.mrb[45].mxu0  ;;  %v3556_v44 = vadd.f32 %v3555_v32, %v3055_v0 }
 0xa04   : > { %v3616_v26 = vpop.f32.mrb[46].mxu0 }
 0xa05   : > { %v5358_v27 = vpop.f32.mrb[47].mxu0  ;;  %v3619_v28 = vsel %vm1954_vm2, %v3614_v46, -inf  ;;  %v3577_v25 = vpack.c.bf16 %v3556_v44, %v3552_v21 }
 0xa06   : > { %3620 = vmax.xlane.f32.xlu0 %v3619_v28  ;;  %v5792_v27 = vld [vmem:[#allocation22 + $0x40] sm:$0xff]  }
 0xa07   : > { %v5793_v28 = vld [vmem:[#allocation22] sm:$0xff]   ;;  %5243 = vmatprep.subr.bf16.mxu0 %v5792_v27 }
 0xa08   : > { %5244 = vmatpush3.bf16.msra.mxu0 %v5793_v28 }
 0xa0a   : > { %v3708_v6 = vpop.f32.mrb[48].mxu0 }
 0xa0b   : > { %v3709_v29 = vadd.f32 %v3708_v6, %v3566_v33  ;;  %v5369_v30 = vpop.f32.mrb[49].mxu0  ;;  %v5794_v6 = vld [vmem:[#allocation22 + $0x48] sm:$0xff]  }
 0xa0c   : > { %v3711_v31 = vpop.f32.mrb[50].mxu0  ;;  %5245 = vmatprep.subr.bf16.mxu0 %v5794_v6  ;;  %v5800_v30 = vld [vmem:[#allocation22 + $0x60] sm:$0xff]  }
 0xa0d   : > { %v5370_v34 = vpop.f32.mrb[51].mxu0  ;;  %v3714_v35 = vsel %vm1954_vm2, %v3709_v29, -inf  ;;  %v5802_v31 = vld [vmem:[#allocation22 + $0x20] sm:$0xff]  }
 0xa0e   : > { %3715 = vmax.xlane.f32.xlu1 %v3714_v35 }
 0xa12   : > { %v3803_v37 = vpop.f32.mrb[52].mxu0 }
 0xa13   : > { %v3804_v48 = vadd.f32 %v3803_v37, %v3566_v33  ;;  %v5381_v38 = vpop.f32.mrb[53].mxu0 }
 0xa14   : > { %v3806_v49 = vpop.f32.mrb[54].mxu0 }
 0xa15   : > { %v5382_v39 = vpop.f32.mrb[55].mxu0  ;;  %v3809_v41 = vsel %vm1954_vm2, %v3804_v48, -inf }
 0xa16   : > { %3810 = vmax.xlane.f32.xlu0 %v3809_v41 }
 0xa1a   : > { %v3898_v42 = vpop.f32.mrb[56].mxu0 }
 0xa1b   : > { %v3899_v45 = vadd.f32 %v3898_v42, %v3566_v33  ;;  %v5393_v50 = vpop.f32.mrb[57].mxu0  ;;  %v3557_v33 = vpop.f32.mrb[43].mxu1 }
 0xa1c   : > { %v3901_v55 = vpop.f32.mrb[58].mxu0  ;;  %v5801_v50 = vld [vmem:[#allocation22 + $0xc0] sm:$0xff]  }
 0xa1d   : > { %v5394_v56 = vpop.f32.mrb[59].mxu0  ;;  %v3904_v57 = vsel %vm1954_vm2, %v3899_v45, -inf }
 0xa1e   : > { %3905 = vmax.xlane.f32.xlu1 %v3904_v57  ;;  %v5803_v57 = vld [vmem:[#allocation22 + $0x80] sm:$0xff]  }
 0xa93   : > { %v3621_v60 = vpop.xlane.xlu0 %3620 }
 0xa94   : > { %v3622_v62 = vsub.f32 %v3614_v46, %v3621_v60  ;;  %v3558_v46 = vadd.f32 %v3557_v33, %v3059_v19 }
 0xa96   : > { %v3623_v63 = vmul.f32 1.442695, %v3622_v62  ;;  %v3578_v26 = vpack.c.bf16 %v3558_v46, %v3554_v22  ;;  %v5804_v62 = vld [vmem:[#allocation22 + $0x68] sm:$0xff]  }
 0xa98   : > { %5858 = vpow2.f32 %v3623_v63  ;;  %v5805_v63 = vld [vmem:[#allocation22 + $0xc8] sm:$0xff]  }
 0xa9b   : > { %v3716_v1 = vpop.xlane.xlu1 %3715 }
 0xa9c   : > { %v3717_v3 = vsub.f32 %v3709_v29, %v3716_v1  ;;  %v5795_v29 = vld [vmem:[#allocation22 + $0x8] sm:$0xff]  }
 0xa9d   : > { %5246 = vmatpush3.bf16.msra.mxu0 %v5795_v29  ;;  %v5806_v1 = vld [vmem:[#allocation22 + $0x28] sm:$0xff]  }
 0xa9e   : > { %v3718_v5 = vmul.f32 1.442695, %v3717_v3  ;;  %5247 = vmatprep.subr.bf16.mxu0 %v5796_v43  ;;  %v5807_v3 = vld [vmem:[#allocation22 + $0x88] sm:$0xff]  }
 0xaa0   : > { %5860 = vpow2.f32 %v3718_v5  ;;  %v5808_v5 = vld [vmem:[#allocation22 + $0x70] sm:$0xff]  }
 0xaa1   : > { %5248 = vmatpush3.bf16.msra.mxu0 %v5797_v52 }
 0xaa2   : > { %v5859_v4 = vpop.eup %5858  ;;  %5249 = vmatprep.subr.bf16.mxu0 %v5798_v47 }
 0xaa3   : > { %v3811_v7 = vpop.xlane.xlu0 %3810  ;;  %v3625_v9 = vsel %vm1954_vm2, %v5859_v4, 0.0 }
 0xaa4   : > { %v3812_v36 = vsub.f32 %v3804_v48, %v3811_v7  ;;  %3626 = vadd.xlane.f32.xlu0 %v3625_v9  ;;  %v5810_v7 = vld [vmem:[#allocation22 + $0x30] sm:$0xff]  }
 0xaa5   : > { %5250 = vmatpush3.bf16.msra.mxu0 %v5799_v24  ;;  %v5811_v9 = vld [vmem:[#allocation22 + $0x90] sm:$0xff]  }
 0xaa6   : > { %v3813_v10 = vmul.f32 1.442695, %v3812_v36  ;;  %5251 = vmatprep.subr.bf16.mxu0 %v5800_v30  ;;  %v5812_v36 = vld [vmem:[#allocation22 + $0x78] sm:$0xff]  }
 0xaa8   : > { %5862 = vpow2.f32 %v3813_v10  ;;  %v5813_v10 = vld [vmem:[#allocation22 + $0xd8] sm:$0xff]  }
 0xaa9   : > { %5252 = vmatpush3.bf16.msra.mxu0 %v5802_v31 }
 0xaaa   : > { %v5861_v51 = vpop.eup %5860  ;;  %5253 = vmatprep.subr.bf16.mxu0 %v5804_v62 }
 0xaab   : > { %v3906_v53 = vpop.xlane.xlu1 %3905  ;;  %v3720_v11 = vsel %vm1954_vm2, %v5861_v51, 0.0 }
 0xaac   : > { %v3907_v12 = vsub.f32 %v3899_v45, %v3906_v53  ;;  %3721 = vadd.xlane.f32.xlu1 %v3720_v11  ;;  %v5815_v53 = vld [vmem:[#allocation22 + $0x98] sm:$0xff]   ;;  %v5816_v11 = vld [vmem:[#allocation22 + $0xe0] sm:$0xff]  }
 0xaad   : > { %5254 = vmatpush3.bf16.msra.mxu0 %v5806_v1  ;;  %v5827_v1 = vld [vmem:[%s7563_s7 + $0x18] sm:$0xff]  }
 0xaae   : > { %v3908_v13 = vmul.f32 1.442695, %v3907_v12  ;;  %5255 = vmatprep.subr.bf16.mxu0 %v5808_v5  ;;  %v5817_v12 = vld [vmem:[#allocation22 + $0xa0] sm:$0xff]   ;;  %v5829_v5 = vld [vmem:[%s7563_s7 + $0x28] sm:$0xff]  }
 0xab0   : > { %5864 = vpow2.f32 %v3908_v13  ;;  %v5818_v13 = vld [vmem:[#allocation22 + $0xe8] sm:$0xff]  }
 0xab1   : > { %5256 = vmatpush3.bf16.msra.mxu0 %v5810_v7  ;;  %v5831_v7 = vld [vmem:[%s7563_s7 + $0x38] sm:$0xff]  }
 0xab2   : > { %v5863_v14 = vpop.eup %5862  ;;  %5257 = vmatprep.subr.bf16.mxu0 %v5812_v36 }
 0xab3   : > { %v3815_v15 = vsel %vm1954_vm2, %v5863_v14, 0.0 }
 0xab4   : > { %3816 = vadd.xlane.f32.xlu0 %v3815_v15  ;;  %v5820_v15 = vld [vmem:[#allocation22 + $0xf0] sm:$0xff]  }
 0xaba   : > { %v7298_v16 = vpop.eup %5864 }
 0xabb   : > { %v3910_v17 = vsel %vm1954_vm2, %v7298_v16, 0.0 }
 0xabc   : > { %3911 = vadd.xlane.f32.xlu1 %v3910_v17  ;;  %v5822_v17 = vld [vmem:[#allocation22 + $0xf8] sm:$0xff]  }
 0xb31   : > { %v3627_v34 = vpop.xlane.xlu0 %3626 }
 0xb32   : > { %5866 = vrcp.f32 %v3627_v34 }
 0xb39   : > { %v3722_v35 = vpop.xlane.xlu1 %3721 }
 0xb3a   : > { %5868 = vrcp.f32 %v3722_v35 }
 0xb3c   : > { %v5867_v37 = vpop.eup %5866 }
 0xb3d   : > { %v3629_v48 = vmul.f32 %v5867_v37, %v5859_v4  ;;  %v5809_v4 = vld [vmem:[#allocation22 + $0xd0] sm:$0xff]  }
 0xb3f   : > { %v3630_v38 = vpack.c.bf16 %v3629_v48, %v3629_v48 }
 0xb41   : > { %5362 = vmatmul.mubr.msk.bf16.vlgmr.msra.gmra.mrb[44].mxu1 %vm1954_vm2, %v3630_v38  ;;  %v3817_v49 = vpop.xlane.xlu0 %3816  ;;  %v5112_v38 = vld [vmem:[#allocation23] ss:$0 sm:$0xff] }
 0xb42   : > { %5372 = vmatpush3.bf16.msra.mxu1 %v3576_v40  ;;  %5870 = vrcp.f32 %v3817_v49  ;;  %5373 = vmatprep.mubr.msk.bf16.mxu1 %vm6486_vm0, %v6485_v8 }
 0xb43   : > { %5383 = vmatprep.subr.bf16.mxu1 %v6485_v8 }
 0xb44   : > { %v5869_v39 = vpop.eup %5868 }
 0xb45   : > { %v3724_v41 = vmul.f32 %v5869_v39, %v5861_v51  ;;  %v5814_v51 = vld [vmem:[#allocation22 + $0x38] sm:$0xff]  }
 0xb46   : > { %5258 = vmatpush3.bf16.msra.mxu0 %v5814_v51 }
 0xb47   : > { %v3725_v42 = vpack.c.bf16 %v3724_v41, %v3724_v41  ;;  %5401 = vmatprep.subr.bf16.mxu0 %v6485_v8 }
 0xb49   : > { %5374 = vmatmul.mubr.msk.bf16.vlgmr.msra.gmra.mrb[48].mxu1 %vm1954_vm2, %v3725_v42  ;;  %v3912_v45 = vpop.xlane.xlu1 %3911 }
 0xb4a   : > { %5384 = vmatpush3.bf16.msra.mxu1 %v3577_v25  ;;  %5872 = vrcp.f32 %v3912_v45  ;;  %5385 = vmatprep.mubr.msk.bf16.mxu1 %vm6486_vm0, %v6485_v8 }
 0xb4b   : > { %5395 = vmatprep.subr.bf16.mxu1 %v6485_v8 }
 0xb4c   : > { %v5871_v61 = vpop.eup %5870 }
 0xb4d   : > { %v3819_v23 = vmul.f32 %v5871_v61, %v5863_v14  ;;  %v5819_v14 = vld [vmem:[#allocation22 + $0xa8] sm:$0xff]  }
 0xb4f   : > { %v3820_v40 = vpack.c.bf16 %v3819_v23, %v3819_v23 }
 0xb51   : > { %5386 = vmatmul.mubr.msk.bf16.vlgmr.msra.gmra.mrb[52].mxu1 %vm1954_vm2, %v3820_v40 }
 0xb52   : > { %5396 = vmatpush3.bf16.msra.mxu1 %v3578_v26  ;;  %5397 = vmatprep.mubr.msk.bf16.mxu1 %vm6486_vm0, %v6485_v8 }
 0xb53   : > { %5265 = vmatprep.subr.bf16.mxu1 %v5801_v50  ;;  %v5824_v50 = vld [vmem:[%s7563_s7] sm:$0xff]  }
 0xb54   : > { %v5873_v55 = vpop.eup %5872 }
 0xb55   : > { %v3914_v56 = vmul.f32 %v5873_v55, %v7298_v16  ;;  %v5821_v16 = vld [vmem:[#allocation22 + $0xb0] sm:$0xff]  }
 0xb56   : > { %v5825_v55 = vld [vmem:[%s7563_s7 + $0x8] sm:$0xff]  }
 0xb57   : > { %v3915_v60 = vpack.c.bf16 %v3914_v56, %v3914_v56 }
 0xb59   : > { %5398 = vmatmul.mubr.msk.bf16.vlgmr.msra.gmra.mrb[56].mxu1 %vm1954_vm2, %v3915_v60 }
 0xb5a   : > { %5266 = vmatpush3.bf16.msra.mxu1 %v5803_v57 }
 0xb5b   : > { %5267 = vmatprep.subr.bf16.mxu1 %v5805_v63  ;;  %v5826_v63 = vld [vmem:[%s7563_s7 + $0x10] sm:$0xff]  }
 0xb5e   : > { %5268 = vmatpush3.bf16.msra.mxu1 %v5807_v3  ;;  %v5828_v3 = vld [vmem:[%s7563_s7 + $0x20] sm:$0xff]  }
 0xb5f   : > { %5269 = vmatprep.subr.bf16.mxu1 %v5809_v4  ;;  %v5830_v4 = vld [vmem:[%s7563_s7 + $0x30] sm:$0xff]  }
 0xb62   : > { %5270 = vmatpush3.bf16.msra.mxu1 %v5811_v9  ;;  %v5832_v9 = vld [vmem:[#allocation28] sm:$0xff]  }
 0xb63   : > { %5271 = vmatprep.subr.bf16.mxu1 %v5813_v10 }
 0xb66   : > { %5272 = vmatpush3.bf16.msra.mxu1 %v5815_v53  ;;  %v7364_v53 = vld [vmem:[#allocation25] sm:$0x7] }
 0xb67   : > { %5273 = vmatprep.subr.bf16.mxu1 %v5816_v11  ;;  %v4322_v11 = vrot.slane %v7364_v53, %v7133_v54 }
 0xb6a   : > { %5274 = vmatpush3.bf16.msra.mxu1 %v5817_v12 }
 0xb6b   : > { %5275 = vmatprep.subr.bf16.mxu1 %v5818_v13 }
 0xb6e   : > { %5276 = vmatpush3.bf16.msra.mxu1 %v5819_v14  ;;  %v7368_v14 = vld [vmem:[#allocation26] sm:$0x7] }
 0xb6f   : > { %5277 = vmatprep.subr.bf16.mxu1 %v5820_v15  ;;  %v4327_v15 = vrot.slane %v7368_v14, %v7133_v54  ;;  %v5838_v54 = vld [vmem:[#allocation28 + $0x30] sm:$0xff]  }
 0xb72   : > { %5278 = vmatpush3.bf16.msra.mxu1 %v5821_v16 }
 0xb73   : > { %5279 = vmatprep.subr.bf16.mxu1 %v5822_v17 }
 0xb76   : > { %5280 = vmatpush3.bf16.msra.mxu1 %v5823_v18 }
 0xb77   : > { %5421 = vmatprep.subr.bf16.mxu1 %v6485_v8 }
 0xc14   : > { %v3668_v0 = vpop.f32.mrb[44].mxu1 }
 0xc15   : > { %v5363_v19 = vpop.f32.mrb[45].mxu1  ;;  %v3959_v44 = vpack.c.bf16 %v3668_v0, %v3668_v0  ;;  %v5833_v0 = vld [vmem:[#allocation28 + $0x8] sm:$0xff]  }
 0xc16   : > { %v3671_v20 = vpop.f32.mrb[46].mxu1  ;;  %v5834_v19 = vld [vmem:[#allocation28 + $0x10] sm:$0xff]  }
 0xc17   : > { %v5364_v21 = vpop.f32.mrb[47].mxu1  ;;  %v5835_v20 = vld [vmem:[#allocation28 + $0x18] sm:$0xff]  }
 0xc18   : > { %v5836_v21 = vld [vmem:[#allocation28 + $0x20] sm:$0xff]  }
 0xc1c   : > { %v3763_v22 = vpop.f32.mrb[48].mxu1 }
 0xc1d   : > { %v3960_v32 = vpack.c.bf16 %v3763_v22, %v3763_v22  ;;  %v5375_v33 = vpop.f32.mrb[49].mxu1  ;;  %v5837_v22 = vld [vmem:[#allocation28 + $0x28] sm:$0xff]  }
 0xc1e   : > { %v3766_v46 = vpop.f32.mrb[50].mxu1  ;;  %v5145_v33 = vld [vmem:[%s7564_s4] ss:$0 sm:$0xff]  ;;  %s4587_s4 = scalar_lea.sflag [#allocation4], %s970_s30 }
 0xc1f   : > { %v5376_v25 = vpop.f32.mrb[51].mxu1  ;;  %4258 = vmatprep.mubr.bf16.mxu0 %v3960_v32  ;;  %v5839_v32 = vld [vmem:[#allocation28 + $0x38] sm:$0xff]  }
 0xc20   : > { %4259 = vmatmul.mubr.bf16.vlgmr.msra.gmra.mrb[60].mxu0 %v3959_v44 }
 0xc21   : > { %5417 = vmatprep.mubr.msk.bf16.mxu0 %vm6486_vm0, %v6485_v8  ;;  %5402 = vmatpush3.bf16.msra.mxu0 %v5824_v50 }
 0xc22   : > { %5403 = vmatprep.subr.bf16.mxu0 %v6485_v8 }
 0xc24   : > { %v3858_v26 = vpop.f32.mrb[52].mxu1 }
 0xc25   : > { %v5387_v27 = vpop.f32.mrb[53].mxu1  ;;  %v3961_v47 = vpack.c.bf16 %v3858_v26, %v3858_v26  ;;  %5404 = vmatpush3.bf16.msra.mxu0 %v5825_v55 }
 0xc26   : > { %v3861_v28 = vpop.f32.mrb[54].mxu1  ;;  %5405 = vmatprep.subr.bf16.mxu0 %v6485_v8 }
 0xc27   : > { %v5388_v6 = vpop.f32.mrb[55].mxu1 }
 0xc29   : > { %5406 = vmatpush3.bf16.msra.mxu0 %v5826_v63 }
 0xc2a   : > { %5407 = vmatprep.subr.bf16.mxu0 %v6485_v8 }
 0xc2c   : > { %v3953_v29 = vpop.f32.mrb[56].mxu1 }
 0xc2d   : > { %v3962_v43 = vpack.c.bf16 %v3953_v29, %v3953_v29  ;;  %v5399_v52 = vpop.f32.mrb[57].mxu1  ;;  %5408 = vmatpush3.bf16.msra.mxu0 %v5827_v1 }
 0xc2e   : > { %v3956_v24 = vpop.f32.mrb[58].mxu1  ;;  %5409 = vmatprep.subr.bf16.mxu0 %v6485_v8 }
 0xc2f   : > { %v5400_v30 = vpop.f32.mrb[59].mxu1  ;;  %4298 = vmatprep.mubr.bf16.mxu1 %v3962_v43 }
 0xc30   : > { %4299 = vmatmul.mubr.bf16.vlgmr.msra.gmra.mrb[60].mxu1 %v3961_v47 }
 0xc31   : > { %5437 = vmatprep.mubr.msk.bf16.mxu1 %vm6486_vm0, %v6485_v8  ;;  %5410 = vmatpush3.bf16.msra.mxu0 %v5828_v3 }
 0xc32   : > { %5411 = vmatprep.subr.bf16.mxu0 %v6485_v8  ;;  %5422 = vmatpush3.bf16.msra.mxu1 %v5832_v9 }
 0xc33   : > { %5423 = vmatprep.subr.bf16.mxu1 %v6485_v8 }
 0xc35   : > { %5412 = vmatpush3.bf16.msra.mxu0 %v5829_v5 }
 0xc36   : > { %5413 = vmatprep.subr.bf16.mxu0 %v6485_v8  ;;  %5424 = vmatpush3.bf16.msra.mxu1 %v5833_v0 }
 0xc37   : > { %5425 = vmatprep.subr.bf16.mxu1 %v6485_v8 }
 0xc39   : > { %5414 = vmatpush3.bf16.msra.mxu0 %v5830_v4 }
 0xc3a   : > { %5415 = vmatprep.subr.bf16.mxu0 %v6485_v8  ;;  %5426 = vmatpush3.bf16.msra.mxu1 %v5834_v19 }
 0xc3b   : > { %5427 = vmatprep.subr.bf16.mxu1 %v6485_v8 }
 0xc3d   : > { %5416 = vmatpush3.bf16.msra.mxu0 %v5831_v7 }
 0xc3e   : > { %5428 = vmatpush3.bf16.msra.mxu1 %v5835_v20 }
 0xc3f   : > { %5429 = vmatprep.subr.bf16.mxu1 %v6485_v8 }
 0xc42   : > { %5430 = vmatpush3.bf16.msra.mxu1 %v5836_v21 }
 0xc43   : > { %5431 = vmatprep.subr.bf16.mxu1 %v6485_v8 }
 0xc46   : > { %5432 = vmatpush3.bf16.msra.mxu1 %v5837_v22 }
 0xc47   : > { %5433 = vmatprep.subr.bf16.mxu1 %v6485_v8 }
 0xc4a   : > { %5434 = vmatpush3.bf16.msra.mxu1 %v5838_v54 }
 0xc4b   : > { %5435 = vmatprep.subr.bf16.mxu1 %v6485_v8 }
 0xc4e   : > { %5436 = vmatpush3.bf16.msra.mxu1 %v5839_v32 }
 0xcf3   : > { %v5259_v31 = vpop.f32.mrb[60].mxu0 }
 0xcf4   : > { %v5260_v34 = vpop.f32.mrb[61].mxu0 }
 0xcf5   : > { %v5261_v35 = vadd.f32 %v5260_v34, %v5259_v31  ;;  %v5262_v37 = vpop.f32.mrb[62].mxu0  ;;  %v5154_v34 = vld [vmem:[%s7565_s11] ss:$0 sm:$0xff]  ;;  %s6365_s11 = scalar_lea.vmem %s6364_s20, 256 }
 0xcf6   : > { %v5263_v48 = vpop.f32.mrb[63].mxu0  ;;  %p6367_p1 = scmp.lt.s32.totalorder %s6365_s11, %s6359_s9 }
 0xcf7   : > { %v4261_v41 = vadd.f32 %v5261_v35, %v5112_v38 }
 0xcf8   : > { %p6368_p6 = por %p6367_p1, %p6366_p13 }
 0xcfa   : > { %p6369_p9 = pnand %p6368_p6, %p6362_p11 }
 0xd03   : > { %v5281_v49 = vpop.f32.mrb[60].mxu1 }
 0xd04   : > { %v5282_v39 = vpop.f32.mrb[61].mxu1 }
 0xd05   : > { %v5283_v42 = vadd.f32 %v5282_v39, %v5281_v49  ;;  %v5284_v45 = vpop.f32.mrb[62].mxu1 }
 0xd06   : > { %v5285_v61 = vpop.f32.mrb[63].mxu1 }
 0xd07   : > { %v4301_v23 = vadd.f32 %v5283_v42, %v4261_v41 }
 0xd09   : > { %v4306_v40 = vadd.f32 %v4301_v23, %v7233_v58 }
 0xd0b   : > { %4307 = vadd.xlane.f32.xlu0 %v4306_v40 }
 0xd98   : > { %v4308_v56 = vpop.xlane.xlu0 %4307 }
 0xd99   : > { %v4309_v57 = vmul.f32 0.03125, %v4308_v56  ;;  %v4578_v56 = vrot.slane %v7364_v53, %v7143_v59 }
 0xd9b   : > { %v4310_v60 = vsub.f32 %v4306_v40, %v4309_v57 }
 0xd9d   : > { %v4311_v58 = vmul.f32 %v7228_v2, %v4310_v60 }
 0xd9f   : > { %v4312_v62 = vmul.f32 %v4311_v58, %v4311_v58 }
 0xda1   : > { %4313 = vadd.xlane.f32.xlu1 %v4312_v62 }
 0xe2e   : > { %v4314_v36 = vpop.xlane.xlu1 %4313 }
 0xe2f   : > { %v4315_v10 = vmul.f32 0.03125, %v4314_v36 }
 0xe31   : > { %v4316_v51 = vadd.f32 1e-05, %v4315_v10 }
 0xe33   : > { %5874 = vrsqrt.f32 %v4316_v51 }
 0xe3d   : > { %v5875_v12 = vpop.eup %5874 }
 0xe3e   : > { %v4318_v13 = vmul.f32 %v5875_v12, %v4311_v58  ;;  %v4583_v58 = vrot.slane %v7368_v14, %v7143_v59 }
 0xe40   : > { %v4323_v16 = vmul.f32 %v4322_v11, %v4318_v13 }
 0xe42   : > { %v4328_v17 = vadd.f32 %v4327_v15, %v4323_v16 }
 0xe44   : > { %v4329_v18 = vpack.c.bf16 %v4328_v17, %v4328_v17 }
 0xe46   : > { %5418 = vmatmul.mubr.bf16.vlgmr.msra.gmra.mrb[64].mxu0 %v4329_v18 }
 0xf19   : > { %v4435_v44 = vpop.f32.mrb[64].mxu0 }
 0xf1a   : > { %v4436_v46 = vadd.f32 %v5145_v33, %v4435_v44  ;;  %v5419_v25 = vpop.f32.mrb[65].mxu0 }
 0xf1b   : > { %v4438_v26 = vpop.f32.mrb[66].mxu0 }
 0xf1c   : > { %v4442_v27 = vmul.f32 %v4436_v46, %v4436_v46  ;;  %v5420_v28 = vpop.f32.mrb[67].mxu0  ;;  %v4441_v24 = vmul.f32 0.5, %v4436_v46 }
 0xf1e   : > { %v4443_v6 = vmul.f32 %v4442_v27, %v4436_v46 }
 0xf20   : > { %v4444_v29 = vmul.f32 0.044715, %v4443_v6 }
 0xf22   : > { %v4445_v43 = vadd.f32 %v4444_v29, %v4436_v46 }
 0xf24   : > { %v4446_v52 = vmul.f32 0.7978846, %v4445_v43 }
 0xf26   : > { %5876 = vtanh.f32 %v4446_v52 }
 0xf30   : > { %v5877_v47 = vpop.eup %5876 }
 0xf31   : > { %v4448_v30 = vadd.f32 1.0, %v5877_v47 }
 0xf33   : > { %v4449_v8 = vmul.f32 %v4448_v30, %v4441_v24 }
 0xf35   : > { %v4450_v31 = vpack.c.bf16 %v4449_v8, %v4449_v8 }
 0xf37   : > { %5438 = vmatmul.mubr.bf16.vlgmr.msra.gmra.mrb[64].mxu1 %v4450_v31 }
0x100a   : > { %v4556_v35 = vpop.f32.mrb[64].mxu1 }
0x100b   : > { %v4557_v37 = vadd.f32 %v5154_v34, %v4556_v35  ;;  %v5439_v48 = vpop.f32.mrb[65].mxu1 }
0x100c   : > { %v4559_v38 = vpop.f32.mrb[66].mxu1 }
0x100d   : > { %v5440_v49 = vpop.f32.mrb[67].mxu1  ;;  %v4562_v39 = vadd.f32 %v4557_v37, %v4328_v17 }
0x100f   : > { %4563 = vadd.xlane.f32.xlu0 %v4562_v39 }
0x109c   : > { %v4564_v41 = vpop.xlane.xlu0 %4563 }
0x109d   : > { %v4565_v42 = vmul.f32 0.03125, %v4564_v41 }
0x109f   : > { %v4566_v45 = vsub.f32 %v4562_v39, %v4565_v42 }
0x10a1   : > { %v4567_v61 = vmul.f32 %v7228_v2, %v4566_v45 }
0x10a3   : > { %v4568_v23 = vmul.f32 %v4567_v61, %v4567_v61 }
0x10a5   : > { %4569 = vadd.xlane.f32.xlu1 %v4568_v23 }
0x1132   : > { %v4570_v40 = vpop.xlane.xlu1 %4569 }
0x1133   : > { %v4571_v50 = vmul.f32 0.03125, %v4570_v40 }
0x1135   : > { %v4572_v55 = vadd.f32 1e-05, %v4571_v50 }
0x1137   : > { %5878 = vrsqrt.f32 %v4572_v55 }
0x1141   : > { %v5879_v57 = vpop.eup %5878 }
0x1142   : > { %v4574_v60 = vmul.f32 %v5879_v57, %v4567_v61 }
0x1144   : > { %v4579_v2 = vmul.f32 %v4578_v56, %v4574_v60 }
0x1146   : > { %v4584_v62 = vadd.f32 %v4583_v58, %v4579_v2 }
0x1148   : > { %4585 = vst [vmem:[%s972_s3] sm:$0xff] %v4584_v62 }
0x1149   : > { %6372 = shalt.err (!%p6369_p9)
}
0x114a   : > { %s6373_s6 = scalar_lea.hbm %s7394_s23, 128  ;;  %s6377_s24 = scalar_lea.hbm %s7568_s2, 256 }
0x114b   : > { %p6374_p5 = scmp.ne.s32.totalorder %s7394_s23, %s6373_s6  ;;  %p6378_p2 = scmp.lt.u32.totalorder %s7394_s23, %s7568_s2 }
0x114c   : > { %p6379_p3 = scmp.lt.u32.totalorder %s6377_s24, %s6373_s6  ;;  %p6381_p12 = scmp.lt.u32.totalorder %s6373_s6, %s7394_s23 }
0x114d   : > { %p6375_p0 = pnand %p6374_p5, %p7569_p7 }
0x114e   : > { %p6380_p4 = por %p6379_p3, %p6378_p2 }
0x114f   : > { %p6376_p10 = pneg %p6375_p0 }
0x1150   : > { %p6382_p8 = por %p6381_p12, %p6380_p4 }
0x1152   : > { %p6383_p11 = pnand %p6382_p8, %p6376_p10 }
0x1154   : > { %6386 = shalt.err (!%p6383_p11)
}
0x1155   : > { %5509 = dma.vmem_to_hbm [thread:$0]  (%p7569_p7), %s7396_s27, 128, %s7394_s23, %s4587_s4  }
0x1156 PF: > { %s7570_s8 = sld [smem:[#allocation43_spill]]  ;;  %s7571_s9 = sld [smem:[#allocation40_spill]] }
0x1157   : > { %s7572_s26 = sld [smem:[#allocation48_spill]] }
0x115c   : > { %p5601_p13 = scmp.ge.s32.totalorder %s7570_s8, 2  ;;  %s4612_s20 = sand.u32 1, %s7571_s9  }
0x115d   : > { %p7573_p1 = scmp.ne.s32.totalorder %s7572_s26, 0  ;;  %s4613_s11 = scalar_lea.sflag [#allocation4], %s4612_s20 }
0x115f   : > { %p5564_p6 = pnand %p5601_p13, %p7573_p1 }
0x1161   : > { %6440 = dma.done.wait (!%p5564_p6), %s4613_s11, 128  }
0x1162   : > { %6442 = vsyncadd (!%p5564_p6), %s4613_s11, 4294967168  ;;  %s7574_s28 = sld [smem:[#allocation45_spill]]  ;;  %s7575_s5 = sld [smem:[#allocation41_spill]] }
0x1163   : > { %s7576_s26 = sld [smem:[#allocation42_spill]]  ;;  %s7577_s27 = sld [smem:[#allocation46_spill]] }
0x1168   : > { %p43_p9 = scmp.ge.s32.totalorder %s7574_s28, 4  }
0x116a   :  { %45 = sbr.rel (!%p43_p9) target bundleno = 28 (0x1c), region = 223 }
0x1171   :  { %4618 = vsyncpa [#allocation3], 1 }
0x1172   :  { %4620 = vsyncpa [#allocation3 + $0x1], 1 }
0x1173   :  { %4621 = vsyncpa [#allocation6], 1 }
0x1174   :  { %4622 = vsyncpa [#allocation9], 1 }
0x1175   :  { %4623 = vsyncpa [#allocation12], 1 }
0x1176   :  { %4624 = vsyncpa [#allocation15], 1 }
0x1177   :  { %4625 = vsyncpa [#allocation18], 1 }
0x1178   :  { %4626 = vsyncpa [#allocation21], 1 }
0x1179   :  { %4627 = vsyncpa [#allocation24], 1 }
0x117a   :  { %4628 = vsyncpa [#allocation27], 1 }
0x117b   :  { %4629 = vsyncpa [#allocation4], 1 }
0x117c   :  { %4631 = vsyncpa [#allocation4 + $0x1], 1 }

</bundles_post_ra>
